<compile_context>
chip_gen: v6e
topology: v6e:2x2x1
jax: 0.10.0
libtpu: 0.0.40
codegen_flags: <defaults>
</compile_context>

<pallas_src>
import functools

import jax
import jax.numpy as jnp
from jax.experimental import pallas as pl
from jax.experimental.pallas import tpu as pltpu


def _round_up(n, m):
    return ((n + m - 1) // m) * m


# ----------------------------------------------------------------------------
# Fused kernel: runs ALL layers for one (batch element, time tile) pair.
#
#   x_hbm     : (B, 2*halo + T_pad, C0p)  zero-padded channels-last input (HBM)
#   per layer : w (K, Cin_p, Cout_p), scale (1, Cout_p), bias (1, Cout_p)
#   o_ref     : (1, t_tile, Cout_p_last)
#   scratch   : xbuf (W, C0p), buf_a/buf_b (W, Cmax), W = t_tile + 2*halo
#
# Buffer row convention: at the start of layer l, the current buffer row r
# holds layer-(l-1) output (or raw input for l=0) at global time row
#   g = t0 - halo + l*pad + r,  with rows outside [0, T) forced to zero
# (those zeros are exactly the "same"-padding of the next conv layer).
# ----------------------------------------------------------------------------
def _postnet_fused_kernel(x_hbm, *refs, n_layers, n_taps, pad, t_tile, seq_len,
                          cins, couts, tanh_flags):
    layer_refs = refs[:3 * n_layers]
    o_ref = refs[3 * n_layers]
    xbuf, buf_a, buf_b = refs[3 * n_layers + 1:]

    b = pl.program_id(0)
    j = pl.program_id(1)
    t0 = pl.multiple_of(j * t_tile, 8)
    halo = n_layers * pad
    w_rows = t_tile + 2 * halo

    # One DMA pulls the halo'd input tile; no per-layer HBM round trips.
    pltpu.sync_copy(x_hbm.at[b, pl.ds(t0, w_rows), :], xbuf)

    cur = xbuf
    bufs = (buf_a, buf_b)
    for l in range(n_layers):
        w_ref = layer_refs[3 * l]
        s_ref = layer_refs[3 * l + 1]
        b_ref = layer_refs[3 * l + 2]
        cin, cout = cins[l], couts[l]
        m = w_rows - 2 * (l + 1) * pad          # rows of this layer still needed

        acc = jnp.zeros((m, cout), jnp.float32)
        for k in range(n_taps):                 # static unroll: K chained MXU matmuls
            acc += jnp.dot(cur[k:k + m, :cin], w_ref[k],
                           preferred_element_type=jnp.float32)

        y = acc * s_ref[0] + b_ref[0]           # folded BatchNorm, f32 epilogue
        if tanh_flags[l]:
            y = jnp.tanh(y)

        if l == n_layers - 1:
            o_ref[0] = y.astype(o_ref.dtype)    # here m == t_tile
        else:
            # Rows outside the real sequence must be exact zeros: they serve as
            # the next layer's "same" zero-padding.
            g = t0 - (n_layers - 1 - l) * pad + jax.lax.broadcasted_iota(
                jnp.int32, (m, 1), 0)
            y = jnp.where((g >= 0) & (g < seq_len), y, 0.0)
            dst = bufs[l % 2]
            dst[0:m, :cout] = y.astype(dst.dtype)
            cur = dst


# ----------------------------------------------------------------------------
# Parameter prep: fold BN, pad channel dims to multiples of 128 (lane-dense),
# cast weights to the compute dtype; scale/bias stay f32 for the epilogue.
# ----------------------------------------------------------------------------
def prepare_kernel_params(params, compute_dtype, lane=128):
    prepared = []
    for p in params:
        k, cin, cout = p["w"].shape
        cin_p, cout_p = _round_up(cin, lane), _round_up(cout, lane)
        w = jnp.zeros((k, cin_p, cout_p), compute_dtype)
        w = w.at[:, :cin, :cout].set(p["w"].astype(compute_dtype))
        s = jnp.zeros((1, cout_p), jnp.float32).at[:, :cout].set(p["scale"])
        bb = jnp.zeros((1, cout_p), jnp.float32).at[:, :cout].set(p["bias"])
        prepared.append(dict(w=w, scale=s, bias=bb, tanh=p["tanh"]))
    return prepared


def postnet_forward(x_nct, params, *, t_tile=256, compute_dtype=jnp.bfloat16):
    """x_nct: (B, odim, T) like the PyTorch module; returns (B, odim, T)."""
    B, c0, T = x_nct.shape
    kparams = prepare_kernel_params(params, compute_dtype)
    n_layers = len(params)
    n_taps = params[0]["w"].shape[0]
    pad = (n_taps - 1) // 2
    halo = n_layers * pad
    odim_out = params[-1]["w"].shape[2]

    cins = tuple(p["w"].shape[1] for p in kparams)
    couts = tuple(p["w"].shape[2] for p in kparams)
    c0p = cins[0]
    cmax = max((c0p,) + couts[:-1])

    tt = min(_round_up(t_tile, 8), _round_up(T, 8))   # time tile (mult. of 8)
    t_pad = _round_up(T, tt)
    nt = t_pad // tt
    w_rows = tt + 2 * halo

    # NCW -> NWC once; ONE zero pad for the whole stack (halo + tile round-up +
    # channel pad to the lane-padded width).
    # TODO(synk): the NCW<->NWC transposes are left to XLA; fold them into the
    # boundary DMAs (strided copy) if they show up in profiles.
    x = jnp.transpose(x_nct, (0, 2, 1)).astype(compute_dtype)
    x = jnp.pad(x, ((0, 0), (halo, halo + t_pad - T), (0, c0p - c0)))

    in_specs = [pl.BlockSpec(memory_space=pl.ANY)]   # raw HBM ref; kernel DMAs tiles
    flat_in = [x]
    for p in kparams:
        # Constant index maps: weights/scale/bias are fetched once and reused
        # across the whole grid (never re-DMA'd).
        in_specs.append(pl.BlockSpec(p["w"].shape, lambda bb, jj: (0, 0, 0)))
        in_specs.append(pl.BlockSpec(p["scale"].shape, lambda bb, jj: (0, 0)))
        in_specs.append(pl.BlockSpec(p["bias"].shape, lambda bb, jj: (0, 0)))
        flat_in += [p["w"], p["scale"], p["bias"]]

    kernel = functools.partial(
        _postnet_fused_kernel,
        n_layers=n_layers, n_taps=n_taps, pad=pad, t_tile=tt, seq_len=T,
        cins=cins, couts=couts,
        tanh_flags=tuple(p["tanh"] for p in params))

    out = pl.pallas_call(
        kernel,
        out_shape=jax.ShapeDtypeStruct((B, t_pad, couts[-1]), jnp.float32),
        grid=(B, nt),
        in_specs=in_specs,
        out_specs=pl.BlockSpec((1, tt, couts[-1]), lambda bb, jj: (bb, jj, 0)),
        scratch_shapes=[
            pltpu.VMEM((w_rows, c0p), compute_dtype),   # halo'd input tile
            pltpu.VMEM((w_rows, cmax), compute_dtype),  # ping
            pltpu.VMEM((w_rows, cmax), compute_dtype),  # pong
        ],
        compiler_params=pltpu.CompilerParams(
            dimension_semantics=("parallel", "parallel"),
            vmem_limit_bytes=48 * 1024 * 1024,          # safe on v7x's 64 MiB
        ),
    )(*flat_in)

    out = out[:, :T, :odim_out]                  # drop time/channel padding
    return jnp.transpose(out, (0, 2, 1)).astype(x_nct.dtype)


# ----------------------------------------------------------------------------
# Deterministic parameter construction (matches Postnet.__init__ shapes),
# with BatchNorm folded into per-channel scale/bias (eval mode).
# ----------------------------------------------------------------------------
def make_postnet_params(key, odim, n_layers=5, n_chans=512, n_filts=5, eps=1e-5):
    # TODO(synk): training-mode BatchNorm batch statistics and Dropout masking
    # are not implemented; this is the eval-mode forward only.
    params = []
    for layer in range(n_layers - 1):
        ichans = odim if layer == 0 else n_chans
        ochans = odim if layer == n_layers - 1 else n_chans
        key, kw, kg, kb, km, kv = jax.random.split(key, 6)
        w_torch = 0.1 * jax.random.normal(kw, (ochans, ichans, n_filts), jnp.float32)
        gamma = 1.0 + 0.1 * jax.random.normal(kg, (ochans,), jnp.float32)
        beta = 0.1 * jax.random.normal(kb, (ochans,), jnp.float32)
        rmean = 0.1 * jax.random.normal(km, (ochans,), jnp.float32)
        rvar = 1.0 + 0.1 * jax.random.uniform(kv, (ochans,), jnp.float32)
        scale = gamma / jnp.sqrt(rvar + eps)
        bias = beta - rmean * scale
        params.append(dict(w=jnp.transpose(w_torch, (2, 1, 0)),   # (K, Cin, Cout)
                           scale=scale[None, :], bias=bias[None, :], tanh=True))
    ichans = n_chans if n_layers != 1 else odim
    key, kw, kg, kb, km, kv = jax.random.split(key, 6)
    w_torch = 0.1 * jax.random.normal(kw, (odim, ichans, n_filts), jnp.float32)
    gamma = 1.0 + 0.1 * jax.random.normal(kg, (odim,), jnp.float32)
    beta = 0.1 * jax.random.normal(kb, (odim,), jnp.float32)
    rmean = 0.1 * jax.random.normal(km, (odim,), jnp.float32)
    rvar = 1.0 + 0.1 * jax.random.uniform(kv, (odim,), jnp.float32)
    scale = gamma / jnp.sqrt(rvar + eps)
    bias = beta - rmean * scale
    params.append(dict(w=jnp.transpose(w_torch, (2, 1, 0)),
                       scale=scale[None, :], bias=bias[None, :], tanh=False))
    return params, (n_filts - 1) // 2


# ----------------------------------------------------------------------------
# Pure-JAX f32 reference (sanity check only)
# ----------------------------------------------------------------------------
def _ref_layer(x, w, scale, bias, pad, tanh):
    T = x.shape[1]
    xp = jnp.pad(x, ((0, 0), (pad, pad), (0, 0)))
    y = sum(jnp.einsum("btc,cd->btd", xp[:, k:k + T, :], w[k])
            for k in range(w.shape[0]))
    y = y * scale[0] + bias[0]
    return jnp.tanh(y) if tanh else y


def _ref_forward(x_nct, params, pad):
    x = jnp.transpose(x_nct, (0, 2, 1))
    for p in params:
        x = _ref_layer(x, p["w"], p["scale"], p["bias"], pad, p["tanh"])
    return jnp.transpose(x, (0, 2, 1))


if __name__ == "__main__":
    B, odim, T = 2, 8, 16
    n_layers, n_chans, n_filts = 5, 32, 5

    key = jax.random.PRNGKey(0)
    key, kx, kp = jax.random.split(key, 3)
    x = jax.random.normal(kx, (B, odim, T), jnp.float32)   # NCW, like PyTorch

    params, pad = make_postnet_params(kp, odim, n_layers=n_layers,
                                      n_chans=n_chans, n_filts=n_filts)
    ref = _ref_forward(x, params, pad)

    # f32 path with a small time tile so the multi-tile / halo / masking code
    # path is exercised (T=16 -> 2 tiles of 8).
    out_f32 = jax.block_until_ready(
        postnet_forward(x, params, t_tile=8, compute_dtype=jnp.float32))
    assert out_f32.shape == (B, odim, T)
    assert jnp.allclose(out_f32, ref, atol=1e-3, rtol=1e-3), \
        float(jnp.max(jnp.abs(out_f32 - ref)))

    # bf16 production path: bf16 activations/weights, f32 accumulate + epilogue.
    out_bf16 = jax.block_until_ready(
        postnet_forward(x, params, t_tile=256, compute_dtype=jnp.bfloat16))
    assert out_bf16.shape == (B, odim, T)
    assert jnp.allclose(out_bf16, ref, atol=5e-2, rtol=5e-2), \
        float(jnp.max(jnp.abs(out_bf16 - ref)))

    print("KERNEL_OK")
</pallas_src>

<mosaic_0001>
module attributes {stable_mosaic.version = 11 : i64} {
  func.func @_postnet_fused_kernel(%arg0: i32, %arg1: i32, %arg2: memref<2x36x128xf32, #tpu.memory_space<any>>, %arg3: memref<5x128x128xf32, #tpu.memory_space<vmem>>, %arg4: memref<1x128xf32, #tpu.memory_space<vmem>>, %arg5: memref<1x128xf32, #tpu.memory_space<vmem>>, %arg6: memref<5x128x128xf32, #tpu.memory_space<vmem>>, %arg7: memref<1x128xf32, #tpu.memory_space<vmem>>, %arg8: memref<1x128xf32, #tpu.memory_space<vmem>>, %arg9: memref<5x128x128xf32, #tpu.memory_space<vmem>>, %arg10: memref<1x128xf32, #tpu.memory_space<vmem>>, %arg11: memref<1x128xf32, #tpu.memory_space<vmem>>, %arg12: memref<5x128x128xf32, #tpu.memory_space<vmem>>, %arg13: memref<1x128xf32, #tpu.memory_space<vmem>>, %arg14: memref<1x128xf32, #tpu.memory_space<vmem>>, %arg15: memref<5x128x128xf32, #tpu.memory_space<vmem>>, %arg16: memref<1x128xf32, #tpu.memory_space<vmem>>, %arg17: memref<1x128xf32, #tpu.memory_space<vmem>>, %arg18: memref<1x8x128xf32, #tpu.memory_space<vmem>>, %arg19: memref<28x128xf32, #tpu.memory_space<vmem>>, %arg20: memref<28x128xf32, #tpu.memory_space<vmem>>, %arg21: memref<28x128xf32, #tpu.memory_space<vmem>>) attributes {dimension_semantics = [#tpu.dimension_semantics<parallel>, #tpu.dimension_semantics<parallel>], iteration_bounds = array<i64: 2, 2>, scalar_prefetch = 0 : i64, scratch_operands = 3 : i64, tpu.core_type = #tpu.core_type<tc>, window_params = [{}, {pipeline_mode = #tpu.pipeline_mode<synchronous>, transform_indices = @transform_1, window_bounds = array<i64: 5, 128, 128>}, {pipeline_mode = #tpu.pipeline_mode<synchronous>, transform_indices = @transform_2, window_bounds = array<i64: 1, 128>}, {pipeline_mode = #tpu.pipeline_mode<synchronous>, transform_indices = @transform_3, window_bounds = array<i64: 1, 128>}, {pipeline_mode = #tpu.pipeline_mode<synchronous>, transform_indices = @transform_4, window_bounds = array<i64: 5, 128, 128>}, {pipeline_mode = #tpu.pipeline_mode<synchronous>, transform_indices = @transform_5, window_bounds = array<i64: 1, 128>}, {pipeline_mode = #tpu.pipeline_mode<synchronous>, transform_indices = @transform_6, window_bounds = array<i64: 1, 128>}, {pipeline_mode = #tpu.pipeline_mode<synchronous>, transform_indices = @transform_7, window_bounds = array<i64: 5, 128, 128>}, {pipeline_mode = #tpu.pipeline_mode<synchronous>, transform_indices = @transform_8, window_bounds = array<i64: 1, 128>}, {pipeline_mode = #tpu.pipeline_mode<synchronous>, transform_indices = @transform_9, window_bounds = array<i64: 1, 128>}, {pipeline_mode = #tpu.pipeline_mode<synchronous>, transform_indices = @transform_10, window_bounds = array<i64: 5, 128, 128>}, {pipeline_mode = #tpu.pipeline_mode<synchronous>, transform_indices = @transform_11, window_bounds = array<i64: 1, 128>}, {pipeline_mode = #tpu.pipeline_mode<synchronous>, transform_indices = @transform_12, window_bounds = array<i64: 1, 128>}, {pipeline_mode = #tpu.pipeline_mode<synchronous>, transform_indices = @transform_13, window_bounds = array<i64: 5, 128, 128>}, {pipeline_mode = #tpu.pipeline_mode<synchronous>, transform_indices = @transform_14, window_bounds = array<i64: 1, 128>}, {pipeline_mode = #tpu.pipeline_mode<synchronous>, transform_indices = @transform_15, window_bounds = array<i64: 1, 128>}, {transform_indices = @transform_16, window_bounds = array<i64: 1, 8, 128>}]} {
    %c8_i32 = arith.constant 8 : i32
    %0 = arith.muli %arg1, %c8_i32 : i32
    %1 = tpu.assume_multiple %0, 8 : i32
    "tpu.region"() ({
      %245 = tpu.sem_alloc : memref<!tpu.dma_semaphore, #tpu.memory_space<semaphore_mem>>
      %c0_i32_191 = arith.constant 0 : i32
      %246 = tpu.memref_slice %arg2[%arg0, %1, %c0_i32_191] : memref<2x36x128xf32, #tpu.memory_space<any>> -> memref<1x28x128xf32, #tpu.memory_space<any>>
      %247 = tpu.memref_squeeze %246 : memref<1x28x128xf32, #tpu.memory_space<any>> -> memref<28x128xf32, #tpu.memory_space<any>>
      tpu.enqueue_dma source(%247 : memref<28x128xf32, #tpu.memory_space<any>>) target(%arg19 : memref<28x128xf32, #tpu.memory_space<vmem>>) target_semaphore(%245 : memref<!tpu.dma_semaphore, #tpu.memory_space<semaphore_mem>>)
      %c0_i32_192 = arith.constant 0 : i32
      %248 = tpu.memref_slice %arg2[%arg0, %1, %c0_i32_192] : memref<2x36x128xf32, #tpu.memory_space<any>> -> memref<1x28x128xf32, #tpu.memory_space<any>>
      %249 = tpu.memref_squeeze %248 : memref<1x28x128xf32, #tpu.memory_space<any>> -> memref<28x128xf32, #tpu.memory_space<any>>
      tpu.wait_dma2 semaphore(%245 : memref<!tpu.dma_semaphore, #tpu.memory_space<semaphore_mem>>) src(%249 : memref<28x128xf32, #tpu.memory_space<any>>) dst(%arg19 : memref<28x128xf32, #tpu.memory_space<vmem>>)
      tpu.yield
    }) : () -> ()
    %cst = arith.constant 0.000000e+00 : f32
    %2 = vector.broadcast %cst : f32 to vector<24x128xf32>
    %c0 = arith.constant 0 : index
    %c0_0 = arith.constant 0 : index
    %3 = vector.load %arg19[%c0, %c0_0] : memref<28x128xf32, #tpu.memory_space<vmem>>, vector<24x128xf32>
    %c0_1 = arith.constant 0 : index
    %c0_2 = arith.constant 0 : index
    %c0_3 = arith.constant 0 : index
    %4 = vector.load %arg3[%c0_1, %c0_2, %c0_3] : memref<5x128x128xf32, #tpu.memory_space<vmem>>, vector<1x128x128xf32>
    %5 = vector.shape_cast %4 : vector<1x128x128xf32> to vector<128x128xf32>
    %cst_4 = arith.constant dense<0.000000e+00> : vector<24x128xf32>
    %6 = tpu.matmul %3, %5, %cst_4 {dimension_numbers = #tpu.dot_dimension_numbers<[1], [0], [0], [1], [0, 0, 1, 1], [], []>} : vector<24x128xf32>, vector<128x128xf32>, vector<24x128xf32> -> vector<24x128xf32>
    %7 = arith.addf %2, %6 : vector<24x128xf32>
    %c1 = arith.constant 1 : index
    %c0_5 = arith.constant 0 : index
    %8 = vector.load %arg19[%c1, %c0_5] : memref<28x128xf32, #tpu.memory_space<vmem>>, vector<24x128xf32>
    %c1_6 = arith.constant 1 : index
    %c0_7 = arith.constant 0 : index
    %c0_8 = arith.constant 0 : index
    %9 = vector.load %arg3[%c1_6, %c0_7, %c0_8] : memref<5x128x128xf32, #tpu.memory_space<vmem>>, vector<1x128x128xf32>
    %10 = vector.shape_cast %9 : vector<1x128x128xf32> to vector<128x128xf32>
    %cst_9 = arith.constant dense<0.000000e+00> : vector<24x128xf32>
    %11 = tpu.matmul %8, %10, %cst_9 {dimension_numbers = #tpu.dot_dimension_numbers<[1], [0], [0], [1], [0, 0, 1, 1], [], []>} : vector<24x128xf32>, vector<128x128xf32>, vector<24x128xf32> -> vector<24x128xf32>
    %12 = arith.addf %7, %11 : vector<24x128xf32>
    %c2 = arith.constant 2 : index
    %c0_10 = arith.constant 0 : index
    %13 = vector.load %arg19[%c2, %c0_10] : memref<28x128xf32, #tpu.memory_space<vmem>>, vector<24x128xf32>
    %c2_11 = arith.constant 2 : index
    %c0_12 = arith.constant 0 : index
    %c0_13 = arith.constant 0 : index
    %14 = vector.load %arg3[%c2_11, %c0_12, %c0_13] : memref<5x128x128xf32, #tpu.memory_space<vmem>>, vector<1x128x128xf32>
    %15 = vector.shape_cast %14 : vector<1x128x128xf32> to vector<128x128xf32>
    %cst_14 = arith.constant dense<0.000000e+00> : vector<24x128xf32>
    %16 = tpu.matmul %13, %15, %cst_14 {dimension_numbers = #tpu.dot_dimension_numbers<[1], [0], [0], [1], [0, 0, 1, 1], [], []>} : vector<24x128xf32>, vector<128x128xf32>, vector<24x128xf32> -> vector<24x128xf32>
    %17 = arith.addf %12, %16 : vector<24x128xf32>
    %c3 = arith.constant 3 : index
    %c0_15 = arith.constant 0 : index
    %18 = vector.load %arg19[%c3, %c0_15] : memref<28x128xf32, #tpu.memory_space<vmem>>, vector<24x128xf32>
    %c3_16 = arith.constant 3 : index
    %c0_17 = arith.constant 0 : index
    %c0_18 = arith.constant 0 : index
    %19 = vector.load %arg3[%c3_16, %c0_17, %c0_18] : memref<5x128x128xf32, #tpu.memory_space<vmem>>, vector<1x128x128xf32>
    %20 = vector.shape_cast %19 : vector<1x128x128xf32> to vector<128x128xf32>
    %cst_19 = arith.constant dense<0.000000e+00> : vector<24x128xf32>
    %21 = tpu.matmul %18, %20, %cst_19 {dimension_numbers = #tpu.dot_dimension_numbers<[1], [0], [0], [1], [0, 0, 1, 1], [], []>} : vector<24x128xf32>, vector<128x128xf32>, vector<24x128xf32> -> vector<24x128xf32>
    %22 = arith.addf %17, %21 : vector<24x128xf32>
    %c4 = arith.constant 4 : index
    %c0_20 = arith.constant 0 : index
    %23 = vector.load %arg19[%c4, %c0_20] : memref<28x128xf32, #tpu.memory_space<vmem>>, vector<24x128xf32>
    %c4_21 = arith.constant 4 : index
    %c0_22 = arith.constant 0 : index
    %c0_23 = arith.constant 0 : index
    %24 = vector.load %arg3[%c4_21, %c0_22, %c0_23] : memref<5x128x128xf32, #tpu.memory_space<vmem>>, vector<1x128x128xf32>
    %25 = vector.shape_cast %24 : vector<1x128x128xf32> to vector<128x128xf32>
    %cst_24 = arith.constant dense<0.000000e+00> : vector<24x128xf32>
    %26 = tpu.matmul %23, %25, %cst_24 {dimension_numbers = #tpu.dot_dimension_numbers<[1], [0], [0], [1], [0, 0, 1, 1], [], []>} : vector<24x128xf32>, vector<128x128xf32>, vector<24x128xf32> -> vector<24x128xf32>
    %27 = arith.addf %22, %26 : vector<24x128xf32>
    %c0_25 = arith.constant 0 : index
    %c0_26 = arith.constant 0 : index
    %28 = vector.load %arg4[%c0_25, %c0_26] : memref<1x128xf32, #tpu.memory_space<vmem>>, vector<1x128xf32>
    %29 = vector.shape_cast %28 : vector<1x128xf32> to vector<128xf32>
    %30 = vector.shape_cast %29 : vector<128xf32> to vector<1x128xf32>
    %31 = vector.broadcast %30 : vector<1x128xf32> to vector<24x128xf32>
    %32 = arith.mulf %27, %31 : vector<24x128xf32>
    %c0_27 = arith.constant 0 : index
    %c0_28 = arith.constant 0 : index
    %33 = vector.load %arg5[%c0_27, %c0_28] : memref<1x128xf32, #tpu.memory_space<vmem>>, vector<1x128xf32>
    %34 = vector.shape_cast %33 : vector<1x128xf32> to vector<128xf32>
    %35 = vector.shape_cast %34 : vector<128xf32> to vector<1x128xf32>
    %36 = vector.broadcast %35 : vector<1x128xf32> to vector<24x128xf32>
    %37 = arith.addf %32, %36 : vector<24x128xf32>
    %38 = math.tanh %37 : vector<24x128xf32>
    %c8_i32_29 = arith.constant 8 : i32
    %39 = arith.subi %1, %c8_i32_29 : i32
    %40 = tpu.iota {dimensions = array<i32: 0>} : vector<24x1xi32>
    %41 = vector.broadcast %39 : i32 to vector<24x1xi32>
    %42 = arith.addi %41, %40 : vector<24x1xi32>
    %c0_i32 = arith.constant 0 : i32
    %43 = vector.broadcast %c0_i32 : i32 to vector<24x1xi32>
    %44 = arith.cmpi sge, %42, %43 : vector<24x1xi32>
    %c16_i32 = arith.constant 16 : i32
    %45 = vector.broadcast %c16_i32 : i32 to vector<24x1xi32>
    %46 = arith.cmpi slt, %42, %45 : vector<24x1xi32>
    %47 = arith.andi %44, %46 : vector<24x1xi1>
    %cst_30 = arith.constant 0.000000e+00 : f32
    %48 = vector.shape_cast %47 : vector<24x1xi1> to vector<24x1xi1>
    %49 = vector.broadcast %48 : vector<24x1xi1> to vector<24x128xi1>
    %50 = vector.broadcast %cst_30 : f32 to vector<24x128xf32>
    %51 = arith.select %49, %38, %50 : vector<24x128xi1>, vector<24x128xf32>
    %c0_31 = arith.constant 0 : index
    %c0_32 = arith.constant 0 : index
    %52 = vector.load %arg20[%c0_31, %c0_32] : memref<28x128xf32, #tpu.memory_space<vmem>>, vector<24x128xf32>
    tpu.vector_store %arg20[%c0_31, %c0_32], %51 {strides = array<i32>} : memref<28x128xf32, #tpu.memory_space<vmem>>, vector<24x128xf32>,
    %cst_33 = arith.constant 0.000000e+00 : f32
    %53 = vector.broadcast %cst_33 : f32 to vector<20x128xf32>
    %c0_34 = arith.constant 0 : index
    %c0_35 = arith.constant 0 : index
    %54 = vector.load %arg20[%c0_34, %c0_35] : memref<28x128xf32, #tpu.memory_space<vmem>>, vector<20x128xf32>
    %c0_36 = arith.constant 0 : index
    %c0_37 = arith.constant 0 : index
    %c0_38 = arith.constant 0 : index
    %55 = vector.load %arg6[%c0_36, %c0_37, %c0_38] : memref<5x128x128xf32, #tpu.memory_space<vmem>>, vector<1x128x128xf32>
    %56 = vector.shape_cast %55 : vector<1x128x128xf32> to vector<128x128xf32>
    %cst_39 = arith.constant dense<0.000000e+00> : vector<20x128xf32>
    %57 = tpu.matmul %54, %56, %cst_39 {dimension_numbers = #tpu.dot_dimension_numbers<[1], [0], [0], [1], [0, 0, 1, 1], [], []>} : vector<20x128xf32>, vector<128x128xf32>, vector<20x128xf32> -> vector<20x128xf32>
    %58 = arith.addf %53, %57 : vector<20x128xf32>
    %c1_40 = arith.constant 1 : index
    %c0_41 = arith.constant 0 : index
    %59 = vector.load %arg20[%c1_40, %c0_41] : memref<28x128xf32, #tpu.memory_space<vmem>>, vector<20x128xf32>
    %c1_42 = arith.constant 1 : index
    %c0_43 = arith.constant 0 : index
    %c0_44 = arith.constant 0 : index
    %60 = vector.load %arg6[%c1_42, %c0_43, %c0_44] : memref<5x128x128xf32, #tpu.memory_space<vmem>>, vector<1x128x128xf32>
    %61 = vector.shape_cast %60 : vector<1x128x128xf32> to vector<128x128xf32>
    %cst_45 = arith.constant dense<0.000000e+00> : vector<20x128xf32>
    %62 = tpu.matmul %59, %61, %cst_45 {dimension_numbers = #tpu.dot_dimension_numbers<[1], [0], [0], [1], [0, 0, 1, 1], [], []>} : vector<20x128xf32>, vector<128x128xf32>, vector<20x128xf32> -> vector<20x128xf32>
    %63 = arith.addf %58, %62 : vector<20x128xf32>
    %c2_46 = arith.constant 2 : index
    %c0_47 = arith.constant 0 : index
    %64 = vector.load %arg20[%c2_46, %c0_47] : memref<28x128xf32, #tpu.memory_space<vmem>>, vector<20x128xf32>
    %c2_48 = arith.constant 2 : index
    %c0_49 = arith.constant 0 : index
    %c0_50 = arith.constant 0 : index
    %65 = vector.load %arg6[%c2_48, %c0_49, %c0_50] : memref<5x128x128xf32, #tpu.memory_space<vmem>>, vector<1x128x128xf32>
    %66 = vector.shape_cast %65 : vector<1x128x128xf32> to vector<128x128xf32>
    %cst_51 = arith.constant dense<0.000000e+00> : vector<20x128xf32>
    %67 = tpu.matmul %64, %66, %cst_51 {dimension_numbers = #tpu.dot_dimension_numbers<[1], [0], [0], [1], [0, 0, 1, 1], [], []>} : vector<20x128xf32>, vector<128x128xf32>, vector<20x128xf32> -> vector<20x128xf32>
    %68 = arith.addf %63, %67 : vector<20x128xf32>
    %c3_52 = arith.constant 3 : index
    %c0_53 = arith.constant 0 : index
    %69 = vector.load %arg20[%c3_52, %c0_53] : memref<28x128xf32, #tpu.memory_space<vmem>>, vector<20x128xf32>
    %c3_54 = arith.constant 3 : index
    %c0_55 = arith.constant 0 : index
    %c0_56 = arith.constant 0 : index
    %70 = vector.load %arg6[%c3_54, %c0_55, %c0_56] : memref<5x128x128xf32, #tpu.memory_space<vmem>>, vector<1x128x128xf32>
    %71 = vector.shape_cast %70 : vector<1x128x128xf32> to vector<128x128xf32>
    %cst_57 = arith.constant dense<0.000000e+00> : vector<20x128xf32>
    %72 = tpu.matmul %69, %71, %cst_57 {dimension_numbers = #tpu.dot_dimension_numbers<[1], [0], [0], [1], [0, 0, 1, 1], [], []>} : vector<20x128xf32>, vector<128x128xf32>, vector<20x128xf32> -> vector<20x128xf32>
    %73 = arith.addf %68, %72 : vector<20x128xf32>
    %c4_58 = arith.constant 4 : index
    %c0_59 = arith.constant 0 : index
    %74 = vector.load %arg20[%c4_58, %c0_59] : memref<28x128xf32, #tpu.memory_space<vmem>>, vector<20x128xf32>
    %c4_60 = arith.constant 4 : index
    %c0_61 = arith.constant 0 : index
    %c0_62 = arith.constant 0 : index
    %75 = vector.load %arg6[%c4_60, %c0_61, %c0_62] : memref<5x128x128xf32, #tpu.memory_space<vmem>>, vector<1x128x128xf32>
    %76 = vector.shape_cast %75 : vector<1x128x128xf32> to vector<128x128xf32>
    %cst_63 = arith.constant dense<0.000000e+00> : vector<20x128xf32>
    %77 = tpu.matmul %74, %76, %cst_63 {dimension_numbers = #tpu.dot_dimension_numbers<[1], [0], [0], [1], [0, 0, 1, 1], [], []>} : vector<20x128xf32>, vector<128x128xf32>, vector<20x128xf32> -> vector<20x128xf32>
    %78 = arith.addf %73, %77 : vector<20x128xf32>
    %c0_64 = arith.constant 0 : index
    %c0_65 = arith.constant 0 : index
    %79 = vector.load %arg7[%c0_64, %c0_65] : memref<1x128xf32, #tpu.memory_space<vmem>>, vector<1x128xf32>
    %80 = vector.shape_cast %79 : vector<1x128xf32> to vector<128xf32>
    %81 = vector.shape_cast %80 : vector<128xf32> to vector<1x128xf32>
    %82 = vector.broadcast %81 : vector<1x128xf32> to vector<20x128xf32>
    %83 = arith.mulf %78, %82 : vector<20x128xf32>
    %c0_66 = arith.constant 0 : index
    %c0_67 = arith.constant 0 : index
    %84 = vector.load %arg8[%c0_66, %c0_67] : memref<1x128xf32, #tpu.memory_space<vmem>>, vector<1x128xf32>
    %85 = vector.shape_cast %84 : vector<1x128xf32> to vector<128xf32>
    %86 = vector.shape_cast %85 : vector<128xf32> to vector<1x128xf32>
    %87 = vector.broadcast %86 : vector<1x128xf32> to vector<20x128xf32>
    %88 = arith.addf %83, %87 : vector<20x128xf32>
    %89 = math.tanh %88 : vector<20x128xf32>
    %c6_i32 = arith.constant 6 : i32
    %90 = arith.subi %1, %c6_i32 : i32
    %91 = tpu.iota {dimensions = array<i32: 0>} : vector<20x1xi32>
    %92 = vector.broadcast %90 : i32 to vector<20x1xi32>
    %93 = arith.addi %92, %91 : vector<20x1xi32>
    %c0_i32_68 = arith.constant 0 : i32
    %94 = vector.broadcast %c0_i32_68 : i32 to vector<20x1xi32>
    %95 = arith.cmpi sge, %93, %94 : vector<20x1xi32>
    %c16_i32_69 = arith.constant 16 : i32
    %96 = vector.broadcast %c16_i32_69 : i32 to vector<20x1xi32>
    %97 = arith.cmpi slt, %93, %96 : vector<20x1xi32>
    %98 = arith.andi %95, %97 : vector<20x1xi1>
    %cst_70 = arith.constant 0.000000e+00 : f32
    %99 = vector.shape_cast %98 : vector<20x1xi1> to vector<20x1xi1>
    %100 = vector.broadcast %99 : vector<20x1xi1> to vector<20x128xi1>
    %101 = vector.broadcast %cst_70 : f32 to vector<20x128xf32>
    %102 = arith.select %100, %89, %101 : vector<20x128xi1>, vector<20x128xf32>
    %c0_71 = arith.constant 0 : index
    %c0_72 = arith.constant 0 : index
    %103 = vector.load %arg21[%c0_71, %c0_72] : memref<28x128xf32, #tpu.memory_space<vmem>>, vector<20x128xf32>
    tpu.vector_store %arg21[%c0_71, %c0_72], %102 {strides = array<i32>} : memref<28x128xf32, #tpu.memory_space<vmem>>, vector<20x128xf32>,
    %cst_73 = arith.constant 0.000000e+00 : f32
    %104 = vector.broadcast %cst_73 : f32 to vector<16x128xf32>
    %c0_74 = arith.constant 0 : index
    %c0_75 = arith.constant 0 : index
    %105 = vector.load %arg21[%c0_74, %c0_75] : memref<28x128xf32, #tpu.memory_space<vmem>>, vector<16x128xf32>
    %c0_76 = arith.constant 0 : index
    %c0_77 = arith.constant 0 : index
    %c0_78 = arith.constant 0 : index
    %106 = vector.load %arg9[%c0_76, %c0_77, %c0_78] : memref<5x128x128xf32, #tpu.memory_space<vmem>>, vector<1x128x128xf32>
    %107 = vector.shape_cast %106 : vector<1x128x128xf32> to vector<128x128xf32>
    %cst_79 = arith.constant dense<0.000000e+00> : vector<16x128xf32>
    %108 = tpu.matmul %105, %107, %cst_79 {dimension_numbers = #tpu.dot_dimension_numbers<[1], [0], [0], [1], [0, 0, 1, 1], [], []>} : vector<16x128xf32>, vector<128x128xf32>, vector<16x128xf32> -> vector<16x128xf32>
    %109 = arith.addf %104, %108 : vector<16x128xf32>
    %c1_80 = arith.constant 1 : index
    %c0_81 = arith.constant 0 : index
    %110 = vector.load %arg21[%c1_80, %c0_81] : memref<28x128xf32, #tpu.memory_space<vmem>>, vector<16x128xf32>
    %c1_82 = arith.constant 1 : index
    %c0_83 = arith.constant 0 : index
    %c0_84 = arith.constant 0 : index
    %111 = vector.load %arg9[%c1_82, %c0_83, %c0_84] : memref<5x128x128xf32, #tpu.memory_space<vmem>>, vector<1x128x128xf32>
    %112 = vector.shape_cast %111 : vector<1x128x128xf32> to vector<128x128xf32>
    %cst_85 = arith.constant dense<0.000000e+00> : vector<16x128xf32>
    %113 = tpu.matmul %110, %112, %cst_85 {dimension_numbers = #tpu.dot_dimension_numbers<[1], [0], [0], [1], [0, 0, 1, 1], [], []>} : vector<16x128xf32>, vector<128x128xf32>, vector<16x128xf32> -> vector<16x128xf32>
    %114 = arith.addf %109, %113 : vector<16x128xf32>
    %c2_86 = arith.constant 2 : index
    %c0_87 = arith.constant 0 : index
    %115 = vector.load %arg21[%c2_86, %c0_87] : memref<28x128xf32, #tpu.memory_space<vmem>>, vector<16x128xf32>
    %c2_88 = arith.constant 2 : index
    %c0_89 = arith.constant 0 : index
    %c0_90 = arith.constant 0 : index
    %116 = vector.load %arg9[%c2_88, %c0_89, %c0_90] : memref<5x128x128xf32, #tpu.memory_space<vmem>>, vector<1x128x128xf32>
    %117 = vector.shape_cast %116 : vector<1x128x128xf32> to vector<128x128xf32>
    %cst_91 = arith.constant dense<0.000000e+00> : vector<16x128xf32>
    %118 = tpu.matmul %115, %117, %cst_91 {dimension_numbers = #tpu.dot_dimension_numbers<[1], [0], [0], [1], [0, 0, 1, 1], [], []>} : vector<16x128xf32>, vector<128x128xf32>, vector<16x128xf32> -> vector<16x128xf32>
    %119 = arith.addf %114, %118 : vector<16x128xf32>
    %c3_92 = arith.constant 3 : index
    %c0_93 = arith.constant 0 : index
    %120 = vector.load %arg21[%c3_92, %c0_93] : memref<28x128xf32, #tpu.memory_space<vmem>>, vector<16x128xf32>
    %c3_94 = arith.constant 3 : index
    %c0_95 = arith.constant 0 : index
    %c0_96 = arith.constant 0 : index
    %121 = vector.load %arg9[%c3_94, %c0_95, %c0_96] : memref<5x128x128xf32, #tpu.memory_space<vmem>>, vector<1x128x128xf32>
    %122 = vector.shape_cast %121 : vector<1x128x128xf32> to vector<128x128xf32>
    %cst_97 = arith.constant dense<0.000000e+00> : vector<16x128xf32>
    %123 = tpu.matmul %120, %122, %cst_97 {dimension_numbers = #tpu.dot_dimension_numbers<[1], [0], [0], [1], [0, 0, 1, 1], [], []>} : vector<16x128xf32>, vector<128x128xf32>, vector<16x128xf32> -> vector<16x128xf32>
    %124 = arith.addf %119, %123 : vector<16x128xf32>
    %c4_98 = arith.constant 4 : index
    %c0_99 = arith.constant 0 : index
    %125 = vector.load %arg21[%c4_98, %c0_99] : memref<28x128xf32, #tpu.memory_space<vmem>>, vector<16x128xf32>
    %c4_100 = arith.constant 4 : index
    %c0_101 = arith.constant 0 : index
    %c0_102 = arith.constant 0 : index
    %126 = vector.load %arg9[%c4_100, %c0_101, %c0_102] : memref<5x128x128xf32, #tpu.memory_space<vmem>>, vector<1x128x128xf32>
    %127 = vector.shape_cast %126 : vector<1x128x128xf32> to vector<128x128xf32>
    %cst_103 = arith.constant dense<0.000000e+00> : vector<16x128xf32>
    %128 = tpu.matmul %125, %127, %cst_103 {dimension_numbers = #tpu.dot_dimension_numbers<[1], [0], [0], [1], [0, 0, 1, 1], [], []>} : vector<16x128xf32>, vector<128x128xf32>, vector<16x128xf32> -> vector<16x128xf32>
    %129 = arith.addf %124, %128 : vector<16x128xf32>
    %c0_104 = arith.constant 0 : index
    %c0_105 = arith.constant 0 : index
    %130 = vector.load %arg10[%c0_104, %c0_105] : memref<1x128xf32, #tpu.memory_space<vmem>>, vector<1x128xf32>
    %131 = vector.shape_cast %130 : vector<1x128xf32> to vector<128xf32>
    %132 = vector.shape_cast %131 : vector<128xf32> to vector<1x128xf32>
    %133 = vector.broadcast %132 : vector<1x128xf32> to vector<16x128xf32>
    %134 = arith.mulf %129, %133 : vector<16x128xf32>
    %c0_106 = arith.constant 0 : index
    %c0_107 = arith.constant 0 : index
    %135 = vector.load %arg11[%c0_106, %c0_107] : memref<1x128xf32, #tpu.memory_space<vmem>>, vector<1x128xf32>
    %136 = vector.shape_cast %135 : vector<1x128xf32> to vector<128xf32>
    %137 = vector.shape_cast %136 : vector<128xf32> to vector<1x128xf32>
    %138 = vector.broadcast %137 : vector<1x128xf32> to vector<16x128xf32>
    %139 = arith.addf %134, %138 : vector<16x128xf32>
    %140 = math.tanh %139 : vector<16x128xf32>
    %c4_i32 = arith.constant 4 : i32
    %141 = arith.subi %1, %c4_i32 : i32
    %142 = tpu.iota {dimensions = array<i32: 0>} : vector<16x1xi32>
    %143 = vector.broadcast %141 : i32 to vector<16x1xi32>
    %144 = arith.addi %143, %142 : vector<16x1xi32>
    %c0_i32_108 = arith.constant 0 : i32
    %145 = vector.broadcast %c0_i32_108 : i32 to vector<16x1xi32>
    %146 = arith.cmpi sge, %144, %145 : vector<16x1xi32>
    %c16_i32_109 = arith.constant 16 : i32
    %147 = vector.broadcast %c16_i32_109 : i32 to vector<16x1xi32>
    %148 = arith.cmpi slt, %144, %147 : vector<16x1xi32>
    %149 = arith.andi %146, %148 : vector<16x1xi1>
    %cst_110 = arith.constant 0.000000e+00 : f32
    %150 = vector.shape_cast %149 : vector<16x1xi1> to vector<16x1xi1>
    %151 = vector.broadcast %150 : vector<16x1xi1> to vector<16x128xi1>
    %152 = vector.broadcast %cst_110 : f32 to vector<16x128xf32>
    %153 = arith.select %151, %140, %152 : vector<16x128xi1>, vector<16x128xf32>
    %c0_111 = arith.constant 0 : index
    %c0_112 = arith.constant 0 : index
    %154 = vector.load %arg20[%c0_111, %c0_112] : memref<28x128xf32, #tpu.memory_space<vmem>>, vector<16x128xf32>
    tpu.vector_store %arg20[%c0_111, %c0_112], %153 {strides = array<i32>} : memref<28x128xf32, #tpu.memory_space<vmem>>, vector<16x128xf32>,
    %cst_113 = arith.constant 0.000000e+00 : f32
    %155 = vector.broadcast %cst_113 : f32 to vector<12x128xf32>
    %c0_114 = arith.constant 0 : index
    %c0_115 = arith.constant 0 : index
    %156 = vector.load %arg20[%c0_114, %c0_115] : memref<28x128xf32, #tpu.memory_space<vmem>>, vector<12x128xf32>
    %c0_116 = arith.constant 0 : index
    %c0_117 = arith.constant 0 : index
    %c0_118 = arith.constant 0 : index
    %157 = vector.load %arg12[%c0_116, %c0_117, %c0_118] : memref<5x128x128xf32, #tpu.memory_space<vmem>>, vector<1x128x128xf32>
    %158 = vector.shape_cast %157 : vector<1x128x128xf32> to vector<128x128xf32>
    %cst_119 = arith.constant dense<0.000000e+00> : vector<12x128xf32>
    %159 = tpu.matmul %156, %158, %cst_119 {dimension_numbers = #tpu.dot_dimension_numbers<[1], [0], [0], [1], [0, 0, 1, 1], [], []>} : vector<12x128xf32>, vector<128x128xf32>, vector<12x128xf32> -> vector<12x128xf32>
    %160 = arith.addf %155, %159 : vector<12x128xf32>
    %c1_120 = arith.constant 1 : index
    %c0_121 = arith.constant 0 : index
    %161 = vector.load %arg20[%c1_120, %c0_121] : memref<28x128xf32, #tpu.memory_space<vmem>>, vector<12x128xf32>
    %c1_122 = arith.constant 1 : index
    %c0_123 = arith.constant 0 : index
    %c0_124 = arith.constant 0 : index
    %162 = vector.load %arg12[%c1_122, %c0_123, %c0_124] : memref<5x128x128xf32, #tpu.memory_space<vmem>>, vector<1x128x128xf32>
    %163 = vector.shape_cast %162 : vector<1x128x128xf32> to vector<128x128xf32>
    %cst_125 = arith.constant dense<0.000000e+00> : vector<12x128xf32>
    %164 = tpu.matmul %161, %163, %cst_125 {dimension_numbers = #tpu.dot_dimension_numbers<[1], [0], [0], [1], [0, 0, 1, 1], [], []>} : vector<12x128xf32>, vector<128x128xf32>, vector<12x128xf32> -> vector<12x128xf32>
    %165 = arith.addf %160, %164 : vector<12x128xf32>
    %c2_126 = arith.constant 2 : index
    %c0_127 = arith.constant 0 : index
    %166 = vector.load %arg20[%c2_126, %c0_127] : memref<28x128xf32, #tpu.memory_space<vmem>>, vector<12x128xf32>
    %c2_128 = arith.constant 2 : index
    %c0_129 = arith.constant 0 : index
    %c0_130 = arith.constant 0 : index
    %167 = vector.load %arg12[%c2_128, %c0_129, %c0_130] : memref<5x128x128xf32, #tpu.memory_space<vmem>>, vector<1x128x128xf32>
    %168 = vector.shape_cast %167 : vector<1x128x128xf32> to vector<128x128xf32>
    %cst_131 = arith.constant dense<0.000000e+00> : vector<12x128xf32>
    %169 = tpu.matmul %166, %168, %cst_131 {dimension_numbers = #tpu.dot_dimension_numbers<[1], [0], [0], [1], [0, 0, 1, 1], [], []>} : vector<12x128xf32>, vector<128x128xf32>, vector<12x128xf32> -> vector<12x128xf32>
    %170 = arith.addf %165, %169 : vector<12x128xf32>
    %c3_132 = arith.constant 3 : index
    %c0_133 = arith.constant 0 : index
    %171 = vector.load %arg20[%c3_132, %c0_133] : memref<28x128xf32, #tpu.memory_space<vmem>>, vector<12x128xf32>
    %c3_134 = arith.constant 3 : index
    %c0_135 = arith.constant 0 : index
    %c0_136 = arith.constant 0 : index
    %172 = vector.load %arg12[%c3_134, %c0_135, %c0_136] : memref<5x128x128xf32, #tpu.memory_space<vmem>>, vector<1x128x128xf32>
    %173 = vector.shape_cast %172 : vector<1x128x128xf32> to vector<128x128xf32>
    %cst_137 = arith.constant dense<0.000000e+00> : vector<12x128xf32>
    %174 = tpu.matmul %171, %173, %cst_137 {dimension_numbers = #tpu.dot_dimension_numbers<[1], [0], [0], [1], [0, 0, 1, 1], [], []>} : vector<12x128xf32>, vector<128x128xf32>, vector<12x128xf32> -> vector<12x128xf32>
    %175 = arith.addf %170, %174 : vector<12x128xf32>
    %c4_138 = arith.constant 4 : index
    %c0_139 = arith.constant 0 : index
    %176 = vector.load %arg20[%c4_138, %c0_139] : memref<28x128xf32, #tpu.memory_space<vmem>>, vector<12x128xf32>
    %c4_140 = arith.constant 4 : index
    %c0_141 = arith.constant 0 : index
    %c0_142 = arith.constant 0 : index
    %177 = vector.load %arg12[%c4_140, %c0_141, %c0_142] : memref<5x128x128xf32, #tpu.memory_space<vmem>>, vector<1x128x128xf32>
    %178 = vector.shape_cast %177 : vector<1x128x128xf32> to vector<128x128xf32>
    %cst_143 = arith.constant dense<0.000000e+00> : vector<12x128xf32>
    %179 = tpu.matmul %176, %178, %cst_143 {dimension_numbers = #tpu.dot_dimension_numbers<[1], [0], [0], [1], [0, 0, 1, 1], [], []>} : vector<12x128xf32>, vector<128x128xf32>, vector<12x128xf32> -> vector<12x128xf32>
    %180 = arith.addf %175, %179 : vector<12x128xf32>
    %c0_144 = arith.constant 0 : index
    %c0_145 = arith.constant 0 : index
    %181 = vector.load %arg13[%c0_144, %c0_145] : memref<1x128xf32, #tpu.memory_space<vmem>>, vector<1x128xf32>
    %182 = vector.shape_cast %181 : vector<1x128xf32> to vector<128xf32>
    %183 = vector.shape_cast %182 : vector<128xf32> to vector<1x128xf32>
    %184 = vector.broadcast %183 : vector<1x128xf32> to vector<12x128xf32>
    %185 = arith.mulf %180, %184 : vector<12x128xf32>
    %c0_146 = arith.constant 0 : index
    %c0_147 = arith.constant 0 : index
    %186 = vector.load %arg14[%c0_146, %c0_147] : memref<1x128xf32, #tpu.memory_space<vmem>>, vector<1x128xf32>
    %187 = vector.shape_cast %186 : vector<1x128xf32> to vector<128xf32>
    %188 = vector.shape_cast %187 : vector<128xf32> to vector<1x128xf32>
    %189 = vector.broadcast %188 : vector<1x128xf32> to vector<12x128xf32>
    %190 = arith.addf %185, %189 : vector<12x128xf32>
    %191 = math.tanh %190 : vector<12x128xf32>
    %c2_i32 = arith.constant 2 : i32
    %192 = arith.subi %1, %c2_i32 : i32
    %193 = tpu.iota {dimensions = array<i32: 0>} : vector<12x1xi32>
    %194 = vector.broadcast %192 : i32 to vector<12x1xi32>
    %195 = arith.addi %194, %193 : vector<12x1xi32>
    %c0_i32_148 = arith.constant 0 : i32
    %196 = vector.broadcast %c0_i32_148 : i32 to vector<12x1xi32>
    %197 = arith.cmpi sge, %195, %196 : vector<12x1xi32>
    %c16_i32_149 = arith.constant 16 : i32
    %198 = vector.broadcast %c16_i32_149 : i32 to vector<12x1xi32>
    %199 = arith.cmpi slt, %195, %198 : vector<12x1xi32>
    %200 = arith.andi %197, %199 : vector<12x1xi1>
    %cst_150 = arith.constant 0.000000e+00 : f32
    %201 = vector.shape_cast %200 : vector<12x1xi1> to vector<12x1xi1>
    %202 = vector.broadcast %201 : vector<12x1xi1> to vector<12x128xi1>
    %203 = vector.broadcast %cst_150 : f32 to vector<12x128xf32>
    %204 = arith.select %202, %191, %203 : vector<12x128xi1>, vector<12x128xf32>
    %c0_151 = arith.constant 0 : index
    %c0_152 = arith.constant 0 : index
    %205 = vector.load %arg21[%c0_151, %c0_152] : memref<28x128xf32, #tpu.memory_space<vmem>>, vector<12x128xf32>
    tpu.vector_store %arg21[%c0_151, %c0_152], %204 {strides = array<i32>} : memref<28x128xf32, #tpu.memory_space<vmem>>, vector<12x128xf32>,
    %cst_153 = arith.constant 0.000000e+00 : f32
    %206 = vector.broadcast %cst_153 : f32 to vector<8x128xf32>
    %c0_154 = arith.constant 0 : index
    %c0_155 = arith.constant 0 : index
    %207 = vector.load %arg21[%c0_154, %c0_155] : memref<28x128xf32, #tpu.memory_space<vmem>>, vector<8x128xf32>
    %c0_156 = arith.constant 0 : index
    %c0_157 = arith.constant 0 : index
    %c0_158 = arith.constant 0 : index
    %208 = vector.load %arg15[%c0_156, %c0_157, %c0_158] : memref<5x128x128xf32, #tpu.memory_space<vmem>>, vector<1x128x128xf32>
    %209 = vector.shape_cast %208 : vector<1x128x128xf32> to vector<128x128xf32>
    %cst_159 = arith.constant dense<0.000000e+00> : vector<8x128xf32>
    %210 = tpu.matmul %207, %209, %cst_159 {dimension_numbers = #tpu.dot_dimension_numbers<[1], [0], [0], [1], [0, 0, 1, 1], [], []>} : vector<8x128xf32>, vector<128x128xf32>, vector<8x128xf32> -> vector<8x128xf32>
    %211 = arith.addf %206, %210 : vector<8x128xf32>
    %c1_160 = arith.constant 1 : index
    %c0_161 = arith.constant 0 : index
    %212 = vector.load %arg21[%c1_160, %c0_161] : memref<28x128xf32, #tpu.memory_space<vmem>>, vector<8x128xf32>
    %c1_162 = arith.constant 1 : index
    %c0_163 = arith.constant 0 : index
    %c0_164 = arith.constant 0 : index
    %213 = vector.load %arg15[%c1_162, %c0_163, %c0_164] : memref<5x128x128xf32, #tpu.memory_space<vmem>>, vector<1x128x128xf32>
    %214 = vector.shape_cast %213 : vector<1x128x128xf32> to vector<128x128xf32>
    %cst_165 = arith.constant dense<0.000000e+00> : vector<8x128xf32>
    %215 = tpu.matmul %212, %214, %cst_165 {dimension_numbers = #tpu.dot_dimension_numbers<[1], [0], [0], [1], [0, 0, 1, 1], [], []>} : vector<8x128xf32>, vector<128x128xf32>, vector<8x128xf32> -> vector<8x128xf32>
    %216 = arith.addf %211, %215 : vector<8x128xf32>
    %c2_166 = arith.constant 2 : index
    %c0_167 = arith.constant 0 : index
    %217 = vector.load %arg21[%c2_166, %c0_167] : memref<28x128xf32, #tpu.memory_space<vmem>>, vector<8x128xf32>
    %c2_168 = arith.constant 2 : index
    %c0_169 = arith.constant 0 : index
    %c0_170 = arith.constant 0 : index
    %218 = vector.load %arg15[%c2_168, %c0_169, %c0_170] : memref<5x128x128xf32, #tpu.memory_space<vmem>>, vector<1x128x128xf32>
    %219 = vector.shape_cast %218 : vector<1x128x128xf32> to vector<128x128xf32>
    %cst_171 = arith.constant dense<0.000000e+00> : vector<8x128xf32>
    %220 = tpu.matmul %217, %219, %cst_171 {dimension_numbers = #tpu.dot_dimension_numbers<[1], [0], [0], [1], [0, 0, 1, 1], [], []>} : vector<8x128xf32>, vector<128x128xf32>, vector<8x128xf32> -> vector<8x128xf32>
    %221 = arith.addf %216, %220 : vector<8x128xf32>
    %c3_172 = arith.constant 3 : index
    %c0_173 = arith.constant 0 : index
    %222 = vector.load %arg21[%c3_172, %c0_173] : memref<28x128xf32, #tpu.memory_space<vmem>>, vector<8x128xf32>
    %c3_174 = arith.constant 3 : index
    %c0_175 = arith.constant 0 : index
    %c0_176 = arith.constant 0 : index
    %223 = vector.load %arg15[%c3_174, %c0_175, %c0_176] : memref<5x128x128xf32, #tpu.memory_space<vmem>>, vector<1x128x128xf32>
    %224 = vector.shape_cast %223 : vector<1x128x128xf32> to vector<128x128xf32>
    %cst_177 = arith.constant dense<0.000000e+00> : vector<8x128xf32>
    %225 = tpu.matmul %222, %224, %cst_177 {dimension_numbers = #tpu.dot_dimension_numbers<[1], [0], [0], [1], [0, 0, 1, 1], [], []>} : vector<8x128xf32>, vector<128x128xf32>, vector<8x128xf32> -> vector<8x128xf32>
    %226 = arith.addf %221, %225 : vector<8x128xf32>
    %c4_178 = arith.constant 4 : index
    %c0_179 = arith.constant 0 : index
    %227 = vector.load %arg21[%c4_178, %c0_179] : memref<28x128xf32, #tpu.memory_space<vmem>>, vector<8x128xf32>
    %c4_180 = arith.constant 4 : index
    %c0_181 = arith.constant 0 : index
    %c0_182 = arith.constant 0 : index
    %228 = vector.load %arg15[%c4_180, %c0_181, %c0_182] : memref<5x128x128xf32, #tpu.memory_space<vmem>>, vector<1x128x128xf32>
    %229 = vector.shape_cast %228 : vector<1x128x128xf32> to vector<128x128xf32>
    %cst_183 = arith.constant dense<0.000000e+00> : vector<8x128xf32>
    %230 = tpu.matmul %227, %229, %cst_183 {dimension_numbers = #tpu.dot_dimension_numbers<[1], [0], [0], [1], [0, 0, 1, 1], [], []>} : vector<8x128xf32>, vector<128x128xf32>, vector<8x128xf32> -> vector<8x128xf32>
    %231 = arith.addf %226, %230 : vector<8x128xf32>
    %c0_184 = arith.constant 0 : index
    %c0_185 = arith.constant 0 : index
    %232 = vector.load %arg16[%c0_184, %c0_185] : memref<1x128xf32, #tpu.memory_space<vmem>>, vector<1x128xf32>
    %233 = vector.shape_cast %232 : vector<1x128xf32> to vector<128xf32>
    %234 = vector.shape_cast %233 : vector<128xf32> to vector<1x128xf32>
    %235 = vector.broadcast %234 : vector<1x128xf32> to vector<8x128xf32>
    %236 = arith.mulf %231, %235 : vector<8x128xf32>
    %c0_186 = arith.constant 0 : index
    %c0_187 = arith.constant 0 : index
    %237 = vector.load %arg17[%c0_186, %c0_187] : memref<1x128xf32, #tpu.memory_space<vmem>>, vector<1x128xf32>
    %238 = vector.shape_cast %237 : vector<1x128xf32> to vector<128xf32>
    %239 = vector.shape_cast %238 : vector<128xf32> to vector<1x128xf32>
    %240 = vector.broadcast %239 : vector<1x128xf32> to vector<8x128xf32>
    %241 = arith.addf %236, %240 : vector<8x128xf32>
    %c0_188 = arith.constant 0 : index
    %c0_189 = arith.constant 0 : index
    %c0_190 = arith.constant 0 : index
    %242 = vector.load %arg18[%c0_188, %c0_189, %c0_190] : memref<1x8x128xf32, #tpu.memory_space<vmem>>, vector<1x8x128xf32>
    %243 = vector.shape_cast %242 : vector<1x8x128xf32> to vector<8x128xf32>
    %244 = vector.shape_cast %241 : vector<8x128xf32> to vector<1x8x128xf32>
    tpu.vector_store %arg18[%c0_188, %c0_189, %c0_190], %244 {strides = array<i32>} : memref<1x8x128xf32, #tpu.memory_space<vmem>>, vector<1x8x128xf32>,
    return
  }
  func.func @transform_1(%arg0: i32, %arg1: i32) -> (i32, i32, i32) {
    %c0_i32 = arith.constant 0 : i32
    %c0_i32_0 = arith.constant 0 : i32
    %c0_i32_1 = arith.constant 0 : i32
    %c0_i32_2 = arith.constant 0 : i32
    return %c0_i32, %c0_i32_0, %c0_i32_1 : i32, i32, i32
  }
  func.func @transform_2(%arg0: i32, %arg1: i32) -> (i32, i32) {
    %c0_i32 = arith.constant 0 : i32
    %c0_i32_0 = arith.constant 0 : i32
    %c0_i32_1 = arith.constant 0 : i32
    return %c0_i32, %c0_i32_0 : i32, i32
  }
  func.func @transform_3(%arg0: i32, %arg1: i32) -> (i32, i32) {
    %c0_i32 = arith.constant 0 : i32
    %c0_i32_0 = arith.constant 0 : i32
    %c0_i32_1 = arith.constant 0 : i32
    return %c0_i32, %c0_i32_0 : i32, i32
  }
  func.func @transform_4(%arg0: i32, %arg1: i32) -> (i32, i32, i32) {
    %c0_i32 = arith.constant 0 : i32
    %c0_i32_0 = arith.constant 0 : i32
    %c0_i32_1 = arith.constant 0 : i32
    %c0_i32_2 = arith.constant 0 : i32
    return %c0_i32, %c0_i32_0, %c0_i32_1 : i32, i32, i32
  }
  func.func @transform_5(%arg0: i32, %arg1: i32) -> (i32, i32) {
    %c0_i32 = arith.constant 0 : i32
    %c0_i32_0 = arith.constant 0 : i32
    %c0_i32_1 = arith.constant 0 : i32
    return %c0_i32, %c0_i32_0 : i32, i32
  }
  func.func @transform_6(%arg0: i32, %arg1: i32) -> (i32, i32) {
    %c0_i32 = arith.constant 0 : i32
    %c0_i32_0 = arith.constant 0 : i32
    %c0_i32_1 = arith.constant 0 : i32
    return %c0_i32, %c0_i32_0 : i32, i32
  }
  func.func @transform_7(%arg0: i32, %arg1: i32) -> (i32, i32, i32) {
    %c0_i32 = arith.constant 0 : i32
    %c0_i32_0 = arith.constant 0 : i32
    %c0_i32_1 = arith.constant 0 : i32
    %c0_i32_2 = arith.constant 0 : i32
    return %c0_i32, %c0_i32_0, %c0_i32_1 : i32, i32, i32
  }
  func.func @transform_8(%arg0: i32, %arg1: i32) -> (i32, i32) {
    %c0_i32 = arith.constant 0 : i32
    %c0_i32_0 = arith.constant 0 : i32
    %c0_i32_1 = arith.constant 0 : i32
    return %c0_i32, %c0_i32_0 : i32, i32
  }
  func.func @transform_9(%arg0: i32, %arg1: i32) -> (i32, i32) {
    %c0_i32 = arith.constant 0 : i32
    %c0_i32_0 = arith.constant 0 : i32
    %c0_i32_1 = arith.constant 0 : i32
    return %c0_i32, %c0_i32_0 : i32, i32
  }
  func.func @transform_10(%arg0: i32, %arg1: i32) -> (i32, i32, i32) {
    %c0_i32 = arith.constant 0 : i32
    %c0_i32_0 = arith.constant 0 : i32
    %c0_i32_1 = arith.constant 0 : i32
    %c0_i32_2 = arith.constant 0 : i32
    return %c0_i32, %c0_i32_0, %c0_i32_1 : i32, i32, i32
  }
  func.func @transform_11(%arg0: i32, %arg1: i32) -> (i32, i32) {
    %c0_i32 = arith.constant 0 : i32
    %c0_i32_0 = arith.constant 0 : i32
    %c0_i32_1 = arith.constant 0 : i32
    return %c0_i32, %c0_i32_0 : i32, i32
  }
  func.func @transform_12(%arg0: i32, %arg1: i32) -> (i32, i32) {
    %c0_i32 = arith.constant 0 : i32
    %c0_i32_0 = arith.constant 0 : i32
    %c0_i32_1 = arith.constant 0 : i32
    return %c0_i32, %c0_i32_0 : i32, i32
  }
  func.func @transform_13(%arg0: i32, %arg1: i32) -> (i32, i32, i32) {
    %c0_i32 = arith.constant 0 : i32
    %c0_i32_0 = arith.constant 0 : i32
    %c0_i32_1 = arith.constant 0 : i32
    %c0_i32_2 = arith.constant 0 : i32
    return %c0_i32, %c0_i32_0, %c0_i32_1 : i32, i32, i32
  }
  func.func @transform_14(%arg0: i32, %arg1: i32) -> (i32, i32) {
    %c0_i32 = arith.constant 0 : i32
    %c0_i32_0 = arith.constant 0 : i32
    %c0_i32_1 = arith.constant 0 : i32
    return %c0_i32, %c0_i32_0 : i32, i32
  }
  func.func @transform_15(%arg0: i32, %arg1: i32) -> (i32, i32) {
    %c0_i32 = arith.constant 0 : i32
    %c0_i32_0 = arith.constant 0 : i32
    %c0_i32_1 = arith.constant 0 : i32
    return %c0_i32, %c0_i32_0 : i32, i32
  }
  func.func @transform_16(%arg0: i32, %arg1: i32) -> (i32, i32, i32) {
    %c0_i32 = arith.constant 0 : i32
    %c0_i32_0 = arith.constant 0 : i32
    return %arg0, %arg1, %c0_i32 : i32, i32, i32
  }
}

</mosaic_0001>

<bundles_post_ra>
// kernel: tpu_custom_call.1
= control target key start
LH: loop header
LB: loop body
LE: loop exit
PB: predicated region body
PF: predicated region fallthrough
CT: control target
= control target key end

     0   :  { %s5878_s0 = inlined_call_operand.vmem [shape: f32[2,36,128], index: 0, kind: input, shape index: {}]   ;;  %s5879_s1 = inlined_call_operand.hbm [shape: f32[5,128,128], index: 1, kind: input, shape index: {}]   ;;  %s5880_s2 = inlined_call_operand.vmem [shape: f32[1,128], index: 2, kind: input, shape index: {}]   ;;  %s5881_s3 = inlined_call_operand.vmem [shape: f32[1,128], index: 3, kind: input, shape index: {}]   ;;  %s5882_s4 = inlined_call_operand.hbm [shape: f32[5,128,128], index: 4, kind: input, shape index: {}]   ;;  %s5883_s5 = inlined_call_operand.vmem [shape: f32[1,128], index: 5, kind: input, shape index: {}]   ;;  %s5884_s6 = inlined_call_operand.vmem [shape: f32[1,128], index: 6, kind: input, shape index: {}]   ;;  %s5885_s7 = inlined_call_operand.hbm [shape: f32[5,128,128], index: 7, kind: input, shape index: {}]   ;;  %s5886_s8 = inlined_call_operand.vmem [shape: f32[1,128], index: 8, kind: input, shape index: {}]   ;;  %s5887_s9 = inlined_call_operand.vmem [shape: f32[1,128], index: 9, kind: input, shape index: {}]   ;;  %s5888_s10 = inlined_call_operand.hbm [shape: f32[5,128,128], index: 10, kind: input, shape index: {}]   ;;  %s5889_s11 = inlined_call_operand.vmem [shape: f32[1,128], index: 11, kind: input, shape index: {}]   ;;  %s5890_s12 = inlined_call_operand.vmem [shape: f32[1,128], index: 12, kind: input, shape index: {}]   ;;  %s5891_s13 = inlined_call_operand.hbm [shape: f32[5,128,128], index: 13, kind: input, shape index: {}]   ;;  %s5892_s14 = inlined_call_operand.vmem [shape: f32[1,128], index: 14, kind: input, shape index: {}]   ;;  %s5893_s15 = inlined_call_operand.vmem [shape: f32[1,128], index: 15, kind: input, shape index: {}]   ;;  %s5894_s16 = inlined_call_operand.hbm [shape: f32[2,16,128], index: 16, kind: output, shape index: {}]  }
   0x1   :  { %5905 = sst [smem:[#allocation31_spill]] %s5878_s0 }
   0x2   :  { %5906 = sst [smem:[#allocation32_spill]] %s5882_s4 }
   0x3   :  { %5907 = sst [smem:[#allocation33_spill]] %s5892_s14 }
   0x4   :  { %5908 = sst [smem:[#allocation34_spill]] %s5893_s15 }
   0x5   :  { %5909 = sst [smem:[#allocation35_spill]] %s5894_s16 }
   0x6   :  { %21 = vsyncpa [#allocation6], 0 }
   0x7   :  { %22 = vsyncpa [#allocation9], 0 }
   0x8   :  { %23 = vsyncpa [#allocation12], 0 }
   0x9   :  { %24 = vsyncpa [#allocation7], 0 }
   0xa   :  { %26 = vsyncpa [#allocation7 + $0x1], 0  ;;  %s5286_s21 = smov 0   ;;  %s5288_s22 = smov 0  }
   0xb   :  { %s5290_s23 = smov 0   ;;  %s5292_s24 = smov 0  }
   0xc   :  { %s5294_s25 = smov 0   ;;  %s5296_s26 = smov 0  }
   0xd   :  { %s5298_s27 = smov 0   ;;  %s5300_s28 = smov 0  }
   0xe LB: > { %5910 = sst [smem:[#allocation22_spill]] %s5161_s21  ;;  %s3375_s29 = sadd.s32 4294967295, %s5189_s28   ;;  %s5189_s28 = sphi %s5300_s28, %s32_s28   ;;  %s5185_s27 = sphi %s5298_s27, %s5943_s27   ;;  %s5181_s26 = sphi %s5296_s26, %s5939_s26   ;;  %s5177_s25 = sphi %s5294_s25, %s5938_s25   ;;  %s5173_s24 = sphi %s5292_s24, %s5937_s24   ;;  %s5169_s23 = sphi %s5290_s23, %s5936_s23   ;;  %s5165_s22 = sphi %s5288_s22, %s5942_s22   ;;  %s5161_s21 = sphi %s5286_s21, %s5941_s21  }
   0xf   : > { %5911 = sst [smem:[#allocation23_spill]] %s5169_s23  ;;  %s3376_s30 = sadd.s32 4294967294, %s5189_s28  }
  0x10   : > { %5912 = sst [smem:[#allocation24_spill]] %s5181_s26  ;;  %s41_s0 = sadd.s32 1, %s5181_s26 }
  0x11   : > { %5913 = sst [smem:[#allocation25_spill]] %s5185_s27  ;;  %s44_s17 = sadd.s32 1, %s5185_s27 }
  0x12   : > { %5914 = sst [smem:[#allocation26_spill]] %s5189_s28  ;;  %p42_p0 = scmp.ge.s32.totalorder %s41_s0, 2 }
  0x13   : > { %s368_s18 = sadd.s32 1, %s5169_s23  ;;  %p378_p1 = scmp.ne.s32.totalorder %s5169_s23, %s5165_s22 }
  0x14   : > { %p379_p2 = scmp.eq.s32.totalorder %s3375_s29, 3  ;;  %s5945_s0 = smov (%p42_p0, %s41_s0), 0 }
  0x15   : > { %5915 = sst [smem:[#allocation27_spill]] %s5945_s0  ;;  %s5947_s17 = smov (!%p42_p0, %s44_s17), %s5185_s27 }
  0x16   : > { %s364_s19 = ssub.s32 %s5181_s26, %s5945_s0  ;;  %p5338_p3 = por %p379_p2, %p378_p1 }
  0x17   : > { %p46_p4 = scmp.ge.s32.totalorder %s5947_s17, 2  ;;  %p384_p5 = scmp.ne.s32.totalorder %s5165_s22, %s5161_s21 }
  0x18   : > { %p385_p6 = scmp.eq.s32.totalorder %s3376_s30, 3  ;;  %p3377_p7 = scmp.ge.s32.totalorder %s5189_s28, 1 }
  0x19   : > { %s5949_s17 = smov (%p46_p4, %s5947_s17), 0  ;;  %p392_p9 = scmp.lt.s32.totalorder %s5189_s28, 5 }
  0x1a   : > { %5917 = sst [smem:[#allocation28_spill]] %s5949_s17  ;;  %p5347_p8 = por %p385_p6, %p384_p5 }
  0x1b   : > { %s363_s15 = ssub.s32 %s5185_s27, %s5949_s17  ;;  %p5354_p10 = pnand %p3377_p7, %p392_p9 }
  0x1c   : > { %s5918_s16 = scalar_select %p5347_p8, 1, 0 }
  0x1d   : > { %s365_s14 = sor.u32 %s364_s19, %s363_s15  ;;  %p5358_p12 = scmp.eq.s32.totalorder %s3375_s29, 0 }
  0x1e   : > { %5919 = sst [smem:[#allocation29_spill]] %s5918_s16  ;;  %p366_p11 = scmp.eq.s32.totalorder %s365_s14, 0 }
  0x1f   : > { %p4823_p13 = pneg %p5354_p10  ;;  %s5191_s15 = smov [#allocation8]  }
  0x20   : > { %s5365_s30 = scalar_select %p366_p11, %s5169_s23, %s368_s18  }
  0x21   : > { %p5369_p0 = pnand %p5358_p12, %p4823_p13  ;;  %s423_s19 = sshll.u32 %s5191_s15, 4  ;;  %s424_s19 = int_to_ptr.vmem [resolvable:$true] %s423_s19 }
  0x22   : > { %5922 = sst [smem:[#allocation30_spill]] %s5365_s30  ;;  %s5192_s17 = smov [#allocation11]  }
  0x23   : > { %s461_s14 = sshll.u32 %s5192_s17, 4  ;;  %p5375_p1 = pneg %p5369_p0  ;;  %s462_s14 = int_to_ptr.vmem [resolvable:$true] %s461_s14 }
  0x24   : > { %s4964_s27 = scalar_lea.vmem %s424_s19, 10240  ;;  %p4972_p6 = scmp.lt.s32.totalorder %s424_s19, %s424_s19 }
  0x25   : > { %p4965_p2 = scmp.ne.s32.totalorder %s424_s19, %s4964_s27  ;;  %p4973_p7 = scmp.lt.s32.totalorder %s4964_s27, %s4964_s27 }
  0x27   : > { %p4967_p4 = pnand %p4965_p2, %p5375_p1  ;;  %p4974_p9 = por %p4973_p7, %p4972_p6 }
  0x29   : > { %p4968_p5 = pneg %p4967_p4 }
  0x2b   : > { %p4975_p11 = pnand %p4974_p9, %p4968_p5 }
  0x2d   : > { %4978 = shalt.err (!%p4975_p11)
}
  0x2e   : > { %s5193_s18 = smov 128   ;;  %s5194_s17 = smov 8  }
  0x2f   : > { %s5925_s4 = sld [smem:[#allocation32_spill]]  ;;  %s4990_s23 = scalar_lea.vmem %s462_s14, 10240 }
  0x30   : > { %p4991_p13 = scmp.ne.s32.totalorder %s462_s14, %s4990_s23  ;;  %p4998_p5 = scmp.lt.s32.totalorder %s462_s14, %s462_s14 }
  0x31   : > { %p4999_p6 = scmp.lt.s32.totalorder %s4990_s23, %s4990_s23 }
  0x32   : > { %p4993_p2 = pnand %p4991_p13, %p5375_p1 }
  0x33   : > { %p5000_p7 = por %p4999_p6, %p4998_p5 }
  0x34   : > { %p4994_p4 = pneg %p4993_p2 }
  0x35   : > { %4829 = dma.hbm_to_vmem [thread:$0]  (!%p5369_p0), %s5925_s4, 10240, %s424_s19, [#allocation9], %s5193_s18, %s5193_s18, %s5194_s17  }
  0x36   : > { %p5001_p9 = pnand %p5000_p7, %p4994_p4 }
  0x38   : > { %5004 = shalt.err (!%p5001_p9)
}
  0x39   : > { %4835 = dma.hbm_to_vmem [thread:$0]  (!%p5369_p0), %s5888_s10, 10240, %s462_s14, [#allocation12], %s5193_s18, %s5193_s18, %s5194_s17  }
  0x3a   : > { %s5195_s30 = smov [#allocation5]   ;;  %s5196_s15 = smov [#allocation10]  }
  0x3b   : > { %s404_s19 = sshll.u32 %s5195_s30, 4  ;;  %s442_s4 = sshll.u32 %s5196_s15, 4  ;;  %s405_s19 = int_to_ptr.vmem [resolvable:$true] %s404_s19  ;;  %s443_s4 = int_to_ptr.vmem [resolvable:$true] %s442_s4 }
  0x3c   : > { %s5016_s28 = scalar_lea.vmem %s405_s19, 10240  ;;  %p5024_p4 = scmp.lt.s32.totalorder %s405_s19, %s405_s19 }
  0x3d   : > { %p5017_p11 = scmp.ne.s32.totalorder %s405_s19, %s5016_s28  ;;  %p5025_p5 = scmp.lt.s32.totalorder %s5016_s28, %s5016_s28 }
  0x3f   : > { %p5019_p13 = pnand %p5017_p11, %p5375_p1  ;;  %p5026_p6 = por %p5025_p5, %p5024_p4 }
  0x41   : > { %p5020_p2 = pneg %p5019_p13 }
  0x43   : > { %p5027_p7 = pnand %p5026_p6, %p5020_p2 }
  0x45   : > { %5030 = shalt.err (!%p5027_p7)
}
  0x46   : > { %4826 = dma.hbm_to_vmem [thread:$0]  (!%p5369_p0), %s5879_s1, 10240, %s405_s19, [#allocation6], %s5193_s18, %s5193_s18, %s5194_s17  }
  0x47   : > { %s5042_s14 = scalar_lea.vmem %s443_s4, 10240  ;;  %p5050_p8 = scmp.lt.s32.totalorder %s443_s4, %s443_s4 }
  0x48   : > { %p5043_p9 = scmp.ne.s32.totalorder %s443_s4, %s5042_s14  ;;  %p5051_p4 = scmp.lt.s32.totalorder %s5042_s14, %s5042_s14 }
  0x4a   : > { %p5045_p11 = pnand %p5043_p9, %p5375_p1  ;;  %p5052_p2 = por %p5051_p4, %p5050_p8 }
  0x4c   : > { %p5046_p13 = pneg %p5045_p11 }
  0x4e   : > { %p5053_p5 = pnand %p5052_p2, %p5046_p13 }
  0x50   : > { %5056 = shalt.err (!%p5053_p5)
}
  0x51   : > { %4832 = dma.hbm_to_vmem [thread:$0]  (!%p5369_p0), %s5885_s7, 10240, %s443_s4, [#allocation9], %s5193_s18, %s5193_s18, %s5194_s17  }
  0x52   : > { %s5197_s30 = smov [#allocation13]  }
  0x53   : > { %s480_s19 = sshll.u32 %s5197_s30, 4  ;;  %s481_s19 = int_to_ptr.vmem [resolvable:$true] %s480_s19 }
  0x54   : > { %s5068_s15 = scalar_lea.vmem %s481_s19, 10240  ;;  %p5076_p9 = scmp.lt.s32.totalorder %s481_s19, %s481_s19 }
  0x55   : > { %p5069_p6 = scmp.ne.s32.totalorder %s481_s19, %s5068_s15  ;;  %p5077_p11 = scmp.lt.s32.totalorder %s5068_s15, %s5068_s15 }
  0x57   : > { %p5071_p7 = pnand %p5069_p6, %p5375_p1  ;;  %p5078_p13 = por %p5077_p11, %p5076_p9 }
  0x59   : > { %p5072_p8 = pneg %p5071_p7 }
  0x5b   : > { %p5079_p4 = pnand %p5078_p13, %p5072_p8 }
  0x5d   : > { %5082 = shalt.err (!%p5079_p4)
}
  0x5e   : > { %4838 = dma.hbm_to_vmem [thread:$0]  (!%p5369_p0), %s5891_s13, 10240, %s481_s19, [#allocation12], %s5193_s18, %s5193_s18, %s5194_s17  }
  0x5f   : > { %502 = sbr.rel (%p5354_p10) target bundleno = 1597 (0x63d), region = 80 }
  0x64   : > { %5142 = dma.done.wait (%p5358_p12), [#allocation6], 10240  }
  0x65   : > { %5144 = vsyncadd (%p5358_p12), [#allocation6], 4294957056 }
  0x66   : > { %5146 = dma.done.wait (%p5358_p12), [#allocation9], 20480  }
  0x67   : > { %5148 = vsyncadd (%p5358_p12), [#allocation9], 4294946816 }
  0x68   : > { %5150 = dma.done.wait (%p5358_p12), [#allocation12], 20480  }
  0x69   : > { %5152 = vsyncadd (%p5358_p12), [#allocation12], 4294946816  ;;  %s558_s16 = sand.u32 1, %s5165_s22   ;;  %s5445_s0 = sshll.u32 %s5173_s24, 3 }
  0x6a   : > { %s5449_s29 = sshll.u32 %s558_s16, 3 }
  0x6b   : > { %s560_s18 = scalar_lea.vmem [#allocation14], %s5449_s29 }
  0x6c   : > { %s562_s17 = smul.u32 40, %s5177_s25  ;;  %s5926_s27 = sld [smem:[#allocation31_spill]] }
  0x6e   : > { %s563_s23 = sadd.s32 %s5445_s0, %s562_s17 }
  0x72   : > { %s564_s26 = scalar_lea.vmem %s5926_s27, %s563_s23 }
  0x73   : > { %v603_v0 = vld [vmem:[%s564_s26] sm:$0xff]  ;;  %v605_v1 = vld [vmem:[%s564_s26 + $0x8] sm:$0xff]  ;;  %v607_v2 = vld [vmem:[%s564_s26 + $0x10] sm:$0xff] }
  0x74   : > { %604 = vst [vmem:[#allocation2] sm:$0xff] %v603_v0  ;;  %606 = vst [vmem:[#allocation2 + $0x8] sm:$0xff] %v605_v1  ;;  %v3391_v3 = vld [vmem:[%s564_s26 + $0x18] sm:$0xf] }
  0x75   : > { %608 = vst [vmem:[#allocation2 + $0x10] sm:$0xff] %v607_v2  ;;  %620 = vst [vmem:[#allocation2 + $0x18] sm:$0xf] %v3391_v3 }
  0x76   : > { %624 = vsyncadd [#allocation15], 448 }
  0x77   : > { %5153 = dma.done.wait [#allocation15], 448 }
  0x78   : > { %5154 = vsyncadd [#allocation15], 4294966848  ;;  %v666_v4 = vld [vmem:[#allocation5 + $0xf8] sm:$0xff]  ;;  %v5198_v6 = vmov 0.0   ;;  %v665_v7 = vld [vmem:[#allocation5 + $0xf0] sm:$0xff]  ;;  %vm5199_vm0 = vmmov 0  }
  0x79   : > { %v646_v5 = vld [vmem:[#allocation5 + $0x78] sm:$0xff]  ;;  %3866 = vmatprep.subr.mxu0 %v5198_v6  ;;  %3907 = vmatprep.subr.mxu1 %v5198_v6  ;;  %v645_v8 = vld [vmem:[#allocation5 + $0x70] sm:$0xff]  ;;  %v664_v9 = vld [vmem:[#allocation5 + $0xe8] sm:$0xff]  ;;  %s3394_s4 = sadd.s32 4294967288, %s5445_s0  ;;  %s3397_s27 = sadd.s32 4294967290, %s5445_s0 }
  0x7a   : > { %3867 = vmatpush3.msra.mxu0 %v666_v4  ;;  %3908 = vmatpush3.msra.mxu1 %v646_v5  ;;  %v644_v10 = vld [vmem:[#allocation5 + $0x68] sm:$0xff]  ;;  %v663_v11 = vld [vmem:[#allocation5 + $0xe0] sm:$0xff]  ;;  %v662_v13 = vld [vmem:[#allocation5 + $0xd8] sm:$0xff]  ;;  %s3400_s21 = sadd.s32 4294967292, %s5445_s0  ;;  %s3403_s28 = sadd.s32 4294967294, %s5445_s0 }
  0x7b   : > { %3868 = vmatprep.subr.mxu0 %v5198_v6  ;;  %3909 = vmatprep.subr.mxu1 %v5198_v6  ;;  %v643_v12 = vld [vmem:[#allocation5 + $0x60] sm:$0xff]  ;;  %v642_v14 = vld [vmem:[#allocation5 + $0x58] sm:$0xff]  ;;  %v661_v15 = vld [vmem:[#allocation5 + $0xd0] sm:$0xff]  ;;  %s3407_s0 = sshll.u32 %s5177_s25, 1  ;;  %s5927_s19 = sld [smem:[#allocation33_spill]] }
  0x7c   : > { %3869 = vmatpush3.msra.mxu0 %v665_v7  ;;  %3910 = vmatpush3.msra.mxu1 %v645_v8  ;;  %v641_v16 = vld [vmem:[#allocation5 + $0x50] sm:$0xff]  ;;  %v660_v17 = vld [vmem:[#allocation5 + $0xc8] sm:$0xff]  ;;  %v659_v19 = vld [vmem:[#allocation5 + $0xc0] sm:$0xff]  ;;  %s3247_s23 = sshll.u32 %s560_s18, 4  ;;  %s3232_s26 = scalar_lea.sflag [#allocation7], %s558_s16  ;;  %s3248_s23 = int_to_ptr.vmem [resolvable:$true] %s3247_s23 }
  0x7d   : > { %3870 = vmatprep.subr.mxu0 %v5198_v6  ;;  %3911 = vmatprep.subr.mxu1 %v5198_v6  ;;  %v640_v18 = vld [vmem:[#allocation5 + $0x48] sm:$0xff]  ;;  %v639_v20 = vld [vmem:[#allocation5 + $0x40] sm:$0xff]  ;;  %v658_v21 = vld [vmem:[#allocation5 + $0xb8] sm:$0xff]  ;;  %s5083_s30 = scalar_lea.vmem %s3248_s23, 128 }
  0x7e   : > { %3871 = vmatpush3.msra.mxu0 %v664_v9  ;;  %3912 = vmatpush3.msra.mxu1 %v644_v10  ;;  %v638_v22 = vld [vmem:[#allocation5 + $0x38] sm:$0xff]  ;;  %v657_v23 = vld [vmem:[#allocation5 + $0xb0] sm:$0xff]  ;;  %v656_v25 = vld [vmem:[#allocation5 + $0xa8] sm:$0xff]  ;;  %p5084_p10 = scmp.ne.s32.totalorder %s3248_s23, %s5083_s30 }
  0x7f   : > { %3872 = vmatprep.subr.mxu0 %v5198_v6  ;;  %3913 = vmatprep.subr.mxu1 %v5198_v6  ;;  %v637_v24 = vld [vmem:[#allocation5 + $0x30] sm:$0xff]  ;;  %v636_v26 = vld [vmem:[#allocation5 + $0x28] sm:$0xff]  ;;  %v655_v27 = vld [vmem:[#allocation5 + $0xa0] sm:$0xff] }
  0x80   : > { %3873 = vmatpush3.msra.mxu0 %v663_v11  ;;  %3914 = vmatpush3.msra.mxu1 %v643_v12  ;;  %v635_v28 = vld [vmem:[#allocation5 + $0x20] sm:$0xff]  ;;  %v654_v29 = vld [vmem:[#allocation5 + $0x98] sm:$0xff]  ;;  %v653_v31 = vld [vmem:[#allocation5 + $0x90] sm:$0xff]  ;;  %p5085_p12 = pnand %p5084_p10, %p5338_p3 }
  0x81   : > { %3874 = vmatprep.subr.mxu0 %v5198_v6  ;;  %3915 = vmatprep.subr.mxu1 %v5198_v6  ;;  %v634_v30 = vld [vmem:[#allocation5 + $0x18] sm:$0xff]  ;;  %v633_v32 = vld [vmem:[#allocation5 + $0x10] sm:$0xff]  ;;  %v652_v33 = vld [vmem:[#allocation5 + $0x88] sm:$0xff] }
  0x82   : > { %3875 = vmatpush3.msra.mxu0 %v662_v13  ;;  %3916 = vmatpush3.msra.mxu1 %v642_v14  ;;  %v632_v34 = vld [vmem:[#allocation5 + $0x8] sm:$0xff]  ;;  %v651_v35 = vld [vmem:[#allocation5 + $0x80] sm:$0xff]  ;;  %v846_v39 = vld [vmem:[#allocation5 + $0x178] sm:$0xff]  ;;  %p5086_p0 = pneg %p5085_p12 }
  0x83   : > { %3876 = vmatprep.subr.mxu0 %v5198_v6  ;;  %3917 = vmatprep.subr.mxu1 %v5198_v6  ;;  %v647_v36 = vld [vmem:[#allocation2 + $0x1] sm:$0xff]  ;;  %v845_v40 = vld [vmem:[#allocation5 + $0x170] sm:$0xff]  ;;  %v949_v41 = vld [vmem:[#allocation5 + $0x1f8] sm:$0xff] }
  0x84   : > { %3877 = vmatpush3.msra.mxu0 %v661_v15  ;;  %3918 = vmatpush3.msra.mxu1 %v641_v16  ;;  %v631_v37 = vld [vmem:[#allocation5] sm:$0xff]  ;;  %v844_v42 = vld [vmem:[#allocation5 + $0x168] sm:$0xff]  ;;  %v948_v43 = vld [vmem:[#allocation5 + $0x1f0] sm:$0xff] }
  0x85   : > { %3878 = vmatprep.subr.mxu0 %v5198_v6  ;;  %3919 = vmatprep.subr.mxu1 %v5198_v6  ;;  %v628_v38 = vld [vmem:[#allocation2] sm:$0xff]  ;;  %v947_v45 = vld [vmem:[#allocation5 + $0x1e8] sm:$0xff]  ;;  %v842_v46 = vld [vmem:[#allocation5 + $0x158] sm:$0xff] }
  0x86   : > { %3879 = vmatpush3.msra.mxu0 %v660_v17  ;;  %3920 = vmatpush3.msra.mxu1 %v640_v18  ;;  %v843_v44 = vld [vmem:[#allocation5 + $0x160] sm:$0xff]  ;;  %v841_v48 = vld [vmem:[#allocation5 + $0x150] sm:$0xff]  ;;  %v945_v49 = vld [vmem:[#allocation5 + $0x1d8] sm:$0xff] }
  0x87   : > { %3880 = vmatprep.subr.mxu0 %v5198_v6  ;;  %3921 = vmatprep.subr.mxu1 %v5198_v6  ;;  %v946_v47 = vld [vmem:[#allocation5 + $0x1e0] sm:$0xff]  ;;  %v840_v50 = vld [vmem:[#allocation5 + $0x148] sm:$0xff]  ;;  %v944_v51 = vld [vmem:[#allocation5 + $0x1d0] sm:$0xff] }
  0x88   : > { %3881 = vmatpush3.msra.mxu0 %v659_v19  ;;  %3922 = vmatpush3.msra.mxu1 %v639_v20  ;;  %v839_v52 = vld [vmem:[#allocation5 + $0x140] sm:$0xff]  ;;  %v943_v53 = vld [vmem:[#allocation5 + $0x1c8] sm:$0xff]  ;;  %v838_v54 = vld [vmem:[#allocation5 + $0x138] sm:$0xff] }
  0x89   : > { %3882 = vmatprep.subr.mxu0 %v5198_v6  ;;  %3923 = vmatprep.subr.mxu1 %v5198_v6  ;;  %v942_v55 = vld [vmem:[#allocation5 + $0x1c0] sm:$0xff]  ;;  %v837_v56 = vld [vmem:[#allocation5 + $0x130] sm:$0xff]  ;;  %v941_v57 = vld [vmem:[#allocation5 + $0x1b8] sm:$0xff] }
  0x8a   : > { %3883 = vmatpush3.msra.mxu0 %v658_v21  ;;  %3924 = vmatpush3.msra.mxu1 %v638_v22  ;;  %v836_v58 = vld [vmem:[#allocation5 + $0x128] sm:$0xff]  ;;  %v940_v59 = vld [vmem:[#allocation5 + $0x1b0] sm:$0xff]  ;;  %v835_v61 = vld [vmem:[#allocation5 + $0x120] sm:$0xff] }
  0x8b   : > { %3884 = vmatprep.subr.mxu0 %v5198_v6  ;;  %3925 = vmatprep.subr.mxu1 %v5198_v6  ;;  %v648_v60 = vld [vmem:[#allocation2 + $0x9] sm:$0xff]  ;;  %v834_v0 = vld [vmem:[#allocation5 + $0x118] sm:$0xff]  ;;  %v938_v1 = vld [vmem:[#allocation5 + $0x1a0] sm:$0xff] }
  0x8c   : > { %3885 = vmatpush3.msra.mxu0 %v657_v23  ;;  %3926 = vmatpush3.msra.mxu1 %v637_v24  ;;  %v939_v62 = vld [vmem:[#allocation5 + $0x1a8] sm:$0xff]  ;;  %v649_v2 = vld [vmem:[#allocation2 + $0x11] sm:$0xff]  ;;  %v831_v9 = vld [vmem:[#allocation5 + $0x100] sm:$0xff] }
  0x8d   : > { %3886 = vmatprep.subr.mxu0 %v5198_v6  ;;  %3927 = vmatprep.subr.mxu1 %v5198_v6  ;;  %v629_v63 = vld [vmem:[#allocation2 + $0x8] sm:$0xff]  ;;  %v833_v3 = vld [vmem:[#allocation5 + $0x110] sm:$0xff]  ;;  %v937_v4 = vld [vmem:[#allocation5 + $0x198] sm:$0xff] }
  0x8e   : > { %3887 = vmatpush3.msra.mxu0 %v656_v25  ;;  %3928 = vmatpush3.msra.mxu1 %v636_v26  ;;  %v630_v5 = vld [vmem:[#allocation2 + $0x10] sm:$0xff]  ;;  %v832_v7 = vld [vmem:[#allocation5 + $0x108] sm:$0xff]  ;;  %v934_v12 = vld [vmem:[#allocation5 + $0x180] sm:$0xff] }
  0x8f   : > { %3888 = vmatprep.subr.mxu0 %v5198_v6  ;;  %3929 = vmatprep.subr.mxu1 %v5198_v6  ;;  %v936_v8 = vld [vmem:[#allocation5 + $0x190] sm:$0xff]  ;;  %v935_v10 = vld [vmem:[#allocation5 + $0x188] sm:$0xff]  ;;  %v1052_v13 = vld [vmem:[#allocation5 + $0x278] sm:$0xff] }
  0x90   : > { %3889 = vmatpush3.msra.mxu0 %v655_v27  ;;  %3930 = vmatpush3.msra.mxu1 %v635_v28  ;;  %v827_v11 = vld [vmem:[#allocation2 + $0x2] sm:$0xff]  ;;  %v1051_v15 = vld [vmem:[#allocation5 + $0x270] sm:$0xff]  ;;  %v1048_v21 = vld [vmem:[#allocation5 + $0x258] sm:$0xff] }
  0x91   : > { %3890 = vmatprep.subr.mxu0 %v5198_v6  ;;  %3931 = vmatprep.subr.mxu1 %v5198_v6  ;;  %v930_v14 = vld [vmem:[#allocation2 + $0x3] sm:$0xff]  ;;  %v931_v18 = vld [vmem:[#allocation2 + $0xb] sm:$0xff]  ;;  %v932_v22 = vld [vmem:[#allocation2 + $0x13] sm:$0xff] }
  0x92   : > { %3891 = vmatpush3.msra.mxu0 %v654_v29  ;;  %3932 = vmatpush3.msra.mxu1 %v634_v30  ;;  %v828_v16 = vld [vmem:[#allocation2 + $0xa] sm:$0xff]  ;;  %v1049_v19 = vld [vmem:[#allocation5 + $0x260] sm:$0xff]  ;;  %v829_v20 = vld [vmem:[#allocation2 + $0x12] sm:$0xff] }
  0x93   : > { %3892 = vmatprep.subr.mxu0 %v5198_v6  ;;  %3933 = vmatprep.subr.mxu1 %v5198_v6  ;;  %v1050_v17 = vld [vmem:[#allocation5 + $0x268] sm:$0xff]  ;;  %v1047_v23 = vld [vmem:[#allocation5 + $0x250] sm:$0xff]  ;;  %v1045_v25 = vld [vmem:[#allocation5 + $0x240] sm:$0xff] }
  0x94   : > { %3893 = vmatpush3.msra.mxu0 %v653_v31  ;;  %3934 = vmatpush3.msra.mxu1 %v633_v32  ;;  %v1046_v24 = vld [vmem:[#allocation5 + $0x248] sm:$0xff]  ;;  %v1044_v26 = vld [vmem:[#allocation5 + $0x238] sm:$0xff]  ;;  %v1043_v27 = vld [vmem:[#allocation5 + $0x230] sm:$0xff] }
  0x95   : > { %3894 = vmatprep.subr.mxu0 %v5198_v6  ;;  %3935 = vmatprep.subr.mxu1 %v5198_v6  ;;  %v1042_v28 = vld [vmem:[#allocation5 + $0x228] sm:$0xff]  ;;  %v1041_v29 = vld [vmem:[#allocation5 + $0x220] sm:$0xff]  ;;  %v1040_v30 = vld [vmem:[#allocation5 + $0x218] sm:$0xff] }
  0x96   : > { %3895 = vmatpush3.msra.mxu0 %v652_v33  ;;  %3936 = vmatpush3.msra.mxu1 %v632_v34  ;;  %v1039_v31 = vld [vmem:[#allocation5 + $0x210] sm:$0xff]  ;;  %v1038_v32 = vld [vmem:[#allocation5 + $0x208] sm:$0xff]  ;;  %v1037_v33 = vld [vmem:[#allocation5 + $0x200] sm:$0xff] }
  0x97   : > { %3896 = vmatprep.subr.mxu0 %v5198_v6  ;;  %3898 = vmatprep.mubr.msk.f32.mxu0 %vm5199_vm0, %v5198_v6  ;;  %v1033_v34 = vld [vmem:[#allocation2 + $0x4] sm:$0xff] }
  0x98   : > { %3897 = vmatpush3.msra.mxu0 %v651_v35  ;;  %3937 = vmatprep.subr.mxu1 %v5198_v6  ;;  %v1034_v35 = vld [vmem:[#allocation2 + $0xc] sm:$0xff] }
  0x99   : > { %3899 = vmatmul.mubr.f32.vlgmr.msra.gmra.mxu0 %v647_v36  ;;  %3938 = vmatpush3.msra.mxu1 %v631_v37  ;;  %v1035_v36 = vld [vmem:[#allocation2 + $0x14] sm:$0xff] }
  0x9a   : > { %3939 = vmatprep.mubr.msk.f32.mxu1 %vm5199_vm0, %v5198_v6  ;;  %3948 = vmatprep.subr.mxu0 %v5198_v6  ;;  %v1207_v37 = vld [vmem:[#allocation8 + $0x78] sm:$0xff] }
  0x9b   : > { %3940 = vmatmul.mubr.f32.vlgmr.msra.gmra.mxu1 %v628_v38  ;;  %3949 = vmatpush3.msra.mxu0 %v846_v39  ;;  %v1206_v38 = vld [vmem:[#allocation8 + $0x70] sm:$0xff]  ;;  %v1205_v39 = vld [vmem:[#allocation8 + $0x68] sm:$0xff] }
  0x9c   : > { %3950 = vmatprep.subr.mxu0 %v5198_v6  ;;  %3989 = vmatprep.subr.mxu1 %v5198_v6 }
  0x9d   : > { %3951 = vmatpush3.msra.mxu0 %v845_v40  ;;  %3990 = vmatpush3.msra.mxu1 %v949_v41  ;;  %v1204_v40 = vld [vmem:[#allocation8 + $0x60] sm:$0xff]  ;;  %v1203_v41 = vld [vmem:[#allocation8 + $0x58] sm:$0xff] }
  0x9e   : > { %3952 = vmatprep.subr.mxu0 %v5198_v6  ;;  %3991 = vmatprep.subr.mxu1 %v5198_v6 }
  0x9f   : > { %3953 = vmatpush3.msra.mxu0 %v844_v42  ;;  %3992 = vmatpush3.msra.mxu1 %v948_v43  ;;  %v1202_v42 = vld [vmem:[#allocation8 + $0x50] sm:$0xff]  ;;  %v1227_v43 = vld [vmem:[#allocation8 + $0xf8] sm:$0xff] }
  0xa0   : > { %3954 = vmatprep.subr.mxu0 %v5198_v6  ;;  %3993 = vmatprep.subr.mxu1 %v5198_v6 }
  0xa1   : > { %3955 = vmatpush3.msra.mxu0 %v843_v44  ;;  %3994 = vmatpush3.msra.mxu1 %v947_v45  ;;  %v1201_v44 = vld [vmem:[#allocation8 + $0x48] sm:$0xff]  ;;  %v1226_v45 = vld [vmem:[#allocation8 + $0xf0] sm:$0xff] }
  0xa2   : > { %3956 = vmatprep.subr.mxu0 %v5198_v6  ;;  %3995 = vmatprep.subr.mxu1 %v5198_v6 }
  0xa3   : > { %3957 = vmatpush3.msra.mxu0 %v842_v46  ;;  %3996 = vmatpush3.msra.mxu1 %v946_v47  ;;  %v1200_v46 = vld [vmem:[#allocation8 + $0x40] sm:$0xff]  ;;  %v1225_v47 = vld [vmem:[#allocation8 + $0xe8] sm:$0xff] }
  0xa4   : > { %3958 = vmatprep.subr.mxu0 %v5198_v6  ;;  %3997 = vmatprep.subr.mxu1 %v5198_v6 }
  0xa5   : > { %3959 = vmatpush3.msra.mxu0 %v841_v48  ;;  %3998 = vmatpush3.msra.mxu1 %v945_v49  ;;  %v1199_v48 = vld [vmem:[#allocation8 + $0x38] sm:$0xff]  ;;  %v1224_v49 = vld [vmem:[#allocation8 + $0xe0] sm:$0xff] }
  0xa6   : > { %3960 = vmatprep.subr.mxu0 %v5198_v6  ;;  %3999 = vmatprep.subr.mxu1 %v5198_v6 }
  0xa7   : > { %3961 = vmatpush3.msra.mxu0 %v840_v50  ;;  %4000 = vmatpush3.msra.mxu1 %v944_v51  ;;  %v1198_v50 = vld [vmem:[#allocation8 + $0x30] sm:$0xff]  ;;  %v1223_v51 = vld [vmem:[#allocation8 + $0xd8] sm:$0xff] }
  0xa8   : > { %3962 = vmatprep.subr.mxu0 %v5198_v6  ;;  %4001 = vmatprep.subr.mxu1 %v5198_v6 }
  0xa9   : > { %3963 = vmatpush3.msra.mxu0 %v839_v52  ;;  %4002 = vmatpush3.msra.mxu1 %v943_v53  ;;  %v1197_v52 = vld [vmem:[#allocation8 + $0x28] sm:$0xff]  ;;  %v1222_v53 = vld [vmem:[#allocation8 + $0xd0] sm:$0xff] }
  0xaa   : > { %3964 = vmatprep.subr.mxu0 %v5198_v6  ;;  %4003 = vmatprep.subr.mxu1 %v5198_v6 }
  0xab   : > { %3965 = vmatpush3.msra.mxu0 %v838_v54  ;;  %4004 = vmatpush3.msra.mxu1 %v942_v55  ;;  %v1196_v54 = vld [vmem:[#allocation8 + $0x20] sm:$0xff]  ;;  %v1221_v55 = vld [vmem:[#allocation8 + $0xc8] sm:$0xff] }
  0xac   : > { %3966 = vmatprep.subr.mxu0 %v5198_v6  ;;  %4005 = vmatprep.subr.mxu1 %v5198_v6 }
  0xad   : > { %3967 = vmatpush3.msra.mxu0 %v837_v56  ;;  %4006 = vmatpush3.msra.mxu1 %v941_v57  ;;  %v1195_v56 = vld [vmem:[#allocation8 + $0x18] sm:$0xff]  ;;  %v1220_v57 = vld [vmem:[#allocation8 + $0xc0] sm:$0xff] }
  0xae   : > { %3968 = vmatprep.subr.mxu0 %v5198_v6  ;;  %4007 = vmatprep.subr.mxu1 %v5198_v6 }
  0xaf   : > { %3969 = vmatpush3.msra.mxu0 %v836_v58  ;;  %4008 = vmatpush3.msra.mxu1 %v940_v59  ;;  %v1194_v58 = vld [vmem:[#allocation8 + $0x10] sm:$0xff]  ;;  %v1219_v59 = vld [vmem:[#allocation8 + $0xb8] sm:$0xff] }
  0xb0   : > { %3901 = vmatprep.mubr.msk.f32.mxu0 %vm5199_vm0, %v5198_v6  ;;  %3970 = vmatprep.subr.mxu0 %v5198_v6 }
  0xb1   : > { %4009 = vmatprep.subr.mxu1 %v5198_v6  ;;  %3902 = vmatmul.mubr.f32.gmra.mxu0 %v648_v60  ;;  %v1193_v60 = vld [vmem:[#allocation8 + $0x8] sm:$0xff] }
  0xb2   : > { %3971 = vmatpush3.msra.mxu0 %v835_v61  ;;  %4010 = vmatpush3.msra.mxu1 %v939_v62  ;;  %v1218_v61 = vld [vmem:[#allocation8 + $0xb0] sm:$0xff]  ;;  %v1192_v62 = vld [vmem:[#allocation8] sm:$0xff] }
  0xb3   : > { %3942 = vmatprep.mubr.msk.f32.mxu1 %vm5199_vm0, %v5198_v6  ;;  %3972 = vmatprep.subr.mxu0 %v5198_v6 }
  0xb4   : > { %4011 = vmatprep.subr.mxu1 %v5198_v6  ;;  %3943 = vmatmul.mubr.f32.gmra.mxu1 %v629_v63  ;;  %v1217_v63 = vld [vmem:[#allocation8 + $0xa8] sm:$0xff] }
  0xb5   : > { %3973 = vmatpush3.msra.mxu0 %v834_v0  ;;  %4012 = vmatpush3.msra.mxu1 %v938_v1  ;;  %v1216_v0 = vld [vmem:[#allocation8 + $0xa0] sm:$0xff]  ;;  %v1215_v1 = vld [vmem:[#allocation8 + $0x98] sm:$0xff] }
  0xb6   : > { %3904 = vmatprep.mubr.msk.f32.mxu0 %vm5199_vm0, %v5198_v6  ;;  %3974 = vmatprep.subr.mxu0 %v5198_v6 }
  0xb7   : > { %4013 = vmatprep.subr.mxu1 %v5198_v6  ;;  %3905 = vmatmul.mubr.f32.gmra.mxu0 %v649_v2  ;;  %v1214_v2 = vld [vmem:[#allocation8 + $0x90] sm:$0xff] }
  0xb8   : > { %3975 = vmatpush3.msra.mxu0 %v833_v3  ;;  %4014 = vmatpush3.msra.mxu1 %v937_v4  ;;  %v1213_v3 = vld [vmem:[#allocation8 + $0x88] sm:$0xff]  ;;  %v1212_v4 = vld [vmem:[#allocation8 + $0x80] sm:$0xff] }
  0xb9   : > { %3945 = vmatprep.mubr.msk.f32.mxu1 %vm5199_vm0, %v5198_v6  ;;  %3976 = vmatprep.subr.mxu0 %v5198_v6 }
  0xba   : > { %4015 = vmatprep.subr.mxu1 %v5198_v6  ;;  %3946 = vmatmul.mubr.f32.gmra.mxu1 %v630_v5 }
  0xbb   : > { %3977 = vmatpush3.msra.mxu0 %v832_v7  ;;  %4016 = vmatpush3.msra.mxu1 %v936_v8 }
  0xbc   : > { %3978 = vmatprep.subr.mxu0 %v5198_v6  ;;  %4017 = vmatprep.subr.mxu1 %v5198_v6 }
  0xbd   : > { %3979 = vmatpush3.msra.mxu0 %v831_v9  ;;  %3980 = vmatprep.mubr.msk.f32.mxu0 %vm5199_vm0, %v5198_v6 }
  0xbe   : > { %4018 = vmatpush3.msra.mxu1 %v935_v10  ;;  %3981 = vmatmul.mubr.f32.vlgmr.msra.gmra.mxu0 %v827_v11 }
  0xbf   : > { %4019 = vmatprep.subr.mxu1 %v5198_v6  ;;  %4030 = vmatprep.subr.mxu0 %v5198_v6 }
  0xc0   : > { %4020 = vmatpush3.msra.mxu1 %v934_v12  ;;  %4021 = vmatprep.mubr.msk.f32.mxu1 %vm5199_vm0, %v5198_v6 }
  0xc1   : > { %4031 = vmatpush3.msra.mxu0 %v1052_v13  ;;  %4022 = vmatmul.mubr.f32.vlgmr.msra.gmra.mxu1 %v930_v14 }
  0xc2   : > { %4032 = vmatprep.subr.mxu0 %v5198_v6  ;;  %3983 = vmatprep.mubr.msk.f32.mxu0 %vm5199_vm0, %v5198_v6 }
  0xc3   : > { %4033 = vmatpush3.msra.mxu0 %v1051_v15  ;;  %4024 = vmatprep.mubr.msk.f32.mxu1 %vm5199_vm0, %v5198_v6 }
  0xc4   : > { %3984 = vmatmul.mubr.f32.gmra.mxu0 %v828_v16  ;;  %4034 = vmatprep.subr.mxu0 %v5198_v6 }
  0xc5   : > { %4035 = vmatpush3.msra.mxu0 %v1050_v17  ;;  %4025 = vmatmul.mubr.f32.gmra.mxu1 %v931_v18 }
  0xc6   : > { %4036 = vmatprep.subr.mxu0 %v5198_v6  ;;  %3986 = vmatprep.mubr.msk.f32.mxu0 %vm5199_vm0, %v5198_v6 }
  0xc7   : > { %4037 = vmatpush3.msra.mxu0 %v1049_v19  ;;  %4027 = vmatprep.mubr.msk.f32.mxu1 %vm5199_vm0, %v5198_v6 }
  0xc8   : > { %3987 = vmatmul.mubr.f32.gmra.mxu0 %v829_v20  ;;  %4038 = vmatprep.subr.mxu0 %v5198_v6 }
  0xc9   : > { %4039 = vmatpush3.msra.mxu0 %v1048_v21  ;;  %4028 = vmatmul.mubr.f32.gmra.mxu1 %v932_v22 }
  0xca   : > { %4040 = vmatprep.subr.mxu0 %v5198_v6  ;;  %4062 = vmatprep.mubr.msk.f32.mxu0 %vm5199_vm0, %v5198_v6 }
  0xcb   : > { %4041 = vmatpush3.msra.mxu0 %v1047_v23  ;;  %4071 = vmatprep.subr.mxu1 %v5198_v6 }
  0xcc   : > { %4042 = vmatprep.subr.mxu0 %v5198_v6  ;;  %4103 = vmatprep.mubr.msk.f32.mxu1 %vm5199_vm0, %v5198_v6 }
  0xcd   : > { %4043 = vmatpush3.msra.mxu0 %v1046_v24  ;;  %4072 = vmatpush3.msra.mxu1 %v1227_v43 }
  0xce   : > { %4044 = vmatprep.subr.mxu0 %v5198_v6  ;;  %4073 = vmatprep.subr.mxu1 %v5198_v6 }
  0xcf   : > { %4045 = vmatpush3.msra.mxu0 %v1045_v25  ;;  %4074 = vmatpush3.msra.mxu1 %v1226_v45 }
  0xd0   : > { %4046 = vmatprep.subr.mxu0 %v5198_v6  ;;  %4075 = vmatprep.subr.mxu1 %v5198_v6 }
  0xd1   : > { %4047 = vmatpush3.msra.mxu0 %v1044_v26  ;;  %4076 = vmatpush3.msra.mxu1 %v1225_v47 }
  0xd2   : > { %4048 = vmatprep.subr.mxu0 %v5198_v6  ;;  %4077 = vmatprep.subr.mxu1 %v5198_v6 }
  0xd3   : > { %4049 = vmatpush3.msra.mxu0 %v1043_v27  ;;  %4078 = vmatpush3.msra.mxu1 %v1224_v49 }
  0xd4   : > { %4050 = vmatprep.subr.mxu0 %v5198_v6  ;;  %4079 = vmatprep.subr.mxu1 %v5198_v6 }
  0xd5   : > { %4051 = vmatpush3.msra.mxu0 %v1042_v28  ;;  %4080 = vmatpush3.msra.mxu1 %v1223_v51  ;;  %v1164_v51 = vstv %s3394_s4  ;;  %s5928_s4 = sld [smem:[#allocation34_spill]] }
  0xd6   : > { %4052 = vmatprep.subr.mxu0 %v5198_v6  ;;  %4081 = vmatprep.subr.mxu1 %v5198_v6 }
  0xd7   : > { %4053 = vmatpush3.msra.mxu0 %v1041_v29  ;;  %4082 = vmatpush3.msra.mxu1 %v1222_v53 }
  0xd8   : > { %4054 = vmatprep.subr.mxu0 %v5198_v6  ;;  %4083 = vmatprep.subr.mxu1 %v5198_v6 }
  0xd9   : > { %4055 = vmatpush3.msra.mxu0 %v1040_v30  ;;  %4084 = vmatpush3.msra.mxu1 %v1221_v55 }
  0xda   : > { %4056 = vmatprep.subr.mxu0 %v5198_v6  ;;  %4085 = vmatprep.subr.mxu1 %v5198_v6 }
  0xdb   : > { %4057 = vmatpush3.msra.mxu0 %v1039_v31  ;;  %4086 = vmatpush3.msra.mxu1 %v1220_v57 }
  0xdc   : > { %4058 = vmatprep.subr.mxu0 %v5198_v6  ;;  %4087 = vmatprep.subr.mxu1 %v5198_v6 }
  0xdd   : > { %4059 = vmatpush3.msra.mxu0 %v1038_v32  ;;  %4088 = vmatpush3.msra.mxu1 %v1219_v59 }
  0xde   : > { %4060 = vmatprep.subr.mxu0 %v5198_v6  ;;  %4089 = vmatprep.subr.mxu1 %v5198_v6 }
  0xdf   : > { %4061 = vmatpush3.msra.mxu0 %v1037_v33  ;;  %4090 = vmatpush3.msra.mxu1 %v1218_v61 }
  0xe0   : > { %4063 = vmatmul.mubr.f32.vlgmr.msra.gmra.mxu0 %v1033_v34  ;;  %4112 = vmatprep.subr.mxu0 %v5198_v6 }
  0xe1   : > { %4065 = vmatprep.mubr.msk.f32.mxu0 %vm5199_vm0, %v5198_v6  ;;  %4113 = vmatpush3.msra.mxu0 %v1207_v37 }
  0xe2   : > { %4114 = vmatprep.subr.mxu0 %v5198_v6  ;;  %4091 = vmatprep.subr.mxu1 %v5198_v6 }
  0xe3   : > { %4115 = vmatpush3.msra.mxu0 %v1206_v38  ;;  %4092 = vmatpush3.msra.mxu1 %v1217_v63 }
  0xe4   : > { %4066 = vmatmul.mubr.f32.gmra.mxu0 %v1034_v35  ;;  %4116 = vmatprep.subr.mxu0 %v5198_v6 }
  0xe5   : > { %4068 = vmatprep.mubr.msk.f32.mxu0 %vm5199_vm0, %v5198_v6  ;;  %4117 = vmatpush3.msra.mxu0 %v1205_v39  ;;  %v3393_v39 = vld [vmem:[%s5881_s3] ss:$0 sm:$0xff] }
  0xe6   : > { %4118 = vmatprep.subr.mxu0 %v5198_v6  ;;  %4093 = vmatprep.subr.mxu1 %v5198_v6 }
  0xe7   : > { %4119 = vmatpush3.msra.mxu0 %v1204_v40  ;;  %4094 = vmatpush3.msra.mxu1 %v1216_v0  ;;  %v1160_v40 = vlaneseq }
  0xe8   : > { %4069 = vmatmul.mubr.f32.gmra.mxu0 %v1035_v36  ;;  %4120 = vmatprep.subr.mxu0 %v5198_v6  ;;  %v3392_v36 = vld [vmem:[%s5880_s2] ss:$0 sm:$0xff] }
  0xe9   : > { %4144 = vmatprep.mubr.msk.f32.mxu0 %vm5199_vm0, %v5198_v6  ;;  %4121 = vmatpush3.msra.mxu0 %v1203_v41 }
  0xea   : > { %4122 = vmatprep.subr.mxu0 %v5198_v6  ;;  %4095 = vmatprep.subr.mxu1 %v5198_v6 }
  0xeb   : > { %4123 = vmatpush3.msra.mxu0 %v1202_v42  ;;  %4096 = vmatpush3.msra.mxu1 %v1215_v1  ;;  %v1510_v1 = vld [vmem:[#allocation8 + $0x1f8] sm:$0xff] }
  0xec   : > { %4124 = vmatprep.subr.mxu0 %v5198_v6  ;;  %4097 = vmatprep.subr.mxu1 %v5198_v6 }
  0xed   : > { %4125 = vmatpush3.msra.mxu0 %v1201_v44  ;;  %4098 = vmatpush3.msra.mxu1 %v1214_v2 }
  0xee   : > { %4126 = vmatprep.subr.mxu0 %v5198_v6  ;;  %4099 = vmatprep.subr.mxu1 %v5198_v6 }
  0xef   : > { %4127 = vmatpush3.msra.mxu0 %v1200_v46  ;;  %4100 = vmatpush3.msra.mxu1 %v1213_v3  ;;  %v1509_v3 = vld [vmem:[#allocation8 + $0x1f0] sm:$0xff] }
  0xf0   : > { %4128 = vmatprep.subr.mxu0 %v5198_v6  ;;  %4101 = vmatprep.subr.mxu1 %v5198_v6 }
  0xf1   : > { %4129 = vmatpush3.msra.mxu0 %v1199_v48  ;;  %4102 = vmatpush3.msra.mxu1 %v1212_v4  ;;  %v5612_v48 = vshrl.u32 %v1160_v40, 7  ;;  %v1394_v40 = vld [vmem:[#allocation8 + $0x110] sm:$0xff] }
  0xf2   : > { %4130 = vmatprep.subr.mxu0 %v5198_v6  ;;  %4153 = vmatprep.subr.mxu1 %v5198_v6 }
  0xf3   : > { %4131 = vmatpush3.msra.mxu0 %v1198_v50 }
  0xf4   : > { %4132 = vmatprep.subr.mxu0 %v5198_v6 }
  0xf5   : > { %4133 = vmatpush3.msra.mxu0 %v1197_v52 }
  0xf6   : > { %4134 = vmatprep.subr.mxu0 %v5198_v6 }
  0xf7   : > { %4135 = vmatpush3.msra.mxu0 %v1196_v54 }
  0xf8   : > { %4136 = vmatprep.subr.mxu0 %v5198_v6 }
  0xf9   : > { %4137 = vmatpush3.msra.mxu0 %v1195_v56  ;;  %v1165_v56 = vadd.s32 %v1164_v51, %v5612_v48 }
  0xfa   : > { %4138 = vmatprep.subr.mxu0 %v5198_v6 }
  0xfb   : > { %4139 = vmatpush3.msra.mxu0 %v1194_v58  ;;  %v5616_v58 = vadd.s32 8, %v5612_v48  ;;  %vm1168_vm1 = vcmp.ge.s32.totalorder %v1165_v56, 0  ;;  %vm1171_vm2 = vcmp.lt.s32.totalorder %v1165_v56, 16  ;;  %v1607_v56 = vld [vmem:[#allocation8 + $0x248] sm:$0xff] }
  0xfc   : > { %4140 = vmatprep.subr.mxu0 %v5198_v6  ;;  %vm1174_vm3 = vmand %vm1168_vm1, %vm1171_vm2 }
  0xfd   : > { %4141 = vmatpush3.msra.mxu0 %v1193_v60  ;;  %v1166_v61 = vadd.s32 %v1164_v51, %v5616_v58 }
  0xfe   : > { %4142 = vmatprep.subr.mxu0 %v5198_v6 }
  0xff   : > { %4143 = vmatpush3.msra.mxu0 %v1192_v62  ;;  %v5620_v62 = vadd.s32 16, %v5612_v48  ;;  %vm1169_vm4 = vcmp.ge.s32.totalorder %v1166_v61, 0  ;;  %vm1172_vm5 = vcmp.lt.s32.totalorder %v1166_v61, 16  ;;  %v1603_v61 = vld [vmem:[#allocation8 + $0x228] sm:$0xff] }
 0x100   : > { %4194 = vmatprep.subr.mxu0 %v5198_v6  ;;  %vm1175_vm6 = vmand %vm1169_vm4, %vm1172_vm5 }
 0x101   : > { %v1167_v63 = vadd.s32 %v1164_v51, %v5620_v62 }
 0x103   : > { %vm1170_vm7 = vcmp.ge.s32.totalorder %v1167_v63, 0  ;;  %vm1173_vm8 = vcmp.lt.s32.totalorder %v1167_v63, 16  ;;  %v1602_v63 = vld [vmem:[#allocation8 + $0x220] sm:$0xff] }
 0x104   : > { %vm1176_vm9 = vmand %vm1170_vm7, %vm1173_vm8 }
 0x159   : > { %v733_v5 = vpop.f32.mrf.mxu0 }
 0x15b   : > { %v813_v7 = vpop.f32.mrf.mxu1  ;;  %v3900_v8 = vpop.f32.mrf.mxu0 }
 0x15c   : > { %v814_v30 = vadd.f32 %v813_v7, %v733_v5  ;;  %v1508_v5 = vld [vmem:[#allocation8 + $0x1e8] sm:$0xff]  ;;  %v1507_v8 = vld [vmem:[#allocation8 + $0x1e0] sm:$0xff] }
 0x15d   : > { %v3941_v9 = vpop.f32.mrf.mxu1 }
 0x171   : > { %v738_v10 = vpop.f32.mrf.mxu0 }
 0x173   : > { %v3903_v11 = vpop.f32.mrf.mxu0 }
 0x174   : > { %v818_v12 = vpop.f32.mrf.mxu1 }
 0x175   : > { %v819_v32 = vadd.f32 %v818_v12, %v738_v10  ;;  %v1506_v10 = vld [vmem:[#allocation8 + $0x1d8] sm:$0xff]  ;;  %v1505_v12 = vld [vmem:[#allocation8 + $0x1d0] sm:$0xff] }
 0x176   : > { %v3944_v13 = vpop.f32.mrf.mxu1 }
 0x177   : > { %v743_v14 = vpop.f32.mrf.mxu0  ;;  %v1407_v13 = vld [vmem:[#allocation8 + $0x178] sm:$0xff] }
 0x179   : > { %v3906_v15 = vpop.f32.mrf.mxu0 }
 0x17a   : > { %v823_v16 = vpop.f32.mrf.mxu1  ;;  %v1504_v15 = vld [vmem:[#allocation8 + $0x1c8] sm:$0xff] }
 0x17b   : > { %v824_v37 = vadd.f32 %v823_v16, %v743_v14  ;;  %v1406_v16 = vld [vmem:[#allocation8 + $0x170] sm:$0xff] }
 0x17c   : > { %v3947_v17 = vpop.f32.mrf.mxu1 }
 0x17d   : > { %v1405_v17 = vld [vmem:[#allocation8 + $0x168] sm:$0xff] }
 0x17e   : > { %v913_v18 = vpop.f32.mrf.mxu0 }
 0x17f   : > { %v927_v31 = vadd.f32 %v913_v18, %v814_v30  ;;  %v1499_v30 = vld [vmem:[#allocation8 + $0x1a0] sm:$0xff] }
 0x180   : > { %v3982_v19 = vpop.f32.mrf.mxu0 }
 0x181   : > { %v1016_v20 = vpop.f32.mrf.mxu1 }
 0x182   : > { %v1030_v33 = vadd.f32 %v1016_v20, %v927_v31  ;;  %v1404_v20 = vld [vmem:[#allocation8 + $0x160] sm:$0xff]  ;;  %v1399_v31 = vld [vmem:[#allocation8 + $0x138] sm:$0xff] }
 0x183   : > { %v4023_v21 = vpop.f32.mrf.mxu1 }
 0x184   : > { %v918_v22 = vpop.f32.mrf.mxu0  ;;  %v1503_v21 = vld [vmem:[#allocation8 + $0x1c0] sm:$0xff] }
 0x185   : > { %v1021_v23 = vpop.f32.mrf.mxu1  ;;  %v928_v34 = vadd.f32 %v918_v22, %v819_v32  ;;  %v1403_v22 = vld [vmem:[#allocation8 + $0x158] sm:$0xff] }
 0x186   : > { %v3985_v24 = vpop.f32.mrf.mxu0  ;;  %v1498_v32 = vld [vmem:[#allocation8 + $0x198] sm:$0xff] }
 0x187   : > { %v4026_v25 = vpop.f32.mrf.mxu1  ;;  %v1031_v42 = vadd.f32 %v1021_v23, %v928_v34  ;;  %v1502_v24 = vld [vmem:[#allocation8 + $0x1b8] sm:$0xff]  ;;  %v1497_v34 = vld [vmem:[#allocation8 + $0x190] sm:$0xff] }
 0x188   : > { %v923_v26 = vpop.f32.mrf.mxu0  ;;  %v1402_v25 = vld [vmem:[#allocation8 + $0x150] sm:$0xff] }
 0x189   : > { %v1026_v27 = vpop.f32.mrf.mxu1  ;;  %v929_v43 = vadd.f32 %v923_v26, %v824_v37  ;;  %v1501_v26 = vld [vmem:[#allocation8 + $0x1b0] sm:$0xff]  ;;  %v1396_v37 = vld [vmem:[#allocation8 + $0x120] sm:$0xff] }
 0x18a   : > { %v3988_v28 = vpop.f32.mrf.mxu0 }
 0x18b   : > { %v4029_v29 = vpop.f32.mrf.mxu1  ;;  %v1032_v50 = vadd.f32 %v1026_v27, %v929_v43  ;;  %v1401_v27 = vld [vmem:[#allocation8 + $0x148] sm:$0xff]  ;;  %v1392_v43 = vld [vmem:[#allocation8 + $0x100] sm:$0xff] }
 0x18c   : > { %v1500_v28 = vld [vmem:[#allocation8 + $0x1a8] sm:$0xff]  ;;  %v1400_v29 = vld [vmem:[#allocation8 + $0x140] sm:$0xff] }
 0x1a0   : > { %v1119_v35 = vpop.f32.mrf.mxu0 }
 0x1a1   : > { %v1133_v38 = vadd.f32 %v1119_v35, %v1030_v33  ;;  %v1398_v33 = vld [vmem:[#allocation8 + $0x130] sm:$0xff]  ;;  %v1397_v35 = vld [vmem:[#allocation8 + $0x128] sm:$0xff] }
 0x1a2   : > { %v4064_v41 = vpop.f32.mrf.mxu0 }
 0x1a3   : > { %v1143_v44 = vmul.f32 %v3392_v36, %v1133_v38  ;;  %v1495_v38 = vld [vmem:[#allocation8 + $0x180] sm:$0xff] }
 0x1a4   : > { %v1124_v45 = vpop.f32.mrf.mxu0 }
 0x1a5   : > { %v1153_v46 = vadd.f32 %v3393_v39, %v1143_v44  ;;  %v1134_v47 = vadd.f32 %v1124_v45, %v1031_v42  ;;  %v1393_v42 = vld [vmem:[#allocation8 + $0x108] sm:$0xff]  ;;  %v1613_v45 = vld [vmem:[#allocation8 + $0x278] sm:$0xff] }
 0x1a6   : > { %v4067_v49 = vpop.f32.mrf.mxu0 }
 0x1a7   : > { %4927 = vtanh.f32 %v1153_v46  ;;  %v1144_v52 = vmul.f32 %v3392_v36, %v1134_v47  ;;  %v1612_v47 = vld [vmem:[#allocation8 + $0x270] sm:$0xff] }
 0x1a8   : > { %v1129_v53 = vpop.f32.mrf.mxu0 }
 0x1a9   : > { %v1154_v54 = vadd.f32 %v3393_v39, %v1144_v52  ;;  %v1135_v55 = vadd.f32 %v1129_v53, %v1032_v50  ;;  %v1611_v50 = vld [vmem:[#allocation8 + $0x268] sm:$0xff]  ;;  %v1610_v52 = vld [vmem:[#allocation8 + $0x260] sm:$0xff]  ;;  %v1609_v53 = vld [vmem:[#allocation8 + $0x258] sm:$0xff] }
 0x1aa   : > { %v4070_v57 = vpop.f32.mrf.mxu0 }
 0x1ab   : > { %4929 = vtanh.f32 %v1154_v54  ;;  %v1145_v59 = vmul.f32 %v3392_v36, %v1135_v55  ;;  %v1496_v36 = vld [vmem:[#allocation8 + $0x188] sm:$0xff]  ;;  %v1608_v55 = vld [vmem:[#allocation8 + $0x250] sm:$0xff]  ;;  %v1606_v57 = vld [vmem:[#allocation8 + $0x240] sm:$0xff] }
 0x1ad   : > { %v1155_v60 = vadd.f32 %v3393_v39, %v1145_v59  ;;  %v1395_v39 = vld [vmem:[#allocation8 + $0x118] sm:$0xff] }
 0x1ae   : > { %v1605_v59 = vld [vmem:[#allocation8 + $0x238] sm:$0xff] }
 0x1af   : > { %4931 = vtanh.f32 %v1155_v60  ;;  %v1604_v60 = vld [vmem:[#allocation8 + $0x230] sm:$0xff] }
 0x1b4   : > { %v4928_v0 = vpop.eup %4927 }
 0x1b5   : > { %v1183_v2 = vsel %vm1174_vm3, %v4928_v0, 0.0  ;;  %4947 = vmatmul.mubr.msk.f32.vlgmr.msra.gmra.mxu0 %vm1174_vm3, %v4928_v0  ;;  %v1601_v0 = vld [vmem:[#allocation8 + $0x218] sm:$0xff] }
 0x1b6   : > { %1186 = vst [vmem:[#allocation3] sm:$0xff] %v1183_v2  ;;  %4195 = vmatpush3.msra.mxu0 %v1510_v1  ;;  %4147 = vmatprep.mubr.msk.f32.mxu0 %vm5199_vm0, %v5198_v6  ;;  %v1600_v1 = vld [vmem:[#allocation8 + $0x210] sm:$0xff]  ;;  %v1599_v2 = vld [vmem:[#allocation8 + $0x208] sm:$0xff] }
 0x1b7   : > { %4196 = vmatprep.subr.mxu0 %v5198_v6 }
 0x1b8   : > { %v4930_v4 = vpop.eup %4929  ;;  %4197 = vmatpush3.msra.mxu0 %v1509_v3  ;;  %v1598_v3 = vld [vmem:[#allocation8 + $0x200] sm:$0xff] }
 0x1b9   : > { %v1184_v7 = vsel %vm1175_vm6, %v4930_v4, 0.0  ;;  %4198 = vmatprep.subr.mxu0 %v5198_v6  ;;  %4948 = vmatmul.mubr.msk.f32.gmra.mxu0 %vm1175_vm6, %v4930_v4 }
 0x1ba   : > { %1187 = vst [vmem:[#allocation3 + $0x8] sm:$0xff] %v1184_v7  ;;  %4199 = vmatpush3.msra.mxu0 %v1508_v5  ;;  %4150 = vmatprep.mubr.msk.f32.mxu0 %vm5199_vm0, %v5198_v6 }
 0x1bb   : > { %4200 = vmatprep.subr.mxu0 %v5198_v6 }
 0x1bc   : > { %v4932_v9 = vpop.eup %4931  ;;  %4201 = vmatpush3.msra.mxu0 %v1507_v8  ;;  %v1763_v8 = vld [vmem:[#allocation10 + $0x78] sm:$0xff] }
 0x1bd   : > { %v1185_v11 = vsel %vm1176_vm9, %v4932_v9, 0.0  ;;  %4202 = vmatprep.subr.mxu0 %v5198_v6  ;;  %v1762_v9 = vld [vmem:[#allocation10 + $0x70] sm:$0xff] }
 0x1be   : > { %1188 = vst [vmem:[#allocation3 + $0x10] sm:$0xff] %v1185_v11  ;;  %4203 = vmatpush3.msra.mxu0 %v1506_v10  ;;  %v1761_v10 = vld [vmem:[#allocation10 + $0x68] sm:$0xff]  ;;  %v1760_v11 = vld [vmem:[#allocation10 + $0x60] sm:$0xff] }
 0x1bf   : > { %4204 = vmatprep.subr.mxu0 %v5198_v6 }
 0x1c0   : > { %4205 = vmatpush3.msra.mxu0 %v1505_v12  ;;  %v1759_v12 = vld [vmem:[#allocation10 + $0x58] sm:$0xff] }
 0x1c1   : > { %v1208_v14 = vld [vmem:[#allocation3 + $0x1] sm:$0xff]  ;;  %4206 = vmatprep.subr.mxu0 %v5198_v6 }
 0x1c2   : > { %4104 = vmatmul.mubr.f32.vlgmr.msra.gmra.mxu1 %v1208_v14  ;;  %4207 = vmatpush3.msra.mxu0 %v1504_v15  ;;  %v1491_v41 = vld [vmem:[#allocation3 + $0x3] sm:$0xff]  ;;  %v1782_v14 = vld [vmem:[#allocation10 + $0xf8] sm:$0xff] }
 0x1c3   : > { %4154 = vmatpush3.msra.mxu1 %v1407_v13  ;;  %4106 = vmatprep.mubr.msk.f32.mxu1 %vm5199_vm0, %v5198_v6  ;;  %v1388_v46 = vld [vmem:[#allocation3 + $0x2] sm:$0xff]  ;;  %v1758_v13 = vld [vmem:[#allocation10 + $0x50] sm:$0xff] }
 0x1c4   : > { %4155 = vmatprep.subr.mxu1 %v5198_v6  ;;  %4208 = vmatprep.subr.mxu0 %v5198_v6  ;;  %v1594_v4 = vld [vmem:[#allocation3 + $0x4] sm:$0xff] }
 0x1c5   : > { %4156 = vmatpush3.msra.mxu1 %v1406_v16  ;;  %v1209_v18 = vld [vmem:[#allocation3 + $0x9] sm:$0xff]  ;;  %v1210_v23 = vld [vmem:[#allocation3 + $0x11] sm:$0xf]  ;;  %4209 = vmatpush3.msra.mxu0 %v1503_v21 }
 0x1c6   : > { %v1191_v19 = vld [vmem:[#allocation3 + $0x10] sm:$0xf]  ;;  %4157 = vmatprep.subr.mxu1 %v5198_v6  ;;  %4107 = vmatmul.mubr.f32.gmra.mxu1 %v1209_v18  ;;  %v1596_v7 = vld [vmem:[#allocation3 + $0x14] sm:$0xf]  ;;  %v1757_v15 = vld [vmem:[#allocation10 + $0x48] sm:$0xff] }
 0x1c7   : > { %4151 = vmatmul.mubr.f32.gmra.mxu0 %v1191_v19  ;;  %4158 = vmatpush3.msra.mxu1 %v1405_v17  ;;  %v1492_v44 = vld [vmem:[#allocation3 + $0xb] sm:$0xff]  ;;  %v1493_v49 = vld [vmem:[#allocation3 + $0x13] sm:$0xf]  ;;  %v1756_v17 = vld [vmem:[#allocation10 + $0x40] sm:$0xff] }
 0x1c8   : > { %4159 = vmatprep.subr.mxu1 %v5198_v6  ;;  %4109 = vmatprep.mubr.msk.f32.mxu1 %vm5199_vm0, %v5198_v6  ;;  %v1389_v51 = vld [vmem:[#allocation3 + $0xa] sm:$0xff]  ;;  %v1390_v54 = vld [vmem:[#allocation3 + $0x12] sm:$0xf]  ;;  %v1755_v19 = vld [vmem:[#allocation10 + $0x38] sm:$0xff] }
 0x1c9   : > { %4160 = vmatpush3.msra.mxu1 %v1404_v20  ;;  %4210 = vmatprep.subr.mxu0 %v5198_v6  ;;  %v1595_v5 = vld [vmem:[#allocation3 + $0xc] sm:$0xff]  ;;  %v1779_v20 = vld [vmem:[#allocation10 + $0xe0] sm:$0xff] }
 0x1ca   : > { %4161 = vmatprep.subr.mxu1 %v5198_v6  ;;  %4110 = vmatmul.mubr.f32.gmra.mxu1 %v1210_v23  ;;  %v1781_v16 = vld [vmem:[#allocation10 + $0xf0] sm:$0xff]  ;;  %v1780_v18 = vld [vmem:[#allocation10 + $0xe8] sm:$0xff] }
 0x1cb   : > { %4162 = vmatpush3.msra.mxu1 %v1403_v22  ;;  %4211 = vmatpush3.msra.mxu0 %v1502_v24  ;;  %v1754_v21 = vld [vmem:[#allocation10 + $0x30] sm:$0xff]  ;;  %v1778_v22 = vld [vmem:[#allocation10 + $0xd8] sm:$0xff]  ;;  %v1753_v23 = vld [vmem:[#allocation10 + $0x28] sm:$0xff] }
 0x1cc   : > { %4163 = vmatprep.subr.mxu1 %v5198_v6  ;;  %4212 = vmatprep.subr.mxu0 %v5198_v6  ;;  %v1777_v24 = vld [vmem:[#allocation10 + $0xd0] sm:$0xff] }
 0x1cd   : > { %4164 = vmatpush3.msra.mxu1 %v1402_v25  ;;  %4213 = vmatpush3.msra.mxu0 %v1501_v26  ;;  %v1752_v25 = vld [vmem:[#allocation10 + $0x20] sm:$0xff]  ;;  %v1776_v26 = vld [vmem:[#allocation10 + $0xc8] sm:$0xff] }
 0x1ce   : > { %4165 = vmatprep.subr.mxu1 %v5198_v6  ;;  %4214 = vmatprep.subr.mxu0 %v5198_v6 }
 0x1cf   : > { %4166 = vmatpush3.msra.mxu1 %v1401_v27  ;;  %4215 = vmatpush3.msra.mxu0 %v1500_v28  ;;  %v1751_v27 = vld [vmem:[#allocation10 + $0x18] sm:$0xff]  ;;  %v1775_v28 = vld [vmem:[#allocation10 + $0xc0] sm:$0xff] }
 0x1d0   : > { %4167 = vmatprep.subr.mxu1 %v5198_v6  ;;  %4216 = vmatprep.subr.mxu0 %v5198_v6 }
 0x1d1   : > { %4168 = vmatpush3.msra.mxu1 %v1400_v29  ;;  %4217 = vmatpush3.msra.mxu0 %v1499_v30  ;;  %v1750_v29 = vld [vmem:[#allocation10 + $0x10] sm:$0xff]  ;;  %v1774_v30 = vld [vmem:[#allocation10 + $0xb8] sm:$0xff] }
 0x1d2   : > { %4169 = vmatprep.subr.mxu1 %v5198_v6  ;;  %4218 = vmatprep.subr.mxu0 %v5198_v6 }
 0x1d3   : > { %4170 = vmatpush3.msra.mxu1 %v1399_v31  ;;  %4219 = vmatpush3.msra.mxu0 %v1498_v32  ;;  %v1749_v31 = vld [vmem:[#allocation10 + $0x8] sm:$0xff]  ;;  %v1773_v32 = vld [vmem:[#allocation10 + $0xb0] sm:$0xff] }
 0x1d4   : > { %4171 = vmatprep.subr.mxu1 %v5198_v6  ;;  %4220 = vmatprep.subr.mxu0 %v5198_v6 }
 0x1d5   : > { %4172 = vmatpush3.msra.mxu1 %v1398_v33  ;;  %4221 = vmatpush3.msra.mxu0 %v1497_v34  ;;  %v1748_v33 = vld [vmem:[#allocation10] sm:$0xff]  ;;  %v1772_v34 = vld [vmem:[#allocation10 + $0xa8] sm:$0xff] }
 0x1d6   : > { %4173 = vmatprep.subr.mxu1 %v5198_v6  ;;  %4222 = vmatprep.subr.mxu0 %v5198_v6 }
 0x1d7   : > { %4174 = vmatpush3.msra.mxu1 %v1397_v35  ;;  %4223 = vmatpush3.msra.mxu0 %v1496_v36  ;;  %v1771_v35 = vld [vmem:[#allocation10 + $0xa0] sm:$0xff]  ;;  %v5695_v36 = vld [vmem:[#allocation10 + $0x1f8] sm:$0xff] }
 0x1d8   : > { %4175 = vmatprep.subr.mxu1 %v5198_v6  ;;  %4224 = vmatprep.subr.mxu0 %v5198_v6 }
 0x1d9   : > { %4176 = vmatpush3.msra.mxu1 %v1396_v37  ;;  %4225 = vmatpush3.msra.mxu0 %v1495_v38  ;;  %v1770_v37 = vld [vmem:[#allocation10 + $0x98] sm:$0xff]  ;;  %v1769_v38 = vld [vmem:[#allocation10 + $0x90] sm:$0xff] }
 0x1da   : > { %4177 = vmatprep.subr.mxu1 %v5198_v6  ;;  %4226 = vmatprep.mubr.msk.f32.mxu0 %vm5199_vm0, %v5198_v6 }
 0x1db   : > { %4178 = vmatpush3.msra.mxu1 %v1395_v39  ;;  %4227 = vmatmul.mubr.f32.vlgmr.msra.gmra.mxu0 %v1491_v41  ;;  %v1768_v39 = vld [vmem:[#allocation10 + $0x88] sm:$0xff]  ;;  %v5698_v41 = vld [vmem:[#allocation10 + $0x178] sm:$0xff] }
 0x1dc   : > { %4179 = vmatprep.subr.mxu1 %v5198_v6  ;;  %4185 = vmatprep.mubr.msk.f32.mxu1 %vm5199_vm0, %v5198_v6 }
 0x1dd   : > { %4180 = vmatpush3.msra.mxu1 %v1394_v40  ;;  %4229 = vmatprep.mubr.msk.f32.mxu0 %vm5199_vm0, %v5198_v6  ;;  %v1767_v40 = vld [vmem:[#allocation10 + $0x80] sm:$0xff] }
 0x1de   : > { %4181 = vmatprep.subr.mxu1 %v5198_v6  ;;  %4276 = vmatprep.subr.mxu0 %v1782_v14 }
 0x1df   : > { %4182 = vmatpush3.msra.mxu1 %v1393_v42  ;;  %4230 = vmatmul.mubr.f32.gmra.mxu0 %v1492_v44 }
 0x1e0   : > { %4183 = vmatprep.subr.mxu1 %v5198_v6  ;;  %4232 = vmatprep.mubr.msk.f32.mxu0 %vm5199_vm0, %v5198_v6 }
 0x1e1   : > { %4184 = vmatpush3.msra.mxu1 %v1392_v43  ;;  %4277 = vmatpush3.msra.mxu0 %v1782_v14 }
 0x1e2   : > { %4186 = vmatmul.mubr.f32.vlgmr.msra.gmra.mxu1 %v1388_v46  ;;  %4235 = vmatprep.subr.mxu1 %v5198_v6 }
 0x1e3   : > { %4236 = vmatpush3.msra.mxu1 %v1613_v45  ;;  %4188 = vmatprep.mubr.msk.f32.mxu1 %vm5199_vm0, %v5198_v6 }
 0x1e4   : > { %4237 = vmatprep.subr.mxu1 %v5198_v6  ;;  %4233 = vmatmul.mubr.f32.gmra.mxu0 %v1493_v49 }
 0x1e5   : > { %4238 = vmatpush3.msra.mxu1 %v1612_v47  ;;  %4278 = vmatprep.subr.mxu0 %v1781_v16 }
 0x1e6   : > { %4189 = vmatmul.mubr.f32.gmra.mxu1 %v1389_v51  ;;  %4239 = vmatprep.subr.mxu1 %v5198_v6 }
 0x1e7   : > { %4240 = vmatpush3.msra.mxu1 %v1611_v50  ;;  %4191 = vmatprep.mubr.msk.f32.mxu1 %vm5199_vm0, %v5198_v6 }
 0x1e8   : > { %4241 = vmatprep.subr.mxu1 %v5198_v6  ;;  %4279 = vmatpush3.msra.mxu0 %v1781_v16 }
 0x1e9   : > { %4242 = vmatpush3.msra.mxu1 %v1610_v52  ;;  %4280 = vmatprep.subr.mxu0 %v1780_v18 }
 0x1ea   : > { %4192 = vmatmul.mubr.f32.gmra.mxu1 %v1390_v54  ;;  %4243 = vmatprep.subr.mxu1 %v5198_v6 }
 0x1eb   : > { %4244 = vmatpush3.msra.mxu1 %v1609_v53  ;;  %4267 = vmatprep.mubr.msk.f32.mxu1 %vm5199_vm0, %v5198_v6 }
 0x1ec   : > { %4245 = vmatprep.subr.mxu1 %v5198_v6  ;;  %4281 = vmatpush3.msra.mxu0 %v1780_v18 }
 0x1ed   : > { %4246 = vmatpush3.msra.mxu1 %v1608_v55  ;;  %4282 = vmatprep.subr.mxu0 %v1779_v20 }
 0x1ee   : > { %4247 = vmatprep.subr.mxu1 %v5198_v6  ;;  %4283 = vmatpush3.msra.mxu0 %v1779_v20 }
 0x1ef   : > { %4248 = vmatpush3.msra.mxu1 %v1607_v56  ;;  %4284 = vmatprep.subr.mxu0 %v1778_v22 }
 0x1f0   : > { %4249 = vmatprep.subr.mxu1 %v5198_v6  ;;  %4285 = vmatpush3.msra.mxu0 %v1778_v22 }
 0x1f1   : > { %4250 = vmatpush3.msra.mxu1 %v1606_v57  ;;  %4286 = vmatprep.subr.mxu0 %v1777_v24 }
 0x1f2   : > { %4251 = vmatprep.subr.mxu1 %v5198_v6  ;;  %4287 = vmatpush3.msra.mxu0 %v1777_v24 }
 0x1f3   : > { %4252 = vmatpush3.msra.mxu1 %v1605_v59  ;;  %4288 = vmatprep.subr.mxu0 %v1776_v26 }
 0x1f4   : > { %4253 = vmatprep.subr.mxu1 %v5198_v6  ;;  %4289 = vmatpush3.msra.mxu0 %v1776_v26  ;;  %v1721_v26 = vstv %s3397_s27  ;;  %s3243_s27 = sadd.s32 %s5173_s24, %s3407_s0  ;;  %s5929_s24 = sld [smem:[#allocation35_spill]] }
 0x1f5   : > { %4254 = vmatpush3.msra.mxu1 %v1604_v60  ;;  %4290 = vmatprep.subr.mxu0 %v1775_v28  ;;  %s3408_s17 = sshll.u32 %s3243_s27, 7 }
 0x1f6   : > { %4255 = vmatprep.subr.mxu1 %v5198_v6  ;;  %4291 = vmatpush3.msra.mxu0 %v1775_v28 }
 0x1f7   : > { %4256 = vmatpush3.msra.mxu1 %v1603_v61  ;;  %4292 = vmatprep.subr.mxu0 %v1774_v30 }
 0x1f8   : > { %4257 = vmatprep.subr.mxu1 %v5198_v6  ;;  %4293 = vmatpush3.msra.mxu0 %v1774_v30 }
 0x1f9   : > { %4258 = vmatpush3.msra.mxu1 %v1602_v63  ;;  %4294 = vmatprep.subr.mxu0 %v1773_v32 }
 0x1fa   : > { %4259 = vmatprep.subr.mxu1 %v5198_v6  ;;  %4295 = vmatpush3.msra.mxu0 %v1773_v32  ;;  %s5930_s0 = smov %s5929_s24 }
 0x1fb   : > { %4260 = vmatpush3.msra.mxu1 %v1601_v0  ;;  %4296 = vmatprep.subr.mxu0 %v1772_v34 }
 0x1fc   : > { %4261 = vmatprep.subr.mxu1 %v5198_v6  ;;  %4297 = vmatpush3.msra.mxu0 %v1772_v34  ;;  %v1723_v34 = vadd.s32 %v1721_v26, %v5616_v58 }
 0x1fd   : > { %4262 = vmatpush3.msra.mxu1 %v1600_v1  ;;  %4298 = vmatprep.subr.mxu0 %v1771_v35 }
 0x1fe   : > { %4263 = vmatprep.subr.mxu1 %v5198_v6  ;;  %4299 = vmatpush3.msra.mxu0 %v1771_v35  ;;  %vm1726_vm13 = vcmp.ge.s32.totalorder %v1723_v34, 0  ;;  %vm1729_vm14 = vcmp.lt.s32.totalorder %v1723_v34, 16  ;;  %v1724_v35 = vadd.s32 %v1721_v26, %v5620_v62  ;;  %v2044_v62 = vld [vmem:[#allocation10 + $0x1e0] sm:$0xff] }
 0x1ff   : > { %4264 = vmatpush3.msra.mxu1 %v1599_v2  ;;  %4300 = vmatprep.subr.mxu0 %v1770_v37  ;;  %vm1732_vm15 = vmand %vm1726_vm13, %vm1729_vm14 }
 0x200   : > { %4265 = vmatprep.subr.mxu1 %v5198_v6  ;;  %4301 = vmatpush3.msra.mxu0 %v1770_v37  ;;  %vm1727_vm1 = vcmp.ge.s32.totalorder %v1724_v35, 0  ;;  %vm1730_vm2 = vcmp.lt.s32.totalorder %v1724_v35, 16  ;;  %v2276_v35 = vld [vmem:[#allocation11 + $0x78] sm:$0xff] }
 0x201   : > { %4266 = vmatpush3.msra.mxu1 %v1598_v3  ;;  %4302 = vmatprep.subr.mxu0 %v1769_v38  ;;  %vm1733_vm3 = vmand %vm1727_vm1, %vm1730_vm2 }
 0x202   : > { %4268 = vmatmul.mubr.f32.vlgmr.msra.gmra.mxu1 %v1594_v4  ;;  %4311 = vmatprep.subr.mxu1 %v1763_v8 }
 0x203   : > { %4270 = vmatprep.mubr.msk.f32.mxu1 %vm5199_vm0, %v5198_v6  ;;  %4312 = vmatpush3.msra.mxu1 %v1763_v8 }
 0x204   : > { %4313 = vmatprep.subr.mxu1 %v1762_v9  ;;  %4303 = vmatpush3.msra.mxu0 %v1769_v38 }
 0x205   : > { %4314 = vmatpush3.msra.mxu1 %v1762_v9  ;;  %4304 = vmatprep.subr.mxu0 %v1768_v39 }
 0x206   : > { %4271 = vmatmul.mubr.f32.gmra.mxu1 %v1595_v5  ;;  %4315 = vmatprep.subr.mxu1 %v1761_v10 }
 0x207   : > { %4273 = vmatprep.mubr.msk.f32.mxu1 %vm5199_vm0, %v5198_v6  ;;  %4316 = vmatpush3.msra.mxu1 %v1761_v10 }
 0x208   : > { %4317 = vmatprep.subr.mxu1 %v1760_v11  ;;  %4305 = vmatpush3.msra.mxu0 %v1768_v39 }
 0x209   : > { %4318 = vmatpush3.msra.mxu1 %v1760_v11  ;;  %4306 = vmatprep.subr.mxu0 %v1767_v40 }
 0x20a   : > { %4274 = vmatmul.mubr.f32.gmra.mxu1 %v1596_v7  ;;  %4319 = vmatprep.subr.mxu1 %v1759_v12 }
 0x20b   : > { %4320 = vmatpush3.msra.mxu1 %v1759_v12  ;;  %4307 = vmatpush3.msra.mxu0 %v1767_v40  ;;  %v3395_v12 = vld [vmem:[%s5883_s5] ss:$0 sm:$0xff] }
 0x20c   : > { %4321 = vmatprep.subr.mxu1 %v1758_v13  ;;  %4346 = vmatprep.subr.mxu0 %v5698_v41 }
 0x20d   : > { %4322 = vmatpush3.msra.mxu1 %v1758_v13 }
 0x20e   : > { %4323 = vmatprep.subr.mxu1 %v1757_v15 }
 0x20f   : > { %4324 = vmatpush3.msra.mxu1 %v1757_v15  ;;  %v3396_v15 = vld [vmem:[%s5884_s6] ss:$0 sm:$0xff] }
 0x210   : > { %4325 = vmatprep.subr.mxu1 %v1756_v17 }
 0x211   : > { %4326 = vmatpush3.msra.mxu1 %v1756_v17 }
 0x212   : > { %4327 = vmatprep.subr.mxu1 %v1755_v19 }
 0x213   : > { %4328 = vmatpush3.msra.mxu1 %v1755_v19 }
 0x214   : > { %4329 = vmatprep.subr.mxu1 %v1754_v21 }
 0x215   : > { %4330 = vmatpush3.msra.mxu1 %v1754_v21 }
 0x216   : > { %4331 = vmatprep.subr.mxu1 %v1753_v23 }
 0x217   : > { %4332 = vmatpush3.msra.mxu1 %v1753_v23 }
 0x218   : > { %4333 = vmatprep.subr.mxu1 %v1752_v25 }
 0x219   : > { %4334 = vmatpush3.msra.mxu1 %v1752_v25 }
 0x21a   : > { %4335 = vmatprep.subr.mxu1 %v1751_v27 }
 0x21b   : > { %4336 = vmatpush3.msra.mxu1 %v1751_v27 }
 0x21c   : > { %4337 = vmatprep.subr.mxu1 %v1750_v29 }
 0x21d   : > { %4338 = vmatpush3.msra.mxu1 %v1750_v29 }
 0x21e   : > { %4339 = vmatprep.subr.mxu1 %v1749_v31 }
 0x21f   : > { %4340 = vmatpush3.msra.mxu1 %v1749_v31  ;;  %v1722_v31 = vadd.s32 %v1721_v26, %v5612_v48  ;;  %v2135_v26 = vld [vmem:[#allocation10 + $0x238] sm:$0xff] }
 0x220   : > { %4341 = vmatprep.subr.mxu1 %v1748_v33 }
 0x221   : > { %4342 = vmatpush3.msra.mxu1 %v1748_v33  ;;  %vm1725_vm10 = vcmp.ge.s32.totalorder %v1722_v31, 0  ;;  %vm1728_vm11 = vcmp.lt.s32.totalorder %v1722_v31, 16  ;;  %v2130_v31 = vld [vmem:[#allocation10 + $0x210] sm:$0xff] }
 0x222   : > { %4381 = vmatprep.subr.mxu1 %v5695_v36  ;;  %vm1731_vm12 = vmand %vm1725_vm10, %vm1728_vm11 }
 0x275   : > { %v1374_v42 = vpop.f32.mrf.mxu0 }
 0x277   : > { %v4146_v43 = vpop.f32.mrf.mxu0 }
 0x278   : > { %v2045_v43 = vld [vmem:[#allocation10 + $0x1e8] sm:$0xff] }
 0x279   : > { %v1379_v44 = vpop.f32.mrf.mxu0 }
 0x27b   : > { %v4149_v45 = vpop.f32.mrf.mxu0 }
 0x282   : > { %v1294_v46 = vpop.f32.mrf.mxu1 }
 0x283   : > { %v1375_v5 = vadd.f32 %v1374_v42, %v1294_v46  ;;  %v2046_v42 = vld [vmem:[#allocation10 + $0x1f0] sm:$0xff]  ;;  %v2043_v46 = vld [vmem:[#allocation10 + $0x1d8] sm:$0xff] }
 0x284   : > { %v4105_v47 = vpop.f32.mrf.mxu1 }
 0x286   : > { %v1299_v49 = vpop.f32.mrf.mxu1 }
 0x287   : > { %v1384_v50 = vpop.f32.mrf.mxu0  ;;  %v1380_v8 = vadd.f32 %v1379_v44, %v1299_v49 }
 0x288   : > { %v4108_v51 = vpop.f32.mrf.mxu1 }
 0x289   : > { %v4152_v52 = vpop.f32.mrf.mxu0  ;;  %v1950_v51 = vld [vmem:[#allocation10 + $0x170] sm:$0xff] }
 0x28a   : > { %v1304_v53 = vpop.f32.mrf.mxu1  ;;  %v2041_v52 = vld [vmem:[#allocation10 + $0x1c8] sm:$0xff] }
 0x28b   : > { %v1385_v13 = vadd.f32 %v1384_v50, %v1304_v53  ;;  %v2042_v50 = vld [vmem:[#allocation10 + $0x1d0] sm:$0xff] }
 0x28c   : > { %v4111_v54 = vpop.f32.mrf.mxu1 }
 0x28d   : > { %v1949_v54 = vld [vmem:[#allocation10 + $0x168] sm:$0xff] }
 0x29b   : > { %v1577_v55 = vpop.f32.mrf.mxu0 }
 0x29d   : > { %v4228_v56 = vpop.f32.mrf.mxu0 }
 0x29e   : > { %v1948_v56 = vld [vmem:[#allocation10 + $0x160] sm:$0xff] }
 0x29f   : > { %v1582_v57 = vpop.f32.mrf.mxu0 }
 0x2a1   : > { %v4231_v60 = vpop.f32.mrf.mxu0 }
 0x2a2   : > { %v1474_v59 = vpop.f32.mrf.mxu1  ;;  %v2038_v60 = vld [vmem:[#allocation10 + $0x1b0] sm:$0xff] }
 0x2a3   : > { %v1488_v7 = vadd.f32 %v1474_v59, %v1375_v5  ;;  %v1947_v59 = vld [vmem:[#allocation10 + $0x158] sm:$0xff]  ;;  %v1942_v5 = vld [vmem:[#allocation10 + $0x130] sm:$0xff] }
 0x2a4   : > { %v4187_v61 = vpop.f32.mrf.mxu1  ;;  %v1587_v63 = vpop.f32.mrf.mxu0 }
 0x2a5   : > { %v1591_v10 = vadd.f32 %v1577_v55, %v1488_v7  ;;  %v2040_v55 = vld [vmem:[#allocation10 + $0x1c0] sm:$0xff]  ;;  %v1946_v61 = vld [vmem:[#allocation10 + $0x150] sm:$0xff]  ;;  %v2033_v7 = vld [vmem:[#allocation10 + $0x188] sm:$0xff] }
 0x2a6   : > { %v1479_v0 = vpop.f32.mrf.mxu1  ;;  %v4234_v1 = vpop.f32.mrf.mxu0 }
 0x2a7   : > { %v1489_v9 = vadd.f32 %v1479_v0, %v1380_v8  ;;  %v2036_v0 = vld [vmem:[#allocation10 + $0x1a0] sm:$0xff]  ;;  %v1941_v8 = vld [vmem:[#allocation10 + $0x128] sm:$0xff] }
 0x2a8   : > { %v4190_v2 = vpop.f32.mrf.mxu1  ;;  %v1944_v1 = vld [vmem:[#allocation10 + $0x140] sm:$0xff] }
 0x2a9   : > { %v1592_v19 = vadd.f32 %v1582_v57, %v1489_v9  ;;  %v2039_v57 = vld [vmem:[#allocation10 + $0x1b8] sm:$0xff]  ;;  %v2032_v9 = vld [vmem:[#allocation10 + $0x180] sm:$0xff] }
 0x2aa   : > { %v1484_v3 = vpop.f32.mrf.mxu1  ;;  %v2035_v2 = vld [vmem:[#allocation10 + $0x198] sm:$0xff] }
 0x2ab   : > { %v1490_v17 = vadd.f32 %v1484_v3, %v1385_v13  ;;  %v1943_v3 = vld [vmem:[#allocation10 + $0x138] sm:$0xff]  ;;  %v1938_v13 = vld [vmem:[#allocation10 + $0x110] sm:$0xff] }
 0x2ac   : > { %v4193_v4 = vpop.f32.mrf.mxu1 }
 0x2ad   : > { %v1593_v25 = vadd.f32 %v1587_v63, %v1490_v17  ;;  %v1945_v63 = vld [vmem:[#allocation10 + $0x148] sm:$0xff]  ;;  %v2034_v4 = vld [vmem:[#allocation10 + $0x190] sm:$0xff] }
 0x2c2   : > { %v1680_v11 = vpop.f32.mrf.mxu1 }
 0x2c3   : > { %v1694_v14 = vadd.f32 %v1680_v11, %v1591_v10  ;;  %v1940_v10 = vld [vmem:[#allocation10 + $0x120] sm:$0xff]  ;;  %v1939_v11 = vld [vmem:[#allocation10 + $0x118] sm:$0xff] }
 0x2c4   : > { %v4269_v16 = vpop.f32.mrf.mxu1 }
 0x2c5   : > { %v1704_v18 = vmul.f32 %v3395_v12, %v1694_v14  ;;  %v1937_v14 = vld [vmem:[#allocation10 + $0x108] sm:$0xff]  ;;  %v2143_v16 = vld [vmem:[#allocation10 + $0x278] sm:$0xff] }
 0x2c6   : > { %v1685_v20 = vpop.f32.mrf.mxu1 }
 0x2c7   : > { %v1714_v21 = vadd.f32 %v3396_v15, %v1704_v18  ;;  %v1695_v22 = vadd.f32 %v1685_v20, %v1592_v19  ;;  %v2142_v18 = vld [vmem:[#allocation10 + $0x270] sm:$0xff]  ;;  %v2141_v20 = vld [vmem:[#allocation10 + $0x268] sm:$0xff] }
 0x2c8   : > { %v4272_v23 = vpop.f32.mrf.mxu1 }
 0x2c9   : > { %4933 = vtanh.f32 %v1714_v21  ;;  %v1705_v24 = vmul.f32 %v3395_v12, %v1695_v22  ;;  %v2140_v21 = vld [vmem:[#allocation10 + $0x260] sm:$0xff]  ;;  %v2139_v22 = vld [vmem:[#allocation10 + $0x258] sm:$0xff]  ;;  %v2138_v23 = vld [vmem:[#allocation10 + $0x250] sm:$0xff] }
 0x2ca   : > { %v1690_v27 = vpop.f32.mrf.mxu1 }
 0x2cb   : > { %v1715_v28 = vadd.f32 %v3396_v15, %v1705_v24  ;;  %v1696_v29 = vadd.f32 %v1690_v27, %v1593_v25  ;;  %v2137_v24 = vld [vmem:[#allocation10 + $0x248] sm:$0xff]  ;;  %v2136_v25 = vld [vmem:[#allocation10 + $0x240] sm:$0xff]  ;;  %v2134_v27 = vld [vmem:[#allocation10 + $0x230] sm:$0xff] }
 0x2cc   : > { %v4275_v30 = vpop.f32.mrf.mxu1 }
 0x2cd   : > { %4935 = vtanh.f32 %v1715_v28  ;;  %v1706_v32 = vmul.f32 %v3395_v12, %v1696_v29  ;;  %v2133_v28 = vld [vmem:[#allocation10 + $0x228] sm:$0xff]  ;;  %v2132_v29 = vld [vmem:[#allocation10 + $0x220] sm:$0xff]  ;;  %v2131_v30 = vld [vmem:[#allocation10 + $0x218] sm:$0xff] }
 0x2cf   : > { %v1716_v33 = vadd.f32 %v3396_v15, %v1706_v32  ;;  %v1936_v15 = vld [vmem:[#allocation10 + $0x100] sm:$0xff]  ;;  %v2129_v32 = vld [vmem:[#allocation10 + $0x208] sm:$0xff] }
 0x2d1   : > { %4937 = vtanh.f32 %v1716_v33  ;;  %v2128_v33 = vld [vmem:[#allocation10 + $0x200] sm:$0xff] }
 0x2d6   : > { %v4934_v37 = vpop.eup %4933 }
 0x2d7   : > { %v1740_v38 = vsel %vm1731_vm12, %v4934_v37, 0.0  ;;  %4949 = vmatprep.mubr.msk.f32.mxu1 %vm1731_vm12, %v4934_v37  ;;  %v2275_v37 = vld [vmem:[#allocation11 + $0x70] sm:$0xff] }
 0x2d8   : > { %1743 = vst [vmem:[#allocation4] sm:$0xff] %v1740_v38  ;;  %v2295_v38 = vld [vmem:[#allocation11 + $0xf8] sm:$0xff] }
 0x2da   : > { %v4936_v39 = vpop.eup %4935 }
 0x2db   : > { %v1741_v40 = vsel %vm1732_vm15, %v4936_v39, 0.0  ;;  %4950 = vmatmul.mubr.msk.f32.vlgmr.msra.gmra.mxu1 %vm1732_vm15, %v4936_v39  ;;  %v2274_v39 = vld [vmem:[#allocation11 + $0x68] sm:$0xff] }
 0x2dc   : > { %1744 = vst [vmem:[#allocation4 + $0x8] sm:$0xff] %v1741_v40  ;;  %4382 = vmatpush3.msra.mxu1 %v5695_v36  ;;  %v2294_v40 = vld [vmem:[#allocation11 + $0xf0] sm:$0xff] }
 0x2dd   : > { %4383 = vmatprep.subr.mxu1 %v2046_v42 }
 0x2de   : > { %v4938_v44 = vpop.eup %4937  ;;  %4384 = vmatpush3.msra.mxu1 %v2046_v42  ;;  %v2273_v42 = vld [vmem:[#allocation11 + $0x60] sm:$0xff] }
 0x2df   : > { %v1742_v45 = vsel %vm1733_vm3, %v4938_v44, 0.0  ;;  %4385 = vmatprep.subr.mxu1 %v2045_v43  ;;  %v2272_v44 = vld [vmem:[#allocation11 + $0x58] sm:$0xff] }
 0x2e0   : > { %1745 = vst [vmem:[#allocation4 + $0x10] sm:$0xf] %v1742_v45  ;;  %4386 = vmatpush3.msra.mxu1 %v2045_v43  ;;  %v2293_v43 = vld [vmem:[#allocation11 + $0xe8] sm:$0xff]  ;;  %v2292_v45 = vld [vmem:[#allocation11 + $0xe0] sm:$0xff] }
 0x2e1   : > { %4387 = vmatprep.subr.mxu1 %v2044_v62 }
 0x2e2   : > { %4388 = vmatpush3.msra.mxu1 %v2044_v62  ;;  %v2271_v62 = vld [vmem:[#allocation11 + $0x50] sm:$0xff] }
 0x2e3   : > { %v1764_v47 = vld [vmem:[#allocation4 + $0x1] sm:$0xff]  ;;  %4389 = vmatprep.subr.mxu1 %v2043_v46 }
 0x2e4   : > { %v2029_v49 = vld [vmem:[#allocation4 + $0x3] sm:$0xff]  ;;  %4308 = vmatprep.mubr.f32.mxu0 %v1764_v47  ;;  %4390 = vmatpush3.msra.mxu1 %v2043_v46  ;;  %v2291_v46 = vld [vmem:[#allocation11 + $0xd8] sm:$0xff] }
 0x2e5   : > { %4413 = vmatprep.mubr.f32.mxu1 %v2029_v49  ;;  %4391 = vmatprep.subr.mxu1 %v2042_v50  ;;  %v1933_v53 = vld [vmem:[#allocation4 + $0x2] sm:$0xff]  ;;  %v2290_v49 = vld [vmem:[#allocation11 + $0xd0] sm:$0xff] }
 0x2e6   : > { %4392 = vmatpush3.msra.mxu1 %v2042_v50  ;;  %v2125_v19 = vld [vmem:[#allocation4 + $0x4] sm:$0xff] }
 0x2e7   : > { %v1765_v36 = vld [vmem:[#allocation4 + $0x9] sm:$0xff]  ;;  %4393 = vmatprep.subr.mxu1 %v2041_v52  ;;  %v2269_v50 = vld [vmem:[#allocation11 + $0x40] sm:$0xff] }
 0x2e8   : > { %4309 = vmatmul.mubr.f32.vlgmr.msra.gmra.mxu0 %v1765_v36  ;;  %4394 = vmatpush3.msra.mxu1 %v2041_v52  ;;  %v2030_v12 = vld [vmem:[#allocation4 + $0xb] sm:$0xff]  ;;  %v2288_v52 = vld [vmem:[#allocation11 + $0xc0] sm:$0xff] }
 0x2e9   : > { %4347 = vmatpush3.msra.mxu0 %v5698_v41  ;;  %4378 = vmatprep.mubr.f32.mxu0 %v1933_v53  ;;  %v2037_v41 = vld [vmem:[#allocation10 + $0x1a8] sm:$0xff]  ;;  %v2267_v53 = vld [vmem:[#allocation11 + $0x30] sm:$0xff] }
 0x2ea   : > { %4348 = vmatprep.subr.mxu0 %v1950_v51  ;;  %4395 = vmatprep.subr.mxu1 %v2040_v55  ;;  %v1934_v17 = vld [vmem:[#allocation4 + $0xa] sm:$0xff] }
 0x2eb   : > { %4349 = vmatpush3.msra.mxu0 %v1950_v51  ;;  %4396 = vmatpush3.msra.mxu1 %v2040_v55  ;;  %v2126_v34 = vld [vmem:[#allocation4 + $0xc] sm:$0xff]  ;;  %v2268_v51 = vld [vmem:[#allocation11 + $0x38] sm:$0xff] }
 0x2ec   : > { %4350 = vmatprep.subr.mxu0 %v1949_v54  ;;  %4397 = vmatprep.subr.mxu1 %v2039_v57  ;;  %v2270_v47 = vld [vmem:[#allocation11 + $0x48] sm:$0xff] }
 0x2ed   : > { %4351 = vmatpush3.msra.mxu0 %v1949_v54  ;;  %4398 = vmatpush3.msra.mxu1 %v2039_v57  ;;  %v2289_v36 = vld [vmem:[#allocation11 + $0xc8] sm:$0xff]  ;;  %v2287_v54 = vld [vmem:[#allocation11 + $0xb8] sm:$0xff]  ;;  %v2265_v57 = vld [vmem:[#allocation11 + $0x20] sm:$0xff] }
 0x2ee   : > { %4352 = vmatprep.subr.mxu0 %v1948_v56  ;;  %4399 = vmatprep.subr.mxu1 %v2038_v60  ;;  %v2266_v55 = vld [vmem:[#allocation11 + $0x28] sm:$0xff] }
 0x2ef   : > { %4353 = vmatpush3.msra.mxu0 %v1948_v56  ;;  %4400 = vmatpush3.msra.mxu1 %v2038_v60  ;;  %v2286_v56 = vld [vmem:[#allocation11 + $0xb0] sm:$0xff]  ;;  %v2284_v60 = vld [vmem:[#allocation11 + $0xa0] sm:$0xff] }
 0x2f0   : > { %4354 = vmatprep.subr.mxu0 %v1947_v59  ;;  %4401 = vmatprep.subr.mxu1 %v2037_v41 }
 0x2f1   : > { %4355 = vmatpush3.msra.mxu0 %v1947_v59  ;;  %4402 = vmatpush3.msra.mxu1 %v2037_v41  ;;  %v2285_v59 = vld [vmem:[#allocation11 + $0xa8] sm:$0xff]  ;;  %v2283_v41 = vld [vmem:[#allocation11 + $0x98] sm:$0xff] }
 0x2f2   : > { %4356 = vmatprep.subr.mxu0 %v1946_v61  ;;  %4403 = vmatprep.subr.mxu1 %v2036_v0 }
 0x2f3   : > { %4357 = vmatpush3.msra.mxu0 %v1946_v61  ;;  %4404 = vmatpush3.msra.mxu1 %v2036_v0  ;;  %v2264_v61 = vld [vmem:[#allocation11 + $0x18] sm:$0xff]  ;;  %v2262_v0 = vld [vmem:[#allocation11 + $0x8] sm:$0xff] }
 0x2f4   : > { %4358 = vmatprep.subr.mxu0 %v1945_v63  ;;  %4405 = vmatprep.subr.mxu1 %v2035_v2 }
 0x2f5   : > { %4359 = vmatpush3.msra.mxu0 %v1945_v63  ;;  %4406 = vmatpush3.msra.mxu1 %v2035_v2  ;;  %v2263_v63 = vld [vmem:[#allocation11 + $0x10] sm:$0xff]  ;;  %v2261_v2 = vld [vmem:[#allocation11] sm:$0xff] }
 0x2f6   : > { %4360 = vmatprep.subr.mxu0 %v1944_v1  ;;  %4407 = vmatprep.subr.mxu1 %v2034_v4 }
 0x2f7   : > { %4361 = vmatpush3.msra.mxu0 %v1944_v1  ;;  %4408 = vmatpush3.msra.mxu1 %v2034_v4  ;;  %v2282_v1 = vld [vmem:[#allocation11 + $0x90] sm:$0xff]  ;;  %v2280_v4 = vld [vmem:[#allocation11 + $0x80] sm:$0xff] }
 0x2f8   : > { %4362 = vmatprep.subr.mxu0 %v1943_v3  ;;  %4409 = vmatprep.subr.mxu1 %v2033_v7 }
 0x2f9   : > { %4363 = vmatpush3.msra.mxu0 %v1943_v3  ;;  %4410 = vmatpush3.msra.mxu1 %v2033_v7  ;;  %v2281_v3 = vld [vmem:[#allocation11 + $0x88] sm:$0xff]  ;;  %v2464_v7 = vld [vmem:[#allocation11 + $0x178] sm:$0xff] }
 0x2fa   : > { %4364 = vmatprep.subr.mxu0 %v1942_v5  ;;  %4411 = vmatprep.subr.mxu1 %v2032_v9 }
 0x2fb   : > { %4365 = vmatpush3.msra.mxu0 %v1942_v5  ;;  %4412 = vmatpush3.msra.mxu1 %v2032_v9  ;;  %v2560_v5 = vld [vmem:[#allocation11 + $0x1f8] sm:$0xff] }
 0x2fc   : > { %4366 = vmatprep.subr.mxu0 %v1941_v8  ;;  %4414 = vmatmul.mubr.f32.vlgmr.msra.gmra.mxu1 %v2030_v12 }
 0x2fd   : > { %4367 = vmatpush3.msra.mxu0 %v1941_v8  ;;  %4451 = vmatprep.subr.mxu1 %v2295_v38 }
 0x2fe   : > { %4368 = vmatprep.subr.mxu0 %v1940_v10  ;;  %4452 = vmatpush3.msra.mxu1 %v2295_v38 }
 0x2ff   : > { %4369 = vmatpush3.msra.mxu0 %v1940_v10  ;;  %4453 = vmatprep.subr.mxu1 %v2294_v40 }
 0x300   : > { %4370 = vmatprep.subr.mxu0 %v1939_v11  ;;  %4454 = vmatpush3.msra.mxu1 %v2294_v40 }
 0x301   : > { %4371 = vmatpush3.msra.mxu0 %v1939_v11  ;;  %4455 = vmatprep.subr.mxu1 %v2293_v43 }
 0x302   : > { %4372 = vmatprep.subr.mxu0 %v1938_v13  ;;  %4456 = vmatpush3.msra.mxu1 %v2293_v43 }
 0x303   : > { %4373 = vmatpush3.msra.mxu0 %v1938_v13  ;;  %4457 = vmatprep.subr.mxu1 %v2292_v45 }
 0x304   : > { %4374 = vmatprep.subr.mxu0 %v1937_v14  ;;  %4458 = vmatpush3.msra.mxu1 %v2292_v45 }
 0x305   : > { %4375 = vmatpush3.msra.mxu0 %v1937_v14  ;;  %4459 = vmatprep.subr.mxu1 %v2291_v46 }
 0x306   : > { %4376 = vmatprep.subr.mxu0 %v1936_v15  ;;  %4460 = vmatpush3.msra.mxu1 %v2291_v46 }
 0x307   : > { %4377 = vmatpush3.msra.mxu0 %v1936_v15  ;;  %4461 = vmatprep.subr.mxu1 %v2290_v49 }
 0x308   : > { %4379 = vmatmul.mubr.f32.vlgmr.msra.gmra.mxu0 %v1934_v17  ;;  %4416 = vmatprep.subr.mxu0 %v2143_v16 }
 0x309   : > { %4417 = vmatpush3.msra.mxu0 %v2143_v16  ;;  %4448 = vmatprep.mubr.f32.mxu0 %v2125_v19 }
 0x30a   : > { %4418 = vmatprep.subr.mxu0 %v2142_v18  ;;  %4462 = vmatpush3.msra.mxu1 %v2290_v49  ;;  %v2462_v49 = vld [vmem:[#allocation11 + $0x168] sm:$0xff] }
 0x30b   : > { %4419 = vmatpush3.msra.mxu0 %v2142_v18  ;;  %4463 = vmatprep.subr.mxu1 %v2289_v36 }
 0x30c   : > { %4420 = vmatprep.subr.mxu0 %v2141_v20  ;;  %4464 = vmatpush3.msra.mxu1 %v2289_v36  ;;  %v2461_v36 = vld [vmem:[#allocation11 + $0x160] sm:$0xff] }
 0x30d   : > { %4421 = vmatpush3.msra.mxu0 %v2141_v20  ;;  %4465 = vmatprep.subr.mxu1 %v2288_v52 }
 0x30e   : > { %4422 = vmatprep.subr.mxu0 %v2140_v21  ;;  %4466 = vmatpush3.msra.mxu1 %v2288_v52  ;;  %v2460_v52 = vld [vmem:[#allocation11 + $0x158] sm:$0xff] }
 0x30f   : > { %4423 = vmatpush3.msra.mxu0 %v2140_v21  ;;  %4467 = vmatprep.subr.mxu1 %v2287_v54 }
 0x310   : > { %4424 = vmatprep.subr.mxu0 %v2139_v22  ;;  %4468 = vmatpush3.msra.mxu1 %v2287_v54  ;;  %v2459_v54 = vld [vmem:[#allocation11 + $0x150] sm:$0xff] }
 0x311   : > { %4425 = vmatpush3.msra.mxu0 %v2139_v22  ;;  %4469 = vmatprep.subr.mxu1 %v2286_v56  ;;  %v3398_v22 = vld [vmem:[%s5886_s8] ss:$0 sm:$0xff] }
 0x312   : > { %4426 = vmatprep.subr.mxu0 %v2138_v23  ;;  %4470 = vmatpush3.msra.mxu1 %v2286_v56  ;;  %v2458_v56 = vld [vmem:[#allocation11 + $0x148] sm:$0xff] }
 0x313   : > { %4427 = vmatpush3.msra.mxu0 %v2138_v23  ;;  %4471 = vmatprep.subr.mxu1 %v2285_v59 }
 0x314   : > { %4428 = vmatprep.subr.mxu0 %v2137_v24  ;;  %4472 = vmatpush3.msra.mxu1 %v2285_v59  ;;  %v2457_v59 = vld [vmem:[#allocation11 + $0x140] sm:$0xff] }
 0x315   : > { %4429 = vmatpush3.msra.mxu0 %v2137_v24  ;;  %4473 = vmatprep.subr.mxu1 %v2284_v60 }
 0x316   : > { %4430 = vmatprep.subr.mxu0 %v2136_v25  ;;  %4474 = vmatpush3.msra.mxu1 %v2284_v60  ;;  %v2552_v60 = vld [vmem:[#allocation11 + $0x1b8] sm:$0xff] }
 0x317   : > { %4431 = vmatpush3.msra.mxu0 %v2136_v25  ;;  %4475 = vmatprep.subr.mxu1 %v2283_v41  ;;  %v3399_v25 = vld [vmem:[%s5887_s9] ss:$0 sm:$0xff] }
 0x318   : > { %4432 = vmatprep.subr.mxu0 %v2135_v26  ;;  %4476 = vmatpush3.msra.mxu1 %v2283_v41  ;;  %v2551_v41 = vld [vmem:[#allocation11 + $0x1b0] sm:$0xff] }
 0x319   : > { %4433 = vmatpush3.msra.mxu0 %v2135_v26  ;;  %4477 = vmatprep.subr.mxu1 %v2282_v1 }
 0x31a   : > { %4434 = vmatprep.subr.mxu0 %v2134_v27  ;;  %4478 = vmatpush3.msra.mxu1 %v2282_v1  ;;  %v2454_v1 = vld [vmem:[#allocation11 + $0x128] sm:$0xff] }
 0x31b   : > { %4435 = vmatpush3.msra.mxu0 %v2134_v27  ;;  %4479 = vmatprep.subr.mxu1 %v2281_v3 }
 0x31c   : > { %4436 = vmatprep.subr.mxu0 %v2133_v28  ;;  %4480 = vmatpush3.msra.mxu1 %v2281_v3  ;;  %v2453_v3 = vld [vmem:[#allocation11 + $0x120] sm:$0xff] }
 0x31d   : > { %4437 = vmatpush3.msra.mxu0 %v2133_v28  ;;  %4481 = vmatprep.subr.mxu1 %v2280_v4 }
 0x31e   : > { %4438 = vmatprep.subr.mxu0 %v2132_v29  ;;  %4482 = vmatpush3.msra.mxu1 %v2280_v4  ;;  %v2548_v4 = vld [vmem:[#allocation11 + $0x198] sm:$0xff] }
 0x31f   : > { %4439 = vmatpush3.msra.mxu0 %v2132_v29  ;;  %4521 = vmatprep.subr.mxu1 %v2464_v7 }
 0x320   : > { %4440 = vmatprep.subr.mxu0 %v2131_v30 }
 0x321   : > { %4441 = vmatpush3.msra.mxu0 %v2131_v30 }
 0x322   : > { %4442 = vmatprep.subr.mxu0 %v2130_v31 }
 0x323   : > { %4443 = vmatpush3.msra.mxu0 %v2130_v31 }
 0x324   : > { %4444 = vmatprep.subr.mxu0 %v2129_v32 }
 0x325   : > { %4445 = vmatpush3.msra.mxu0 %v2129_v32  ;;  %v2242_v32 = vstv %s3400_s21 }
 0x326   : > { %4446 = vmatprep.subr.mxu0 %v2128_v33 }
 0x327   : > { %4447 = vmatpush3.msra.mxu0 %v2128_v33  ;;  %v2244_v33 = vadd.s32 %v2242_v32, %v5616_v58 }
 0x328   : > { %4449 = vmatmul.mubr.f32.vlgmr.msra.gmra.mxu0 %v2126_v34  ;;  %4486 = vmatprep.subr.mxu0 %v2276_v35  ;;  %v2243_v34 = vadd.s32 %v2242_v32, %v5612_v48 }
 0x329   : > { %4487 = vmatpush3.msra.mxu0 %v2276_v35  ;;  %vm2246_vm4 = vcmp.ge.s32.totalorder %v2244_v33, 0  ;;  %vm2248_vm5 = vcmp.lt.s32.totalorder %v2244_v33, 16  ;;  %v2788_v33 = vld [vmem:[#allocation13 + $0x78] sm:$0xff] }
 0x32a   : > { %4488 = vmatprep.subr.mxu0 %v2275_v37  ;;  %vm2245_vm6 = vcmp.ge.s32.totalorder %v2243_v34, 0  ;;  %vm2247_vm7 = vcmp.lt.s32.totalorder %v2243_v34, 16  ;;  %vm2250_vm8 = vmand %vm2246_vm4, %vm2248_vm5  ;;  %v2787_v34 = vld [vmem:[#allocation13 + $0x70] sm:$0xff] }
 0x32b   : > { %4489 = vmatpush3.msra.mxu0 %v2275_v37  ;;  %vm2249_vm9 = vmand %vm2245_vm6, %vm2247_vm7 }
 0x32c   : > { %4490 = vmatprep.subr.mxu0 %v2274_v39 }
 0x32d   : > { %4491 = vmatpush3.msra.mxu0 %v2274_v39 }
 0x32e   : > { %4492 = vmatprep.subr.mxu0 %v2273_v42 }
 0x32f   : > { %4493 = vmatpush3.msra.mxu0 %v2273_v42  ;;  %v2559_v42 = vld [vmem:[#allocation11 + $0x1f0] sm:$0xff] }
 0x330   : > { %4494 = vmatprep.subr.mxu0 %v2272_v44 }
 0x331   : > { %4495 = vmatpush3.msra.mxu0 %v2272_v44 }
 0x332   : > { %4496 = vmatprep.subr.mxu0 %v2271_v62 }
 0x333   : > { %4497 = vmatpush3.msra.mxu0 %v2271_v62  ;;  %v2463_v62 = vld [vmem:[#allocation11 + $0x170] sm:$0xff] }
 0x334   : > { %4498 = vmatprep.subr.mxu0 %v2270_v47 }
 0x335   : > { %4499 = vmatpush3.msra.mxu0 %v2270_v47  ;;  %v2558_v47 = vld [vmem:[#allocation11 + $0x1e8] sm:$0xff] }
 0x336   : > { %4500 = vmatprep.subr.mxu0 %v2269_v50 }
 0x337   : > { %4501 = vmatpush3.msra.mxu0 %v2269_v50  ;;  %v2557_v50 = vld [vmem:[#allocation11 + $0x1e0] sm:$0xff] }
 0x338   : > { %4502 = vmatprep.subr.mxu0 %v2268_v51 }
 0x339   : > { %4503 = vmatpush3.msra.mxu0 %v2268_v51  ;;  %v2556_v51 = vld [vmem:[#allocation11 + $0x1d8] sm:$0xff] }
 0x33a   : > { %4504 = vmatprep.subr.mxu0 %v2267_v53 }
 0x33b   : > { %4505 = vmatpush3.msra.mxu0 %v2267_v53  ;;  %v2555_v53 = vld [vmem:[#allocation11 + $0x1d0] sm:$0xff] }
 0x33c   : > { %4506 = vmatprep.subr.mxu0 %v2266_v55 }
 0x33d   : > { %4507 = vmatpush3.msra.mxu0 %v2266_v55  ;;  %v2554_v55 = vld [vmem:[#allocation11 + $0x1c8] sm:$0xff] }
 0x33e   : > { %4508 = vmatprep.subr.mxu0 %v2265_v57 }
 0x33f   : > { %4509 = vmatpush3.msra.mxu0 %v2265_v57  ;;  %v2553_v57 = vld [vmem:[#allocation11 + $0x1c0] sm:$0xff] }
 0x340   : > { %4510 = vmatprep.subr.mxu0 %v2264_v61 }
 0x341   : > { %4511 = vmatpush3.msra.mxu0 %v2264_v61  ;;  %v2456_v61 = vld [vmem:[#allocation11 + $0x138] sm:$0xff] }
 0x342   : > { %4512 = vmatprep.subr.mxu0 %v2263_v63 }
 0x343   : > { %4513 = vmatpush3.msra.mxu0 %v2263_v63  ;;  %v2455_v63 = vld [vmem:[#allocation11 + $0x130] sm:$0xff] }
 0x344   : > { %4514 = vmatprep.subr.mxu0 %v2262_v0 }
 0x345   : > { %4515 = vmatpush3.msra.mxu0 %v2262_v0  ;;  %v2550_v0 = vld [vmem:[#allocation11 + $0x1a8] sm:$0xff] }
 0x346   : > { %4516 = vmatprep.subr.mxu0 %v2261_v2 }
 0x347   : > { %4517 = vmatpush3.msra.mxu0 %v2261_v2  ;;  %v2549_v2 = vld [vmem:[#allocation11 + $0x1a0] sm:$0xff] }
 0x348   : > { %4556 = vmatprep.subr.mxu0 %v2560_v5 }
 0x39b   : > { %v4345_v10 = vpop.f32.mrf.mxu1 }
 0x39d   : > { %v1924_v13 = vpop.f32.mrf.mxu1 }
 0x3a8   : > { %v4310_v8 = vpop.f32.mrf.mxu0 }
 0x3a9   : > { %v1930_v12 = vadd.f32 %v4345_v10, %v4310_v8  ;;  %v2451_v8 = vld [vmem:[#allocation11 + $0x110] sm:$0xff]  ;;  %v2450_v10 = vld [vmem:[#allocation11 + $0x108] sm:$0xff] }
 0x3aa   : > { %v1849_v9 = vpop.f32.mrf.mxu0 }
 0x3ab   : > { %v1925_v15 = vadd.f32 %v1924_v13, %v1849_v9  ;;  %v2546_v9 = vld [vmem:[#allocation11 + $0x188] sm:$0xff]  ;;  %v2656_v13 = vld [vmem:[#allocation11 + $0x278] sm:$0xff] }
 0x3bc   : > { %v4415_v17 = vpop.f32.mrf.mxu1 }
 0x3be   : > { %v2114_v20 = vpop.f32.mrf.mxu1 }
 0x3c8   : > { %v4380_v11 = vpop.f32.mrf.mxu0 }
 0x3c9   : > { %v2028_v16 = vadd.f32 %v4380_v11, %v1930_v12  ;;  %v2545_v11 = vld [vmem:[#allocation11 + $0x180] sm:$0xff] }
 0x3ca   : > { %v2018_v14 = vpop.f32.mrf.mxu0  ;;  %v2449_v12 = vld [vmem:[#allocation11 + $0x100] sm:$0xff] }
 0x3cb   : > { %v2027_v18 = vadd.f32 %v2018_v14, %v1925_v15  ;;  %v2124_v19 = vadd.f32 %v4415_v17, %v2028_v16  ;;  %v2655_v16 = vld [vmem:[#allocation11 + $0x270] sm:$0xff] }
 0x3cd   : > { %v2123_v24 = vadd.f32 %v2114_v20, %v2027_v18  ;;  %v2654_v18 = vld [vmem:[#allocation11 + $0x268] sm:$0xff]  ;;  %v2652_v20 = vld [vmem:[#allocation11 + $0x258] sm:$0xff] }
 0x3e8   : > { %v4450_v21 = vpop.f32.mrf.mxu0 }
 0x3e9   : > { %v2220_v23 = vadd.f32 %v4450_v21, %v2124_v19  ;;  %v2653_v19 = vld [vmem:[#allocation11 + $0x260] sm:$0xff]  ;;  %v2651_v21 = vld [vmem:[#allocation11 + $0x250] sm:$0xff] }
 0x3ea   : > { %v2210_v26 = vpop.f32.mrf.mxu0 }
 0x3eb   : > { %v2229_v27 = vmul.f32 %v3398_v22, %v2220_v23  ;;  %v2219_v28 = vadd.f32 %v2210_v26, %v2123_v24  ;;  %v2649_v23 = vld [vmem:[#allocation11 + $0x240] sm:$0xff]  ;;  %v2648_v24 = vld [vmem:[#allocation11 + $0x238] sm:$0xff]  ;;  %v2646_v26 = vld [vmem:[#allocation11 + $0x228] sm:$0xff] }
 0x3ed   : > { %v2238_v29 = vadd.f32 %v3399_v25, %v2229_v27  ;;  %v2228_v30 = vmul.f32 %v3398_v22, %v2219_v28  ;;  %v2650_v22 = vld [vmem:[#allocation11 + $0x248] sm:$0xff]  ;;  %v2645_v27 = vld [vmem:[#allocation11 + $0x220] sm:$0xff]  ;;  %v2644_v28 = vld [vmem:[#allocation11 + $0x218] sm:$0xff] }
 0x3ef   : > { %4939 = vtanh.f32 %v2238_v29  ;;  %v2237_v31 = vadd.f32 %v3399_v25, %v2228_v30  ;;  %v2647_v25 = vld [vmem:[#allocation11 + $0x230] sm:$0xff]  ;;  %v2642_v30 = vld [vmem:[#allocation11 + $0x208] sm:$0xff] }
 0x3f0   : > { %v2643_v29 = vld [vmem:[#allocation11 + $0x210] sm:$0xff] }
 0x3f1   : > { %4941 = vtanh.f32 %v2237_v31  ;;  %v2641_v31 = vld [vmem:[#allocation11 + $0x200] sm:$0xff] }
 0x3fc   : > { %v4940_v35 = vpop.eup %4939 }
 0x3fd   : > { %v2256_v37 = vsel %vm2250_vm8, %v4940_v35, 0.0  ;;  %v2786_v35 = vld [vmem:[#allocation13 + $0x68] sm:$0xff] }
 0x3fe   : > { %v4942_v38 = vpop.eup %4941  ;;  %2258 = vst [vmem:[#allocation3 + $0x8] sm:$0xff] %v2256_v37  ;;  %v2785_v37 = vld [vmem:[#allocation13 + $0x60] sm:$0xff] }
 0x3ff   : > { %v2255_v39 = vsel %vm2249_vm9, %v4942_v38, 0.0  ;;  %4951 = vmatprep.mubr.msk.f32.mxu0 %vm2249_vm9, %v4942_v38  ;;  %v2806_v38 = vld [vmem:[#allocation13 + $0xf8] sm:$0xff] }
 0x400   : > { %2257 = vst [vmem:[#allocation3] sm:$0xff] %v2255_v39  ;;  %v2784_v39 = vld [vmem:[#allocation13 + $0x58] sm:$0xff] }
 0x405   : > { %v2260_v40 = vld [vmem:[#allocation3 + $0x8] sm:$0xf]  ;;  %v2639_v32 = vld [vmem:[#allocation3 + $0xc] sm:$0xf] }
 0x406   : > { %4519 = vmatmul.mubr.f32.vlgmr.msra.gmra.mxu0 %v2260_v40  ;;  %v2278_v45 = vld [vmem:[#allocation3 + $0x9] sm:$0xf]  ;;  %v2805_v40 = vld [vmem:[#allocation13 + $0xf0] sm:$0xff] }
 0x407   : > { %v2277_v43 = vld [vmem:[#allocation3 + $0x1] sm:$0xff]  ;;  %4557 = vmatpush3.msra.mxu0 %v2560_v5  ;;  %v2452_v5 = vld [vmem:[#allocation11 + $0x118] sm:$0xff]  ;;  %v2543_v14 = vld [vmem:[#allocation3 + $0xb] sm:$0xf] }
 0x408   : > { %v2542_v44 = vld [vmem:[#allocation3 + $0x3] sm:$0xff]  ;;  %4483 = vmatprep.mubr.f32.mxu1 %v2277_v43  ;;  %4558 = vmatprep.subr.mxu0 %v2559_v42 }
 0x409   : > { %4484 = vmatmul.mubr.f32.vlgmr.msra.gmra.mxu1 %v2278_v45  ;;  %v2446_v46 = vld [vmem:[#allocation3 + $0x2] sm:$0xff]  ;;  %4588 = vmatprep.mubr.f32.mxu0 %v2542_v44  ;;  %v2447_v15 = vld [vmem:[#allocation3 + $0xa] sm:$0xf] }
 0x40a   : > { %4522 = vmatpush3.msra.mxu1 %v2464_v7  ;;  %4553 = vmatprep.mubr.f32.mxu1 %v2446_v46  ;;  %v2547_v7 = vld [vmem:[#allocation11 + $0x190] sm:$0xff]  ;;  %v2638_v17 = vld [vmem:[#allocation3 + $0x4] sm:$0xff]  ;;  %v2802_v46 = vld [vmem:[#allocation13 + $0xd8] sm:$0xff] }
 0x40b   : > { %4523 = vmatprep.subr.mxu1 %v2463_v62  ;;  %4559 = vmatpush3.msra.mxu0 %v2559_v42  ;;  %v2783_v42 = vld [vmem:[#allocation13 + $0x50] sm:$0xff]  ;;  %v2804_v43 = vld [vmem:[#allocation13 + $0xe8] sm:$0xff]  ;;  %v2803_v45 = vld [vmem:[#allocation13 + $0xe0] sm:$0xff] }
 0x40c   : > { %4524 = vmatpush3.msra.mxu1 %v2463_v62  ;;  %4560 = vmatprep.subr.mxu0 %v2558_v47  ;;  %v2782_v44 = vld [vmem:[#allocation13 + $0x48] sm:$0xff]  ;;  %v2781_v62 = vld [vmem:[#allocation13 + $0x40] sm:$0xff] }
 0x40d   : > { %4525 = vmatprep.subr.mxu1 %v2462_v49  ;;  %4561 = vmatpush3.msra.mxu0 %v2558_v47  ;;  %v2780_v47 = vld [vmem:[#allocation13 + $0x38] sm:$0xff] }
 0x40e   : > { %4526 = vmatpush3.msra.mxu1 %v2462_v49  ;;  %4562 = vmatprep.subr.mxu0 %v2557_v50  ;;  %v2801_v49 = vld [vmem:[#allocation13 + $0xd0] sm:$0xff] }
 0x40f   : > { %4527 = vmatprep.subr.mxu1 %v2461_v36  ;;  %4563 = vmatpush3.msra.mxu0 %v2557_v50  ;;  %v2779_v50 = vld [vmem:[#allocation13 + $0x30] sm:$0xff] }
 0x410   : > { %4528 = vmatpush3.msra.mxu1 %v2461_v36  ;;  %4564 = vmatprep.subr.mxu0 %v2556_v51  ;;  %v2800_v36 = vld [vmem:[#allocation13 + $0xc8] sm:$0xff] }
 0x411   : > { %4529 = vmatprep.subr.mxu1 %v2460_v52  ;;  %4565 = vmatpush3.msra.mxu0 %v2556_v51  ;;  %v2778_v51 = vld [vmem:[#allocation13 + $0x28] sm:$0xff] }
 0x412   : > { %4530 = vmatpush3.msra.mxu1 %v2460_v52  ;;  %4566 = vmatprep.subr.mxu0 %v2555_v53  ;;  %v2799_v52 = vld [vmem:[#allocation13 + $0xc0] sm:$0xff] }
 0x413   : > { %4531 = vmatprep.subr.mxu1 %v2459_v54  ;;  %4567 = vmatpush3.msra.mxu0 %v2555_v53  ;;  %v2777_v53 = vld [vmem:[#allocation13 + $0x20] sm:$0xff] }
 0x414   : > { %4532 = vmatpush3.msra.mxu1 %v2459_v54  ;;  %4568 = vmatprep.subr.mxu0 %v2554_v55  ;;  %v2798_v54 = vld [vmem:[#allocation13 + $0xb8] sm:$0xff] }
 0x415   : > { %4533 = vmatprep.subr.mxu1 %v2458_v56  ;;  %4569 = vmatpush3.msra.mxu0 %v2554_v55  ;;  %v2776_v55 = vld [vmem:[#allocation13 + $0x18] sm:$0xff] }
 0x416   : > { %4534 = vmatpush3.msra.mxu1 %v2458_v56  ;;  %4570 = vmatprep.subr.mxu0 %v2553_v57  ;;  %v2797_v56 = vld [vmem:[#allocation13 + $0xb0] sm:$0xff] }
 0x417   : > { %4535 = vmatprep.subr.mxu1 %v2457_v59  ;;  %4571 = vmatpush3.msra.mxu0 %v2553_v57  ;;  %v2775_v57 = vld [vmem:[#allocation13 + $0x10] sm:$0xff] }
 0x418   : > { %4536 = vmatpush3.msra.mxu1 %v2457_v59  ;;  %4572 = vmatprep.subr.mxu0 %v2552_v60  ;;  %v2796_v59 = vld [vmem:[#allocation13 + $0xa8] sm:$0xff] }
 0x419   : > { %4537 = vmatprep.subr.mxu1 %v2456_v61  ;;  %4573 = vmatpush3.msra.mxu0 %v2552_v60  ;;  %v2774_v60 = vld [vmem:[#allocation13 + $0x8] sm:$0xff] }
 0x41a   : > { %4538 = vmatpush3.msra.mxu1 %v2456_v61  ;;  %4574 = vmatprep.subr.mxu0 %v2551_v41  ;;  %v2795_v61 = vld [vmem:[#allocation13 + $0xa0] sm:$0xff] }
 0x41b   : > { %4539 = vmatprep.subr.mxu1 %v2455_v63  ;;  %4575 = vmatpush3.msra.mxu0 %v2551_v41  ;;  %v2794_v41 = vld [vmem:[#allocation13 + $0x98] sm:$0xff] }
 0x41c   : > { %4540 = vmatpush3.msra.mxu1 %v2455_v63  ;;  %4576 = vmatprep.subr.mxu0 %v2550_v0  ;;  %v2773_v63 = vld [vmem:[#allocation13] sm:$0xff] }
 0x41d   : > { %4541 = vmatprep.subr.mxu1 %v2454_v1  ;;  %4577 = vmatpush3.msra.mxu0 %v2550_v0  ;;  %v2793_v0 = vld [vmem:[#allocation13 + $0x90] sm:$0xff] }
 0x41e   : > { %4542 = vmatpush3.msra.mxu1 %v2454_v1  ;;  %4578 = vmatprep.subr.mxu0 %v2549_v2  ;;  %v2792_v1 = vld [vmem:[#allocation13 + $0x88] sm:$0xff] }
 0x41f   : > { %4543 = vmatprep.subr.mxu1 %v2453_v3  ;;  %4579 = vmatpush3.msra.mxu0 %v2549_v2  ;;  %v2791_v2 = vld [vmem:[#allocation13 + $0x80] sm:$0xff] }
 0x420   : > { %4544 = vmatpush3.msra.mxu1 %v2453_v3  ;;  %4580 = vmatprep.subr.mxu0 %v2548_v4 }
 0x421   : > { %4545 = vmatprep.subr.mxu1 %v2452_v5  ;;  %4581 = vmatpush3.msra.mxu0 %v2548_v4 }
 0x422   : > { %4546 = vmatpush3.msra.mxu1 %v2452_v5  ;;  %4582 = vmatprep.subr.mxu0 %v2547_v7 }
 0x423   : > { %4547 = vmatprep.subr.mxu1 %v2451_v8  ;;  %4583 = vmatpush3.msra.mxu0 %v2547_v7 }
 0x424   : > { %4548 = vmatpush3.msra.mxu1 %v2451_v8  ;;  %4584 = vmatprep.subr.mxu0 %v2546_v9 }
 0x425   : > { %4549 = vmatprep.subr.mxu1 %v2450_v10  ;;  %4585 = vmatpush3.msra.mxu0 %v2546_v9 }
 0x426   : > { %4550 = vmatpush3.msra.mxu1 %v2450_v10  ;;  %4586 = vmatprep.subr.mxu0 %v2545_v11 }
 0x427   : > { %4551 = vmatprep.subr.mxu1 %v2449_v12  ;;  %4587 = vmatpush3.msra.mxu0 %v2545_v11 }
 0x428   : > { %4552 = vmatpush3.msra.mxu1 %v2449_v12  ;;  %4589 = vmatmul.mubr.f32.vlgmr.msra.gmra.mxu0 %v2543_v14 }
 0x429   : > { %4554 = vmatmul.mubr.f32.vlgmr.msra.gmra.mxu1 %v2447_v15  ;;  %4591 = vmatprep.subr.mxu1 %v2656_v13 }
 0x42a   : > { %4592 = vmatpush3.msra.mxu1 %v2656_v13  ;;  %4623 = vmatprep.mubr.f32.mxu1 %v2638_v17 }
 0x42b   : > { %4593 = vmatprep.subr.mxu1 %v2655_v16  ;;  %4626 = vmatprep.subr.mxu0 %v5198_v6 }
 0x42c   : > { %4594 = vmatpush3.msra.mxu1 %v2655_v16  ;;  %4658 = vmatprep.mubr.msk.f32.mxu0 %vm5199_vm0, %v5198_v6 }
 0x42d   : > { %4595 = vmatprep.subr.mxu1 %v2654_v18  ;;  %4627 = vmatpush3.msra.mxu0 %v2806_v38  ;;  %v2964_v38 = vld [vmem:[#allocation13 + $0x178] sm:$0xff] }
 0x42e   : > { %4596 = vmatpush3.msra.mxu1 %v2654_v18  ;;  %4628 = vmatprep.subr.mxu0 %v5198_v6  ;;  %v3401_v18 = vld [vmem:[%s5889_s11] ss:$0 sm:$0xff] }
 0x42f   : > { %4597 = vmatprep.subr.mxu1 %v2653_v19  ;;  %4629 = vmatpush3.msra.mxu0 %v2805_v40 }
 0x430   : > { %4598 = vmatpush3.msra.mxu1 %v2653_v19  ;;  %4630 = vmatprep.subr.mxu0 %v5198_v6 }
 0x431   : > { %4599 = vmatprep.subr.mxu1 %v2652_v20  ;;  %4631 = vmatpush3.msra.mxu0 %v2804_v43  ;;  %v3048_v43 = vld [vmem:[#allocation13 + $0x1d0] sm:$0xff] }
 0x432   : > { %4600 = vmatpush3.msra.mxu1 %v2652_v20  ;;  %4632 = vmatprep.subr.mxu0 %v5198_v6 }
 0x433   : > { %4601 = vmatprep.subr.mxu1 %v2651_v21  ;;  %4633 = vmatpush3.msra.mxu0 %v2803_v45  ;;  %v3047_v45 = vld [vmem:[#allocation13 + $0x1c8] sm:$0xff] }
 0x434   : > { %4602 = vmatpush3.msra.mxu1 %v2651_v21  ;;  %4634 = vmatprep.subr.mxu0 %v5198_v6  ;;  %v3402_v21 = vld [vmem:[%s5890_s12] ss:$0 sm:$0xff] }
 0x435   : > { %4603 = vmatprep.subr.mxu1 %v2650_v22  ;;  %4635 = vmatpush3.msra.mxu0 %v2802_v46  ;;  %v3046_v46 = vld [vmem:[#allocation13 + $0x1c0] sm:$0xff] }
 0x436   : > { %4604 = vmatpush3.msra.mxu1 %v2650_v22  ;;  %4636 = vmatprep.subr.mxu0 %v5198_v6 }
 0x437   : > { %4605 = vmatprep.subr.mxu1 %v2649_v23  ;;  %4637 = vmatpush3.msra.mxu0 %v2801_v49  ;;  %v3045_v49 = vld [vmem:[#allocation13 + $0x1b8] sm:$0xff] }
 0x438   : > { %4606 = vmatpush3.msra.mxu1 %v2649_v23  ;;  %4638 = vmatprep.subr.mxu0 %v5198_v6 }
 0x439   : > { %4607 = vmatprep.subr.mxu1 %v2648_v24  ;;  %4639 = vmatpush3.msra.mxu0 %v2800_v36  ;;  %v3044_v36 = vld [vmem:[#allocation13 + $0x1b0] sm:$0xff] }
 0x43a   : > { %4608 = vmatpush3.msra.mxu1 %v2648_v24  ;;  %4640 = vmatprep.subr.mxu0 %v5198_v6 }
 0x43b   : > { %4609 = vmatprep.subr.mxu1 %v2647_v25  ;;  %4641 = vmatpush3.msra.mxu0 %v2799_v52  ;;  %v3043_v52 = vld [vmem:[#allocation13 + $0x1a8] sm:$0xff] }
 0x43c   : > { %4610 = vmatpush3.msra.mxu1 %v2647_v25  ;;  %4642 = vmatprep.subr.mxu0 %v5198_v6 }
 0x43d   : > { %4611 = vmatprep.subr.mxu1 %v2646_v26  ;;  %4643 = vmatpush3.msra.mxu0 %v2798_v54  ;;  %v3042_v54 = vld [vmem:[#allocation13 + $0x1a0] sm:$0xff] }
 0x43e   : > { %4612 = vmatpush3.msra.mxu1 %v2646_v26  ;;  %4644 = vmatprep.subr.mxu0 %v5198_v6 }
 0x43f   : > { %4613 = vmatprep.subr.mxu1 %v2645_v27  ;;  %4645 = vmatpush3.msra.mxu0 %v2797_v56  ;;  %v3041_v56 = vld [vmem:[#allocation13 + $0x198] sm:$0xff] }
 0x440   : > { %4614 = vmatpush3.msra.mxu1 %v2645_v27  ;;  %4646 = vmatprep.subr.mxu0 %v5198_v6 }
 0x441   : > { %4615 = vmatprep.subr.mxu1 %v2644_v28  ;;  %4647 = vmatpush3.msra.mxu0 %v2796_v59  ;;  %v3040_v59 = vld [vmem:[#allocation13 + $0x190] sm:$0xff] }
 0x442   : > { %4616 = vmatpush3.msra.mxu1 %v2644_v28  ;;  %4648 = vmatprep.subr.mxu0 %v5198_v6  ;;  %v2755_v28 = vstv %s3403_s28  ;;  %s3245_s28 = scalar_lea.hbm %s5929_s24, %s3408_s17 }
 0x443   : > { %4617 = vmatprep.subr.mxu1 %v2643_v29  ;;  %4649 = vmatpush3.msra.mxu0 %v2795_v61  ;;  %v3039_v61 = vld [vmem:[#allocation13 + $0x188] sm:$0xff] }
 0x444   : > { %4618 = vmatpush3.msra.mxu1 %v2643_v29  ;;  %4650 = vmatprep.subr.mxu0 %v5198_v6  ;;  %v2757_v29 = vadd.s32 %v2755_v28, %v5616_v58  ;;  %v3050_v58 = vld [vmem:[#allocation13 + $0x1e0] sm:$0xff] }
 0x445   : > { %4619 = vmatprep.subr.mxu1 %v2642_v30  ;;  %4651 = vmatpush3.msra.mxu0 %v2794_v41  ;;  %v2953_v41 = vld [vmem:[#allocation13 + $0x120] sm:$0xff] }
 0x446   : > { %4620 = vmatpush3.msra.mxu1 %v2642_v30  ;;  %4652 = vmatprep.subr.mxu0 %v5198_v6  ;;  %v2756_v30 = vadd.s32 %v2755_v28, %v5612_v48  ;;  %vm2759_vm10 = vcmp.ge.s32.totalorder %v2757_v29, 0  ;;  %vm2761_vm11 = vcmp.lt.s32.totalorder %v2757_v29, 16  ;;  %v3051_v48 = vld [vmem:[#allocation13 + $0x1e8] sm:$0xff] }
 0x447   : > { %4621 = vmatprep.subr.mxu1 %v2641_v31  ;;  %4653 = vmatpush3.msra.mxu0 %v2793_v0  ;;  %vm2763_vm14 = vmand %vm2759_vm10, %vm2761_vm11  ;;  %v2952_v0 = vld [vmem:[#allocation13 + $0x118] sm:$0xff] }
 0x448   : > { %4622 = vmatpush3.msra.mxu1 %v2641_v31  ;;  %4654 = vmatprep.subr.mxu0 %v5198_v6  ;;  %vm2758_vm12 = vcmp.ge.s32.totalorder %v2756_v30, 0  ;;  %vm2760_vm13 = vcmp.lt.s32.totalorder %v2756_v30, 16 }
 0x449   : > { %4624 = vmatmul.mubr.f32.vlgmr.msra.gmra.mxu1 %v2639_v32  ;;  %4661 = vmatprep.subr.mxu1 %v5198_v6  ;;  %vm2762_vm15 = vmand %vm2758_vm12, %vm2760_vm13 }
 0x44a   : > { %4693 = vmatprep.mubr.msk.f32.mxu1 %vm5199_vm0, %v5198_v6  ;;  %4662 = vmatpush3.msra.mxu1 %v2788_v33 }
 0x44b   : > { %4663 = vmatprep.subr.mxu1 %v5198_v6  ;;  %4655 = vmatpush3.msra.mxu0 %v2792_v1  ;;  %v2951_v1 = vld [vmem:[#allocation13 + $0x110] sm:$0xff] }
 0x44c   : > { %4664 = vmatpush3.msra.mxu1 %v2787_v34  ;;  %4656 = vmatprep.subr.mxu0 %v5198_v6  ;;  %v3053_v34 = vld [vmem:[#allocation13 + $0x1f8] sm:$0xff] }
 0x44d   : > { %4665 = vmatprep.subr.mxu1 %v5198_v6  ;;  %4657 = vmatpush3.msra.mxu0 %v2791_v2 }
 0x44e   : > { %4666 = vmatpush3.msra.mxu1 %v2786_v35  ;;  %4696 = vmatprep.subr.mxu0 %v5198_v6 }
 0x44f   : > { %4667 = vmatprep.subr.mxu1 %v5198_v6 }
 0x450   : > { %4668 = vmatpush3.msra.mxu1 %v2785_v37  ;;  %v3052_v37 = vld [vmem:[#allocation13 + $0x1f0] sm:$0xff] }
 0x451   : > { %4669 = vmatprep.subr.mxu1 %v5198_v6 }
 0x452   : > { %4670 = vmatpush3.msra.mxu1 %v2784_v39  ;;  %v3049_v39 = vld [vmem:[#allocation13 + $0x1d8] sm:$0xff] }
 0x453   : > { %4671 = vmatprep.subr.mxu1 %v5198_v6 }
 0x454   : > { %4672 = vmatpush3.msra.mxu1 %v2783_v42  ;;  %v2963_v42 = vld [vmem:[#allocation13 + $0x170] sm:$0xff] }
 0x455   : > { %4673 = vmatprep.subr.mxu1 %v5198_v6 }
 0x456   : > { %4674 = vmatpush3.msra.mxu1 %v2782_v44  ;;  %v2962_v44 = vld [vmem:[#allocation13 + $0x168] sm:$0xff] }
 0x457   : > { %4675 = vmatprep.subr.mxu1 %v5198_v6 }
 0x458   : > { %4676 = vmatpush3.msra.mxu1 %v2781_v62  ;;  %v2961_v62 = vld [vmem:[#allocation13 + $0x160] sm:$0xff] }
 0x459   : > { %4677 = vmatprep.subr.mxu1 %v5198_v6 }
 0x45a   : > { %4678 = vmatpush3.msra.mxu1 %v2780_v47  ;;  %v2960_v47 = vld [vmem:[#allocation13 + $0x158] sm:$0xff] }
 0x45b   : > { %4679 = vmatprep.subr.mxu1 %v5198_v6 }
 0x45c   : > { %4680 = vmatpush3.msra.mxu1 %v2779_v50  ;;  %v2959_v50 = vld [vmem:[#allocation13 + $0x150] sm:$0xff] }
 0x45d   : > { %4681 = vmatprep.subr.mxu1 %v5198_v6 }
 0x45e   : > { %4682 = vmatpush3.msra.mxu1 %v2778_v51  ;;  %v2958_v51 = vld [vmem:[#allocation13 + $0x148] sm:$0xff] }
 0x45f   : > { %4683 = vmatprep.subr.mxu1 %v5198_v6 }
 0x460   : > { %4684 = vmatpush3.msra.mxu1 %v2777_v53  ;;  %v2957_v53 = vld [vmem:[#allocation13 + $0x140] sm:$0xff] }
 0x461   : > { %4685 = vmatprep.subr.mxu1 %v5198_v6 }
 0x462   : > { %4686 = vmatpush3.msra.mxu1 %v2776_v55  ;;  %v2956_v55 = vld [vmem:[#allocation13 + $0x138] sm:$0xff] }
 0x463   : > { %4687 = vmatprep.subr.mxu1 %v5198_v6 }
 0x464   : > { %4688 = vmatpush3.msra.mxu1 %v2775_v57  ;;  %v2955_v57 = vld [vmem:[#allocation13 + $0x130] sm:$0xff] }
 0x465   : > { %4689 = vmatprep.subr.mxu1 %v5198_v6 }
 0x466   : > { %4690 = vmatpush3.msra.mxu1 %v2774_v60  ;;  %v2954_v60 = vld [vmem:[#allocation13 + $0x128] sm:$0xff] }
 0x467   : > { %4691 = vmatprep.subr.mxu1 %v5198_v6 }
 0x468   : > { %4692 = vmatpush3.msra.mxu1 %v2773_v63  ;;  %v3038_v63 = vld [vmem:[#allocation13 + $0x180] sm:$0xff] }
 0x469   : > { %4731 = vmatprep.subr.mxu1 %v5198_v6 }
 0x4c6   : > { %v4520_v5 = vpop.f32.mrf.mxu0 }
 0x4c8   : > { %v2437_v9 = vpop.f32.mrf.mxu0 }
 0x4c9   : > { %v4485_v3 = vpop.f32.mrf.mxu1 }
 0x4ca   : > { %v2443_v8 = vadd.f32 %v4520_v5, %v4485_v3  ;;  %v2950_v3 = vld [vmem:[#allocation13 + $0x108] sm:$0xff]  ;;  %v3142_v5 = vld [vmem:[#allocation13 + $0x278] sm:$0xff] }
 0x4cb   : > { %v2362_v4 = vpop.f32.mrf.mxu1 }
 0x4cc   : > { %v2438_v11 = vadd.f32 %v2437_v9, %v2362_v4  ;;  %v2949_v4 = vld [vmem:[#allocation13 + $0x100] sm:$0xff]  ;;  %v3140_v9 = vld [vmem:[#allocation13 + $0x268] sm:$0xff] }
 0x4e8   : > { %v4590_v13 = vpop.f32.mrf.mxu0 }
 0x4e9   : > { %v4555_v7 = vpop.f32.mrf.mxu1 }
 0x4ea   : > { %v2541_v12 = vadd.f32 %v4555_v7, %v2443_v8  ;;  %v2627_v16 = vpop.f32.mrf.mxu0  ;;  %v3141_v8 = vld [vmem:[#allocation13 + $0x270] sm:$0xff] }
 0x4eb   : > { %v2531_v10 = vpop.f32.mrf.mxu1 }
 0x4ec   : > { %v2540_v14 = vadd.f32 %v2531_v10, %v2438_v11  ;;  %v2637_v15 = vadd.f32 %v4590_v13, %v2541_v12  ;;  %v3139_v10 = vld [vmem:[#allocation13 + $0x260] sm:$0xff]  ;;  %v3138_v11 = vld [vmem:[#allocation13 + $0x258] sm:$0xff]  ;;  %v3137_v12 = vld [vmem:[#allocation13 + $0x250] sm:$0xff] }
 0x4ed   : > { %v3136_v13 = vld [vmem:[#allocation13 + $0x248] sm:$0xff] }
 0x4ee   : > { %v2636_v19 = vadd.f32 %v2627_v16, %v2540_v14  ;;  %v3135_v14 = vld [vmem:[#allocation13 + $0x240] sm:$0xff]  ;;  %v3133_v16 = vld [vmem:[#allocation13 + $0x230] sm:$0xff] }
 0x509   : > { %v4625_v17 = vpop.f32.mrf.mxu1 }
 0x50a   : > { %v2733_v20 = vadd.f32 %v4625_v17, %v2637_v15  ;;  %v3134_v15 = vld [vmem:[#allocation13 + $0x238] sm:$0xff]  ;;  %v3132_v17 = vld [vmem:[#allocation13 + $0x228] sm:$0xff] }
 0x50b   : > { %v2723_v22 = vpop.f32.mrf.mxu1 }
 0x50c   : > { %v2742_v23 = vmul.f32 %v3401_v18, %v2733_v20  ;;  %v2732_v24 = vadd.f32 %v2723_v22, %v2636_v19  ;;  %v3130_v19 = vld [vmem:[#allocation13 + $0x218] sm:$0xff]  ;;  %v3129_v20 = vld [vmem:[#allocation13 + $0x210] sm:$0xff]  ;;  %v3127_v22 = vld [vmem:[#allocation13 + $0x200] sm:$0xff] }
 0x50e   : > { %v2751_v25 = vadd.f32 %v3402_v21, %v2742_v23  ;;  %v2741_v26 = vmul.f32 %v3401_v18, %v2732_v24  ;;  %v3131_v18 = vld [vmem:[#allocation13 + $0x220] sm:$0xff] }
 0x510   : > { %4943 = vtanh.f32 %v2751_v25  ;;  %v2750_v27 = vadd.f32 %v3402_v21, %v2741_v26  ;;  %v3128_v21 = vld [vmem:[#allocation13 + $0x208] sm:$0xff] }
 0x512   : > { %4945 = vtanh.f32 %v2750_v27 }
 0x51d   : > { %v4944_v31 = vpop.eup %4943 }
 0x51e   : > { %v2769_v32 = vsel %vm2763_vm14, %v4944_v31, 0.0 }
 0x51f   : > { %v4946_v33 = vpop.eup %4945  ;;  %2771 = vst [vmem:[#allocation4 + $0x8] sm:$0xf] %v2769_v32 }
 0x520   : > { %v2768_v35 = vsel %vm2762_vm15, %v4946_v33, 0.0  ;;  %4952 = vmatmul.mubr.msk.f32.vlgmr.msra.gmra.mxu1 %vm2762_vm15, %v4946_v33 }
 0x521   : > { %2770 = vst [vmem:[#allocation4] sm:$0xff] %v2768_v35  ;;  %4732 = vmatpush3.msra.mxu1 %v3053_v34  ;;  %4763 = vmatprep.mubr.msk.f32.mxu1 %vm5199_vm0, %v5198_v6  ;;  %v3404_v35 = vld [vmem:[%s5927_s19] ss:$0 sm:$0xff]  ;;  %s5200_s19 = smov [#allocation14]  }
 0x522   : > { %4733 = vmatprep.subr.mxu1 %v5198_v6  ;;  %s5087_s27 = sshll.u32 %s5200_s19, 4  ;;  %s5088_s27 = int_to_ptr.vmem [resolvable:$false] %s5087_s27 }
 0x523   : > { %4734 = vmatpush3.msra.mxu1 %v3052_v37  ;;  %s5089_s15 = scalar_lea.vmem %s5088_s27, 256  ;;  %p5090_p1 = scmp.lt.s32.totalorder %s3248_s23, %s5088_s27 }
 0x524   : > { %4735 = vmatprep.subr.mxu1 %v5198_v6  ;;  %p5091_p2 = scmp.lt.s32.totalorder %s5089_s15, %s5083_s30 }
 0x525   : > { %4736 = vmatpush3.msra.mxu1 %v3051_v48 }
 0x526   : > { %4737 = vmatprep.subr.mxu1 %v5198_v6  ;;  %p5092_p5 = por %p5091_p2, %p5090_p1 }
 0x527   : > { %4738 = vmatpush3.msra.mxu1 %v3050_v58  ;;  %v3405_v58 = vld [vmem:[%s5928_s4] ss:$0 sm:$0xff] }
 0x528   : > { %v2789_v40 = vld [vmem:[#allocation4 + $0x1] sm:$0xff]  ;;  %4739 = vmatprep.subr.mxu1 %v5198_v6  ;;  %p5093_p6 = pnand %p5092_p5, %p5086_p0 }
 0x529   : > { %4659 = vmatmul.mubr.f32.vlgmr.msra.gmra.mxu0 %v2789_v40  ;;  %4740 = vmatpush3.msra.mxu1 %v3049_v39  ;;  %v3036_v2 = vld [vmem:[#allocation4 + $0x3] sm:$0xff] }
 0x52a   : > { %4697 = vmatpush3.msra.mxu0 %v2964_v38  ;;  %4741 = vmatprep.subr.mxu1 %v5198_v6  ;;  %v2947_v7 = vld [vmem:[#allocation4 + $0x2] sm:$0xff] }
 0x52b   : > { %4698 = vmatprep.subr.mxu0 %v5198_v6  ;;  %4742 = vmatpush3.msra.mxu1 %v3048_v43  ;;  %v3125_v23 = vld [vmem:[#allocation4 + $0x4] sm:$0xff] }
 0x52c   : > { %4699 = vmatpush3.msra.mxu0 %v2963_v42  ;;  %4743 = vmatprep.subr.mxu1 %v5198_v6 }
 0x52d   : > { %4700 = vmatprep.subr.mxu0 %v5198_v6  ;;  %4744 = vmatpush3.msra.mxu1 %v3047_v45 }
 0x52e   : > { %4701 = vmatpush3.msra.mxu0 %v2962_v44  ;;  %4745 = vmatprep.subr.mxu1 %v5198_v6 }
 0x52f   : > { %4702 = vmatprep.subr.mxu0 %v5198_v6  ;;  %4746 = vmatpush3.msra.mxu1 %v3046_v46 }
 0x530   : > { %4703 = vmatpush3.msra.mxu0 %v2961_v62  ;;  %4747 = vmatprep.subr.mxu1 %v5198_v6 }
 0x531   : > { %4704 = vmatprep.subr.mxu0 %v5198_v6  ;;  %4748 = vmatpush3.msra.mxu1 %v3045_v49 }
 0x532   : > { %4705 = vmatpush3.msra.mxu0 %v2960_v47  ;;  %4749 = vmatprep.subr.mxu1 %v5198_v6 }
 0x533   : > { %4706 = vmatprep.subr.mxu0 %v5198_v6  ;;  %4750 = vmatpush3.msra.mxu1 %v3044_v36 }
 0x534   : > { %4707 = vmatpush3.msra.mxu0 %v2959_v50  ;;  %4751 = vmatprep.subr.mxu1 %v5198_v6 }
 0x535   : > { %4708 = vmatprep.subr.mxu0 %v5198_v6  ;;  %4752 = vmatpush3.msra.mxu1 %v3043_v52 }
 0x536   : > { %4709 = vmatpush3.msra.mxu0 %v2958_v51  ;;  %4753 = vmatprep.subr.mxu1 %v5198_v6 }
 0x537   : > { %4710 = vmatprep.subr.mxu0 %v5198_v6  ;;  %4754 = vmatpush3.msra.mxu1 %v3042_v54 }
 0x538   : > { %4711 = vmatpush3.msra.mxu0 %v2957_v53  ;;  %4755 = vmatprep.subr.mxu1 %v5198_v6 }
 0x539   : > { %4712 = vmatprep.subr.mxu0 %v5198_v6  ;;  %4756 = vmatpush3.msra.mxu1 %v3041_v56 }
 0x53a   : > { %4713 = vmatpush3.msra.mxu0 %v2956_v55  ;;  %4757 = vmatprep.subr.mxu1 %v5198_v6 }
 0x53b   : > { %4714 = vmatprep.subr.mxu0 %v5198_v6  ;;  %4758 = vmatpush3.msra.mxu1 %v3040_v59 }
 0x53c   : > { %4715 = vmatpush3.msra.mxu0 %v2955_v57  ;;  %4759 = vmatprep.subr.mxu1 %v5198_v6 }
 0x53d   : > { %4716 = vmatprep.subr.mxu0 %v5198_v6  ;;  %4760 = vmatpush3.msra.mxu1 %v3039_v61 }
 0x53e   : > { %4717 = vmatpush3.msra.mxu0 %v2954_v60  ;;  %4761 = vmatprep.subr.mxu1 %v5198_v6 }
 0x53f   : > { %4718 = vmatprep.subr.mxu0 %v5198_v6  ;;  %4728 = vmatprep.mubr.msk.f32.mxu0 %vm5199_vm0, %v5198_v6 }
 0x540   : > { %4719 = vmatpush3.msra.mxu0 %v2953_v41  ;;  %4762 = vmatpush3.msra.mxu1 %v3038_v63 }
 0x541   : > { %4720 = vmatprep.subr.mxu0 %v5198_v6  ;;  %4764 = vmatmul.mubr.f32.vlgmr.msra.gmra.mxu1 %v3036_v2 }
 0x542   : > { %4721 = vmatpush3.msra.mxu0 %v2952_v0 }
 0x543   : > { %4722 = vmatprep.subr.mxu0 %v5198_v6 }
 0x544   : > { %4723 = vmatpush3.msra.mxu0 %v2951_v1 }
 0x545   : > { %4724 = vmatprep.subr.mxu0 %v5198_v6 }
 0x546   : > { %4725 = vmatpush3.msra.mxu0 %v2950_v3 }
 0x547   : > { %4726 = vmatprep.subr.mxu0 %v5198_v6 }
 0x548   : > { %4727 = vmatpush3.msra.mxu0 %v2949_v4 }
 0x549   : > { %4729 = vmatmul.mubr.f32.vlgmr.msra.gmra.mxu0 %v2947_v7  ;;  %4766 = vmatprep.subr.mxu0 %v5198_v6 }
 0x54a   : > { %4767 = vmatpush3.msra.mxu0 %v3142_v5  ;;  %4798 = vmatprep.mubr.msk.f32.mxu0 %vm5199_vm0, %v5198_v6 }
 0x54b   : > { %4768 = vmatprep.subr.mxu0 %v5198_v6 }
 0x54c   : > { %4769 = vmatpush3.msra.mxu0 %v3141_v8 }
 0x54d   : > { %4770 = vmatprep.subr.mxu0 %v5198_v6 }
 0x54e   : > { %4771 = vmatpush3.msra.mxu0 %v3140_v9 }
 0x54f   : > { %4772 = vmatprep.subr.mxu0 %v5198_v6 }
 0x550   : > { %4773 = vmatpush3.msra.mxu0 %v3139_v10 }
 0x551   : > { %4774 = vmatprep.subr.mxu0 %v5198_v6 }
 0x552   : > { %4775 = vmatpush3.msra.mxu0 %v3138_v11 }
 0x553   : > { %4776 = vmatprep.subr.mxu0 %v5198_v6 }
 0x554   : > { %4777 = vmatpush3.msra.mxu0 %v3137_v12 }
 0x555   : > { %4778 = vmatprep.subr.mxu0 %v5198_v6 }
 0x556   : > { %4779 = vmatpush3.msra.mxu0 %v3136_v13 }
 0x557   : > { %4780 = vmatprep.subr.mxu0 %v5198_v6 }
 0x558   : > { %4781 = vmatpush3.msra.mxu0 %v3135_v14 }
 0x559   : > { %4782 = vmatprep.subr.mxu0 %v5198_v6 }
 0x55a   : > { %4783 = vmatpush3.msra.mxu0 %v3134_v15 }
 0x55b   : > { %4784 = vmatprep.subr.mxu0 %v5198_v6 }
 0x55c   : > { %4785 = vmatpush3.msra.mxu0 %v3133_v16 }
 0x55d   : > { %4786 = vmatprep.subr.mxu0 %v5198_v6 }
 0x55e   : > { %4787 = vmatpush3.msra.mxu0 %v3132_v17 }
 0x55f   : > { %4788 = vmatprep.subr.mxu0 %v5198_v6 }
 0x560   : > { %4789 = vmatpush3.msra.mxu0 %v3131_v18 }
 0x561   : > { %4790 = vmatprep.subr.mxu0 %v5198_v6 }
 0x562   : > { %4791 = vmatpush3.msra.mxu0 %v3130_v19 }
 0x563   : > { %4792 = vmatprep.subr.mxu0 %v5198_v6 }
 0x564   : > { %4793 = vmatpush3.msra.mxu0 %v3129_v20 }
 0x565   : > { %4794 = vmatprep.subr.mxu0 %v5198_v6 }
 0x566   : > { %4795 = vmatpush3.msra.mxu0 %v3128_v21 }
 0x567   : > { %4796 = vmatprep.subr.mxu0 %v5198_v6 }
 0x568   : > { %4797 = vmatpush3.msra.mxu0 %v3127_v22 }
 0x569   : > { %4799 = vmatmul.mubr.f32.vlgmr.msra.gmra.mxu0 %v3125_v23 }
 0x5e0   : > { %v2943_v24 = vpop.f32.mrf.mxu1 }
 0x5e2   : > { %v4695_v25 = vpop.f32.mrf.mxu1 }
 0x5e9   : > { %v2873_v26 = vpop.f32.mrf.mxu0 }
 0x5ea   : > { %v2944_v32 = vadd.f32 %v2943_v24, %v2873_v26 }
 0x5eb   : > { %v4660_v27 = vpop.f32.mrf.mxu0 }
 0x601   : > { %v3120_v28 = vpop.f32.mrf.mxu1 }
 0x603   : > { %v4765_v29 = vpop.f32.mrf.mxu1 }
 0x609   : > { %v3031_v30 = vpop.f32.mrf.mxu0 }
 0x60a   : > { %v3035_v33 = vadd.f32 %v3031_v30, %v2944_v32 }
 0x60b   : > { %v4730_v31 = vpop.f32.mrf.mxu0 }
 0x60c   : > { %v3124_v34 = vadd.f32 %v3120_v28, %v3035_v33 }
 0x629   : > { %v3209_v6 = vpop.f32.mrf.mxu0 }
 0x62a   : > { %v3213_v37 = vadd.f32 %v3209_v6, %v3124_v34 }
 0x62b   : > { %v4800_v48 = vpop.f32.mrf.mxu0 }
 0x62c   : > { %v3221_v38 = vmul.f32 %v3404_v35, %v3213_v37 }
 0x62e   : > { %v3229_v39 = vadd.f32 %v3405_v58, %v3221_v38 }
 0x630   : > { %3230 = vst [vmem:[%s560_s18] sm:$0xff] %v3229_v39 }
 0x631   : > { %5096 = shalt.err (!%p5093_p6)
}
 0x632   : > { %s5097_s21 = scalar_lea.hbm %s3245_s28, 128  ;;  %s5101_s18 = scalar_lea.hbm %s5930_s0, 512 }
 0x633   : > { %p5098_p7 = scmp.ne.s32.totalorder %s3245_s28, %s5097_s21  ;;  %p5102_p11 = scmp.lt.s32.totalorder %s3245_s28, %s5930_s0 }
 0x634   : > { %p5103_p13 = scmp.lt.s32.totalorder %s5101_s18, %s5097_s21 }
 0x635   : > { %p5099_p8 = pnand %p5098_p7, %p5338_p3 }
 0x636   : > { %p5104_p4 = por %p5103_p13, %p5102_p11 }
 0x637   : > { %p5100_p9 = pneg %p5099_p8 }
 0x639   : > { %p5105_p10 = pnand %p5104_p4, %p5100_p9 }
 0x63b   : > { %5108 = shalt.err (!%p5105_p10)
}
 0x63c   : > { %4821 = dma.vmem_to_hbm [thread:$0]  (%p5338_p3), %s3248_s23, 128, %s3245_s28, %s3232_s26  }
 0x63d PF: > { %s5931_s25 = sld [smem:[#allocation26_spill]] }
 0x63e   : > { %s5932_s14 = sld [smem:[#allocation22_spill]] }
 0x63f   : > { %s5933_s24 = sld [smem:[#allocation29_spill]] }
 0x643   : > { %p4853_p12 = scmp.ge.s32.totalorder %s5931_s25, 2 }
 0x644   : > { %s3259_s30 = sand.u32 1, %s5932_s14  }
 0x645   : > { %p5934_p0 = scmp.ne.s32.totalorder %s5933_s24, 0  ;;  %s3260_s19 = scalar_lea.sflag [#allocation7], %s3259_s30 }
 0x647   : > { %p4840_p1 = pnand %p4853_p12, %p5934_p0 }
 0x649   : > { %p4841_p2 = pneg %p4840_p1 }
 0x64b   : > { %5156 = dma.done.wait (%p4841_p2), %s3260_s19, 128  }
 0x64c   : > { %5158 = vsyncadd (%p4841_p2), %s3260_s19, 4294967168  ;;  %s32_s28 = sadd.s32 1, %s5931_s25   ;;  %s5935_s27 = sld [smem:[#allocation23_spill]] }
 0x64d   : > { %p29_p5 = scmp.ge.s32.totalorder %s32_s28, 6   ;;  %s5936_s23 = sld [smem:[#allocation30_spill]] }
 0x64e   : > { %s5937_s24 = sld [smem:[#allocation24_spill]]  ;;  %s5941_s21 = smov %s5165_s22 }
 0x64f   : > { %s5938_s25 = sld [smem:[#allocation25_spill]] }
 0x650   : > { %s5939_s26 = sld [smem:[#allocation27_spill]] }
 0x651   : > { %s5940_s20 = sld [smem:[#allocation28_spill]] }
 0x652   : > { %s5942_s22 = smov %s5935_s27 }
 0x653   :  { %31 = sbr.rel (!%p29_p5) target bundleno = 14 (0xe), region = 206 }
 0x657   : > { %s5943_s27 = smov %s5940_s20 }
 0x658   :  { %3265 = vsyncpa [#allocation6], 1 }
 0x659   :  { %3267 = vsyncpa [#allocation6 + $0x1], 1 }
 0x65a   :  { %3268 = vsyncpa [#allocation9], 1 }
 0x65b   :  { %3269 = vsyncpa [#allocation12], 1 }
 0x65c   :  { %3270 = vsyncpa [#allocation7], 1 }
 0x65d   :  { %3272 = vsyncpa [#allocation7 + $0x1], 1 }

</bundles_post_ra>
